<compile_context>
chip_gen: v7x
topology: tpu7x:2x2x1
jax: 0.10.0
libtpu: 0.0.40
codegen_flags: <defaults>
</compile_context>

<pallas_src>
import functools
import math

import jax
import jax.numpy as jnp
from jax.experimental import pallas as pl
from jax.experimental.pallas import tpu as pltpu


# ------------------------------ fused kernel --------------------------------

def _fused_forward_kernel(x_ref, w_emb_ref, b_emb_ref, w_in_ref, wo_ref,
                          w_ff1_ref, b_ff1_ref, w_ff2_ref, small_ref, o_ref,
                          *, B, T, d_model, nhead, num_layers, ffn_bf16):
    """Whole forward pass in one kernel invocation (no grid)."""
    f32 = jnp.float32
    bf16 = jnp.bfloat16
    D = d_model
    hd = D // nhead
    M = B * T
    scale = 1.0 / math.sqrt(hd)

    # ---- constant masks, built once from iotas (pure VPU, no matmul) -------
    row = jax.lax.broadcasted_iota(jnp.int32, (M, M), 0)
    col = jax.lax.broadcasted_iota(jnp.int32, (M, M), 1)
    same = None
    for b in range(B):  # same-batch iff row and col fall in the same T-block
        lo = b * T
        blk = (row >= lo) & (row < lo + T) & (col >= lo) & (col < lo + T)
        same = blk if same is None else (same | blk)
    attn_bias = jnp.where(same, 0.0, -1e30).astype(f32)          # (M, M)

    rb = jax.lax.broadcasted_iota(jnp.int32, (B, M), 0)
    cm = jax.lax.broadcasted_iota(jnp.int32, (B, M), 1)
    pool = jnp.where((cm >= rb * T) & (cm < rb * T + T),
                     1.0 / T, 0.0).astype(f32)                    # (B, M)

    def add_ln(x, res, g, beta):
        # post-norm residual: LayerNorm(x + residual), eps = 1e-5 (PyTorch default)
        y = x + res
        mu = jnp.mean(y, axis=-1, keepdims=True)
        var = jnp.mean(jnp.square(y - mu), axis=-1, keepdims=True)
        return (y - mu) * jax.lax.rsqrt(var + 1e-5) * g + beta

    # ---- embedding (the per-timestep Linear loop == one flattened Linear) --
    h = jnp.dot(x_ref[...].astype(bf16), w_emb_ref[...],
                preferred_element_type=f32) + b_emb_ref[...]      # (M, D) f32
    # self.dropout(emb): identity in eval mode.
    # TODO(synk): train-mode dropout would need pltpu.prng_seed/prng_random_bits.

    # ---- transformer encoder layers (post-norm, relu activation) -----------
    for l in range(num_layers):
        sm = small_ref[l]                       # (7, 3D) packed small params
        b_in = sm[0:1, :]                       # (1, 3D)  q|k|v biases
        bo = sm[1:2, 0:D]
        ln1_g = sm[2:3, 0:D]
        ln1_b = sm[3:4, 0:D]
        b_ff2 = sm[4:5, 0:D]
        ln2_g = sm[5:6, 0:D]
        ln2_b = sm[6:7, 0:D]

        h_bf = h.astype(bf16)

        # fused QKV projection: ONE (M, 3D) matmul, 3*D output lanes
        qkv = jnp.dot(h_bf, w_in_ref[l], preferred_element_type=f32) + b_in

        # per-head attention on static lane slices (offsets are multiples of hd)
        ctx_heads = []
        for hh in range(nhead):
            q = qkv[:, hh * hd:(hh + 1) * hd]                     # (M, hd)
            k = qkv[:, D + hh * hd:D + (hh + 1) * hd]
            v = qkv[:, 2 * D + hh * hd:2 * D + (hh + 1) * hd]
            s = jnp.dot(q, k.T, preferred_element_type=f32) * scale + attn_bias
            s = s - jnp.max(s, axis=-1, keepdims=True)
            e = jnp.exp(s)
            prob = e * pl.reciprocal(jnp.sum(e, axis=-1, keepdims=True),
                                     approx=True)
            ctx_heads.append(jnp.dot(prob, v, preferred_element_type=f32))

        # single out-projection: concat heads (lane dim) -> one (D, D) matmul
        ctx = jnp.concatenate(ctx_heads, axis=-1)                 # (M, D)
        attn_out = jnp.dot(ctx.astype(bf16), wo_ref[l],
                           preferred_element_type=f32) + bo

        h = add_ln(attn_out, h, ln1_g, ln1_b)                     # norm1(src+attn)

        # FFN: bias-add + ReLU in bf16 on v6e/v7x, f32 on v5e/v4
        ff = jnp.dot(h.astype(bf16), w_ff1_ref[l], preferred_element_type=f32)
        if ffn_bf16:
            ff = jnp.maximum(ff.astype(bf16) + b_ff1_ref[l].astype(bf16), 0)
        else:
            ff = jnp.maximum(ff + b_ff1_ref[l], 0.0).astype(bf16)
        ff = jnp.dot(ff, w_ff2_ref[l], preferred_element_type=f32) + b_ff2

        h = add_ln(ff, h, ln2_g, ln2_b)                           # norm2(src+ffn)

    # ---- out.mean(dim=0): mean over the T positions of each batch ----------
    o_ref[...] = jnp.dot(pool, h, preferred_element_type=f32).astype(o_ref.dtype)


# ------------------------------ host wrapper ---------------------------------

def _default_ffn_bf16():
    """bf16 elementwise FFN only on chips with a bf16 VPU (v6e / v7x)."""
    try:
        kind = jax.devices()[0].device_kind.lower()
    except Exception:
        return False
    return not any(v in kind for v in ("v2", "v3", "v4", "v5"))


@functools.partial(jax.jit, static_argnames=("nhead", "ffn_bf16"))
def _forward_jit(params, x_multi, nhead, ffn_bf16):
    B, T, S = x_multi.shape
    D = params["w_emb"].shape[1]
    L = params["w_in"].shape[0]
    FF = params["w_ff1"].shape[2]
    M = B * T

    # contiguous reshape only (row m = b*T + t); no standalone transposes.
    x_tok = x_multi.reshape(M, S)

    args = (x_tok, params["w_emb"], params["b_emb"], params["w_in"],
            params["wo"], params["w_ff1"], params["b_ff1"], params["w_ff2"],
            params["small"])

    # advisory cost estimate for XLA scheduling around the fused custom call
    flops = (2 * M * S * D
             + L * (2 * M * D * 3 * D        # fused QKV
                    + 4 * M * M * D          # scores + context
                    + 2 * M * D * D          # out projection
                    + 4 * M * D * FF)        # FFN
             + 2 * B * M * D)                # pooling
    transcendentals = L * (nhead * (M * M + M) + 2 * M)
    bytes_accessed = (sum(a.size * a.dtype.itemsize for a in args)
                      + B * D * x_multi.dtype.itemsize)

    kernel = functools.partial(_fused_forward_kernel, B=B, T=T, d_model=D,
                               nhead=nhead, num_layers=L, ffn_bf16=ffn_bf16)

    # No grid / BlockSpecs: single invocation, whole operands resident in VMEM
    # (nothing to pipeline, so nothing gets needlessly double-buffered).
    return pl.pallas_call(
        kernel,
        out_shape=jax.ShapeDtypeStruct((B, D), x_multi.dtype),
        compiler_params=pltpu.CompilerParams(
            vmem_limit_bytes=32 * 1024 * 1024),
        cost_estimate=pl.CostEstimate(flops=int(flops),
                                      transcendentals=int(transcendentals),
                                      bytes_accessed=int(bytes_accessed)),
    )(*args)


def forward(params, x_multi, *, nhead, ffn_bf16=None):
    """Equivalent of FaultTolerantTransformerActorCritic.forward (eval mode)."""
    if ffn_bf16 is None:
        ffn_bf16 = _default_ffn_bf16()
    return _forward_jit(params, x_multi, nhead=nhead, ffn_bf16=bool(ffn_bf16))


# ------------------------------ parameters -----------------------------------

def init_params(key, state_dim, d_model, nhead, num_layers, dim_ff, action_dim):
    D = d_model

    def uniform(k, shape, fan_in, dtype):
        bound = 1.0 / math.sqrt(fan_in)
        return jax.random.uniform(k, shape, jnp.float32, -bound, bound).astype(dtype)

    keys = jax.random.split(key, 3 + num_layers)
    k_emb, k_actor, k_critic = keys[0], keys[1], keys[2]
    k_layers = keys[3:]

    ke1, ke2 = jax.random.split(k_emb)
    w_emb = uniform(ke1, (state_dim, D), state_dim, jnp.bfloat16)
    b_emb = uniform(ke2, (1, D), state_dim, jnp.float32)

    def pad3(v):  # (1, D) -> (1, 3D), zero padded
        return jnp.pad(v, ((0, 0), (0, 2 * D)))

    w_in_l, wo_l, w_ff1_l, b_ff1_l, w_ff2_l, small_l = [], [], [], [], [], []
    for kl in k_layers:
        ks = jax.random.split(kl, 8)
        w_in = uniform(ks[0], (D, 3 * D), D, jnp.bfloat16)   # fused q|k|v in_proj
        b_in = uniform(ks[1], (1, 3 * D), D, jnp.float32)
        wo = uniform(ks[2], (D, D), D, jnp.bfloat16)         # out_proj
        bo = uniform(ks[3], (1, D), D, jnp.float32)
        w_ff1 = uniform(ks[4], (D, dim_ff), D, jnp.bfloat16)
        b_ff1 = uniform(ks[5], (1, dim_ff), D, jnp.float32)
        w_ff2 = uniform(ks[6], (dim_ff, D), dim_ff, jnp.bfloat16)
        b_ff2 = uniform(ks[7], (1, D), dim_ff, jnp.float32)
        ln1_g = jnp.ones((1, D), jnp.float32)
        ln1_b = jnp.zeros((1, D), jnp.float32)
        ln2_g = jnp.ones((1, D), jnp.float32)
        ln2_b = jnp.zeros((1, D), jnp.float32)

        # pack all tiny per-layer params into one (7, 3D) operand
        small = jnp.concatenate(
            [b_in, pad3(bo), pad3(ln1_g), pad3(ln1_b), pad3(b_ff2),
             pad3(ln2_g), pad3(ln2_b)], axis=0)

        w_in_l.append(w_in); wo_l.append(wo)
        w_ff1_l.append(w_ff1); b_ff1_l.append(b_ff1)
        w_ff2_l.append(w_ff2); small_l.append(small)

    params = dict(
        w_emb=w_emb, b_emb=b_emb,
        w_in=jnp.stack(w_in_l),      # (L, D, 3D)
        wo=jnp.stack(wo_l),          # (L, D, D)
        w_ff1=jnp.stack(w_ff1_l),    # (L, D, FF)
        b_ff1=jnp.stack(b_ff1_l),    # (L, 1, FF)
        w_ff2=jnp.stack(w_ff2_l),    # (L, FF, D)
        small=jnp.stack(small_l),    # (L, 7, 3D)
    )

    # actor / critic heads exist in __init__ but forward() does not use them
    ka1, ka2 = jax.random.split(k_actor)
    kc1, kc2 = jax.random.split(k_critic)
    params.update(
        w_actor=uniform(ka1, (D, action_dim), D, jnp.float32),
        b_actor=uniform(ka2, (1, action_dim), D, jnp.float32),
        w_critic=uniform(kc1, (D, 1), D, jnp.float32),
        b_critic=uniform(kc2, (1, 1), D, jnp.float32),
    )
    return params


# --------------------------------- main ---------------------------------------

if __name__ == "__main__":
    # small, module-consistent shapes
    B, T, state_dim = 2, 8, 16
    d_model, nhead, num_layers, action_dim = 32, 4, 2, 4
    dim_ff = 2048  # nn.TransformerEncoderLayer default dim_feedforward

    key = jax.random.PRNGKey(0)
    pkey, xkey = jax.random.split(key)
    params = init_params(pkey, state_dim, d_model, nhead, num_layers,
                         dim_ff, action_dim)
    x_multi = jax.random.normal(xkey, (B, T, state_dim), jnp.float32)

    out = forward(params, x_multi, nhead=nhead)      # (B, d_model) pooled features
    out = jax.block_until_ready(out)

    assert out.shape == (B, d_model)
    assert bool(jnp.all(jnp.isfinite(out)))
    print("KERNEL_OK")
</pallas_src>

<mosaic_0001>
module attributes {stable_mosaic.version = 11 : i64} {
  func.func @_fused_forward_kernel(%arg0: memref<16x16xf32, #tpu.memory_space<vmem>>, %arg1: memref<16x32xbf16, #tpu.memory_space<vmem>>, %arg2: memref<1x32xf32, #tpu.memory_space<vmem>>, %arg3: memref<2x32x96xbf16, #tpu.memory_space<vmem>>, %arg4: memref<2x32x32xbf16, #tpu.memory_space<vmem>>, %arg5: memref<2x32x2048xbf16, #tpu.memory_space<vmem>>, %arg6: memref<2x1x2048xf32, #tpu.memory_space<vmem>>, %arg7: memref<2x2048x32xbf16, #tpu.memory_space<vmem>>, %arg8: memref<2x7x96xf32, #tpu.memory_space<vmem>>, %arg9: memref<2x32xf32, #tpu.memory_space<vmem>>) attributes {dimension_semantics = [], scalar_prefetch = 0 : i64, scratch_operands = 0 : i64, tpu.core_type = #tpu.core_type<tc>} {
    %0 = tpu.iota {dimensions = array<i32: 0>} : vector<16x16xi32>
    %1 = tpu.iota {dimensions = array<i32: 1>} : vector<16x16xi32>
    %c0_i32 = arith.constant 0 : i32
    %2 = vector.broadcast %c0_i32 : i32 to vector<16x16xi32>
    %3 = arith.cmpi sge, %0, %2 : vector<16x16xi32>
    %c8_i32 = arith.constant 8 : i32
    %4 = vector.broadcast %c8_i32 : i32 to vector<16x16xi32>
    %5 = arith.cmpi slt, %0, %4 : vector<16x16xi32>
    %6 = arith.andi %3, %5 : vector<16x16xi1>
    %c0_i32_0 = arith.constant 0 : i32
    %7 = vector.broadcast %c0_i32_0 : i32 to vector<16x16xi32>
    %8 = arith.cmpi sge, %1, %7 : vector<16x16xi32>
    %9 = arith.andi %6, %8 : vector<16x16xi1>
    %c8_i32_1 = arith.constant 8 : i32
    %10 = vector.broadcast %c8_i32_1 : i32 to vector<16x16xi32>
    %11 = arith.cmpi slt, %1, %10 : vector<16x16xi32>
    %12 = arith.andi %9, %11 : vector<16x16xi1>
    %c8_i32_2 = arith.constant 8 : i32
    %13 = vector.broadcast %c8_i32_2 : i32 to vector<16x16xi32>
    %14 = arith.cmpi sge, %0, %13 : vector<16x16xi32>
    %c16_i32 = arith.constant 16 : i32
    %15 = vector.broadcast %c16_i32 : i32 to vector<16x16xi32>
    %16 = arith.cmpi slt, %0, %15 : vector<16x16xi32>
    %17 = arith.andi %14, %16 : vector<16x16xi1>
    %c8_i32_3 = arith.constant 8 : i32
    %18 = vector.broadcast %c8_i32_3 : i32 to vector<16x16xi32>
    %19 = arith.cmpi sge, %1, %18 : vector<16x16xi32>
    %20 = arith.andi %17, %19 : vector<16x16xi1>
    %c16_i32_4 = arith.constant 16 : i32
    %21 = vector.broadcast %c16_i32_4 : i32 to vector<16x16xi32>
    %22 = arith.cmpi slt, %1, %21 : vector<16x16xi32>
    %23 = arith.andi %20, %22 : vector<16x16xi1>
    %24 = arith.ori %12, %23 : vector<16x16xi1>
    %cst = arith.constant 0.000000e+00 : f32
    %cst_5 = arith.constant -1.000000e+30 : f32
    %25 = vector.broadcast %cst : f32 to vector<16x16xf32>
    %26 = vector.broadcast %cst_5 : f32 to vector<16x16xf32>
    %27 = arith.select %24, %25, %26 : vector<16x16xi1>, vector<16x16xf32>
    %28 = tpu.iota {dimensions = array<i32: 0>} : vector<2x16xi32>
    %29 = tpu.iota {dimensions = array<i32: 1>} : vector<2x16xi32>
    %c8_i32_6 = arith.constant 8 : i32
    %30 = vector.broadcast %c8_i32_6 : i32 to vector<2x16xi32>
    %31 = arith.muli %28, %30 : vector<2x16xi32>
    %32 = arith.cmpi sge, %29, %31 : vector<2x16xi32>
    %c8_i32_7 = arith.constant 8 : i32
    %33 = vector.broadcast %c8_i32_7 : i32 to vector<2x16xi32>
    %34 = arith.muli %28, %33 : vector<2x16xi32>
    %c8_i32_8 = arith.constant 8 : i32
    %35 = vector.broadcast %c8_i32_8 : i32 to vector<2x16xi32>
    %36 = arith.addi %34, %35 : vector<2x16xi32>
    %37 = arith.cmpi slt, %29, %36 : vector<2x16xi32>
    %38 = arith.andi %32, %37 : vector<2x16xi1>
    %cst_9 = arith.constant 1.250000e-01 : f32
    %cst_10 = arith.constant 0.000000e+00 : f32
    %39 = vector.broadcast %cst_9 : f32 to vector<2x16xf32>
    %40 = vector.broadcast %cst_10 : f32 to vector<2x16xf32>
    %41 = arith.select %38, %39, %40 : vector<2x16xi1>, vector<2x16xf32>
    %c0 = arith.constant 0 : index
    %c0_11 = arith.constant 0 : index
    %42 = vector.load %arg0[%c0, %c0_11] : memref<16x16xf32, #tpu.memory_space<vmem>>, vector<16x16xf32>
    %43 = arith.truncf %42 : vector<16x16xf32> to vector<16x16xbf16>
    %c0_12 = arith.constant 0 : index
    %c0_13 = arith.constant 0 : index
    %44 = vector.load %arg1[%c0_12, %c0_13] : memref<16x32xbf16, #tpu.memory_space<vmem>>, vector<16x32xbf16>
    %cst_14 = arith.constant dense<0.000000e+00> : vector<16x32xf32>
    %45 = tpu.matmul %43, %44, %cst_14 {dimension_numbers = #tpu.dot_dimension_numbers<[1], [0], [0], [1], [0, 0, 1, 1], [], []>} : vector<16x16xbf16>, vector<16x32xbf16>, vector<16x32xf32> -> vector<16x32xf32>
    %c0_15 = arith.constant 0 : index
    %c0_16 = arith.constant 0 : index
    %46 = vector.load %arg2[%c0_15, %c0_16] : memref<1x32xf32, #tpu.memory_space<vmem>>, vector<1x32xf32>
    %47 = vector.broadcast %46 : vector<1x32xf32> to vector<16x32xf32>
    %48 = arith.addf %45, %47 : vector<16x32xf32>
    %c0_17 = arith.constant 0 : index
    %c0_18 = arith.constant 0 : index
    %c0_19 = arith.constant 0 : index
    %49 = vector.load %arg8[%c0_17, %c0_18, %c0_19] : memref<2x7x96xf32, #tpu.memory_space<vmem>>, vector<1x7x96xf32>
    %50 = vector.shape_cast %49 : vector<1x7x96xf32> to vector<7x96xf32>
    %51 = vector.extract_strided_slice %50 {offsets = [0, 0], sizes = [1, 96], strides = [1, 1]} : vector<7x96xf32> to vector<1x96xf32>
    %52 = vector.extract_strided_slice %50 {offsets = [1, 0], sizes = [1, 32], strides = [1, 1]} : vector<7x96xf32> to vector<1x32xf32>
    %53 = vector.extract_strided_slice %50 {offsets = [2, 0], sizes = [1, 32], strides = [1, 1]} : vector<7x96xf32> to vector<1x32xf32>
    %54 = vector.extract_strided_slice %50 {offsets = [3, 0], sizes = [1, 32], strides = [1, 1]} : vector<7x96xf32> to vector<1x32xf32>
    %55 = vector.extract_strided_slice %50 {offsets = [4, 0], sizes = [1, 32], strides = [1, 1]} : vector<7x96xf32> to vector<1x32xf32>
    %56 = vector.extract_strided_slice %50 {offsets = [5, 0], sizes = [1, 32], strides = [1, 1]} : vector<7x96xf32> to vector<1x32xf32>
    %57 = vector.extract_strided_slice %50 {offsets = [6, 0], sizes = [1, 32], strides = [1, 1]} : vector<7x96xf32> to vector<1x32xf32>
    %58 = arith.truncf %48 : vector<16x32xf32> to vector<16x32xbf16>
    %c0_20 = arith.constant 0 : index
    %c0_21 = arith.constant 0 : index
    %c0_22 = arith.constant 0 : index
    %59 = vector.load %arg3[%c0_20, %c0_21, %c0_22] : memref<2x32x96xbf16, #tpu.memory_space<vmem>>, vector<1x32x96xbf16>
    %60 = vector.shape_cast %59 : vector<1x32x96xbf16> to vector<32x96xbf16>
    %cst_23 = arith.constant dense<0.000000e+00> : vector<16x96xf32>
    %61 = tpu.matmul %58, %60, %cst_23 {dimension_numbers = #tpu.dot_dimension_numbers<[1], [0], [0], [1], [0, 0, 1, 1], [], []>} : vector<16x32xbf16>, vector<32x96xbf16>, vector<16x96xf32> -> vector<16x96xf32>
    %62 = vector.broadcast %51 : vector<1x96xf32> to vector<16x96xf32>
    %63 = arith.addf %61, %62 : vector<16x96xf32>
    %64 = vector.extract_strided_slice %63 {offsets = [0, 0], sizes = [16, 8], strides = [1, 1]} : vector<16x96xf32> to vector<16x8xf32>
    %65 = vector.extract_strided_slice %63 {offsets = [0, 32], sizes = [16, 8], strides = [1, 1]} : vector<16x96xf32> to vector<16x8xf32>
    %66 = vector.extract_strided_slice %63 {offsets = [0, 64], sizes = [16, 8], strides = [1, 1]} : vector<16x96xf32> to vector<16x8xf32>
    %67 = tpu.transpose %65, [1, 0] : vector<16x8xf32> -> vector<8x16xf32>
    %cst_24 = arith.constant dense<0.000000e+00> : vector<16x16xf32>
    %68 = tpu.matmul %64, %67, %cst_24 {dimension_numbers = #tpu.dot_dimension_numbers<[1], [0], [0], [1], [0, 0, 1, 1], [], []>} : vector<16x8xf32>, vector<8x16xf32>, vector<16x16xf32> -> vector<16x16xf32>
    %cst_25 = arith.constant 0.353553385 : f32
    %69 = vector.broadcast %cst_25 : f32 to vector<16x16xf32>
    %70 = arith.mulf %68, %69 : vector<16x16xf32>
    %71 = arith.addf %70, %27 : vector<16x16xf32>
    %cst_26 = arith.constant dense<0xFF800000> : vector<16xf32>
    %72 = vector.multi_reduction <maximumf>, %71, %cst_26 [1] : vector<16x16xf32> to vector<16xf32>
    %73 = vector.shape_cast %72 : vector<16xf32> to vector<16x1xf32>
    %74 = vector.broadcast %73 : vector<16x1xf32> to vector<16x16xf32>
    %75 = arith.subf %71, %74 : vector<16x16xf32>
    %76 = math.exp %75 : vector<16x16xf32>
    %cst_27 = arith.constant dense<0.000000e+00> : vector<16xf32>
    %77 = vector.multi_reduction <add>, %76, %cst_27 [1] : vector<16x16xf32> to vector<16xf32>
    %78 = vector.shape_cast %77 : vector<16xf32> to vector<16x1xf32>
    %79 = tpu.reciprocal %78 {approx = true} : vector<16x1xf32> -> vector<16x1xf32>
    %80 = vector.broadcast %79 : vector<16x1xf32> to vector<16x16xf32>
    %81 = arith.mulf %76, %80 : vector<16x16xf32>
    %cst_28 = arith.constant dense<0.000000e+00> : vector<16x8xf32>
    %82 = tpu.matmul %81, %66, %cst_28 {dimension_numbers = #tpu.dot_dimension_numbers<[1], [0], [0], [1], [0, 0, 1, 1], [], []>} : vector<16x16xf32>, vector<16x8xf32>, vector<16x8xf32> -> vector<16x8xf32>
    %83 = vector.extract_strided_slice %63 {offsets = [0, 8], sizes = [16, 8], strides = [1, 1]} : vector<16x96xf32> to vector<16x8xf32>
    %84 = vector.extract_strided_slice %63 {offsets = [0, 40], sizes = [16, 8], strides = [1, 1]} : vector<16x96xf32> to vector<16x8xf32>
    %85 = vector.extract_strided_slice %63 {offsets = [0, 72], sizes = [16, 8], strides = [1, 1]} : vector<16x96xf32> to vector<16x8xf32>
    %86 = tpu.transpose %84, [1, 0] : vector<16x8xf32> -> vector<8x16xf32>
    %cst_29 = arith.constant dense<0.000000e+00> : vector<16x16xf32>
    %87 = tpu.matmul %83, %86, %cst_29 {dimension_numbers = #tpu.dot_dimension_numbers<[1], [0], [0], [1], [0, 0, 1, 1], [], []>} : vector<16x8xf32>, vector<8x16xf32>, vector<16x16xf32> -> vector<16x16xf32>
    %cst_30 = arith.constant 0.353553385 : f32
    %88 = vector.broadcast %cst_30 : f32 to vector<16x16xf32>
    %89 = arith.mulf %87, %88 : vector<16x16xf32>
    %90 = arith.addf %89, %27 : vector<16x16xf32>
    %cst_31 = arith.constant dense<0xFF800000> : vector<16xf32>
    %91 = vector.multi_reduction <maximumf>, %90, %cst_31 [1] : vector<16x16xf32> to vector<16xf32>
    %92 = vector.shape_cast %91 : vector<16xf32> to vector<16x1xf32>
    %93 = vector.broadcast %92 : vector<16x1xf32> to vector<16x16xf32>
    %94 = arith.subf %90, %93 : vector<16x16xf32>
    %95 = math.exp %94 : vector<16x16xf32>
    %cst_32 = arith.constant dense<0.000000e+00> : vector<16xf32>
    %96 = vector.multi_reduction <add>, %95, %cst_32 [1] : vector<16x16xf32> to vector<16xf32>
    %97 = vector.shape_cast %96 : vector<16xf32> to vector<16x1xf32>
    %98 = tpu.reciprocal %97 {approx = true} : vector<16x1xf32> -> vector<16x1xf32>
    %99 = vector.broadcast %98 : vector<16x1xf32> to vector<16x16xf32>
    %100 = arith.mulf %95, %99 : vector<16x16xf32>
    %cst_33 = arith.constant dense<0.000000e+00> : vector<16x8xf32>
    %101 = tpu.matmul %100, %85, %cst_33 {dimension_numbers = #tpu.dot_dimension_numbers<[1], [0], [0], [1], [0, 0, 1, 1], [], []>} : vector<16x16xf32>, vector<16x8xf32>, vector<16x8xf32> -> vector<16x8xf32>
    %102 = vector.extract_strided_slice %63 {offsets = [0, 16], sizes = [16, 8], strides = [1, 1]} : vector<16x96xf32> to vector<16x8xf32>
    %103 = vector.extract_strided_slice %63 {offsets = [0, 48], sizes = [16, 8], strides = [1, 1]} : vector<16x96xf32> to vector<16x8xf32>
    %104 = vector.extract_strided_slice %63 {offsets = [0, 80], sizes = [16, 8], strides = [1, 1]} : vector<16x96xf32> to vector<16x8xf32>
    %105 = tpu.transpose %103, [1, 0] : vector<16x8xf32> -> vector<8x16xf32>
    %cst_34 = arith.constant dense<0.000000e+00> : vector<16x16xf32>
    %106 = tpu.matmul %102, %105, %cst_34 {dimension_numbers = #tpu.dot_dimension_numbers<[1], [0], [0], [1], [0, 0, 1, 1], [], []>} : vector<16x8xf32>, vector<8x16xf32>, vector<16x16xf32> -> vector<16x16xf32>
    %cst_35 = arith.constant 0.353553385 : f32
    %107 = vector.broadcast %cst_35 : f32 to vector<16x16xf32>
    %108 = arith.mulf %106, %107 : vector<16x16xf32>
    %109 = arith.addf %108, %27 : vector<16x16xf32>
    %cst_36 = arith.constant dense<0xFF800000> : vector<16xf32>
    %110 = vector.multi_reduction <maximumf>, %109, %cst_36 [1] : vector<16x16xf32> to vector<16xf32>
    %111 = vector.shape_cast %110 : vector<16xf32> to vector<16x1xf32>
    %112 = vector.broadcast %111 : vector<16x1xf32> to vector<16x16xf32>
    %113 = arith.subf %109, %112 : vector<16x16xf32>
    %114 = math.exp %113 : vector<16x16xf32>
    %cst_37 = arith.constant dense<0.000000e+00> : vector<16xf32>
    %115 = vector.multi_reduction <add>, %114, %cst_37 [1] : vector<16x16xf32> to vector<16xf32>
    %116 = vector.shape_cast %115 : vector<16xf32> to vector<16x1xf32>
    %117 = tpu.reciprocal %116 {approx = true} : vector<16x1xf32> -> vector<16x1xf32>
    %118 = vector.broadcast %117 : vector<16x1xf32> to vector<16x16xf32>
    %119 = arith.mulf %114, %118 : vector<16x16xf32>
    %cst_38 = arith.constant dense<0.000000e+00> : vector<16x8xf32>
    %120 = tpu.matmul %119, %104, %cst_38 {dimension_numbers = #tpu.dot_dimension_numbers<[1], [0], [0], [1], [0, 0, 1, 1], [], []>} : vector<16x16xf32>, vector<16x8xf32>, vector<16x8xf32> -> vector<16x8xf32>
    %121 = vector.extract_strided_slice %63 {offsets = [0, 24], sizes = [16, 8], strides = [1, 1]} : vector<16x96xf32> to vector<16x8xf32>
    %122 = vector.extract_strided_slice %63 {offsets = [0, 56], sizes = [16, 8], strides = [1, 1]} : vector<16x96xf32> to vector<16x8xf32>
    %123 = vector.extract_strided_slice %63 {offsets = [0, 88], sizes = [16, 8], strides = [1, 1]} : vector<16x96xf32> to vector<16x8xf32>
    %124 = tpu.transpose %122, [1, 0] : vector<16x8xf32> -> vector<8x16xf32>
    %cst_39 = arith.constant dense<0.000000e+00> : vector<16x16xf32>
    %125 = tpu.matmul %121, %124, %cst_39 {dimension_numbers = #tpu.dot_dimension_numbers<[1], [0], [0], [1], [0, 0, 1, 1], [], []>} : vector<16x8xf32>, vector<8x16xf32>, vector<16x16xf32> -> vector<16x16xf32>
    %cst_40 = arith.constant 0.353553385 : f32
    %126 = vector.broadcast %cst_40 : f32 to vector<16x16xf32>
    %127 = arith.mulf %125, %126 : vector<16x16xf32>
    %128 = arith.addf %127, %27 : vector<16x16xf32>
    %cst_41 = arith.constant dense<0xFF800000> : vector<16xf32>
    %129 = vector.multi_reduction <maximumf>, %128, %cst_41 [1] : vector<16x16xf32> to vector<16xf32>
    %130 = vector.shape_cast %129 : vector<16xf32> to vector<16x1xf32>
    %131 = vector.broadcast %130 : vector<16x1xf32> to vector<16x16xf32>
    %132 = arith.subf %128, %131 : vector<16x16xf32>
    %133 = math.exp %132 : vector<16x16xf32>
    %cst_42 = arith.constant dense<0.000000e+00> : vector<16xf32>
    %134 = vector.multi_reduction <add>, %133, %cst_42 [1] : vector<16x16xf32> to vector<16xf32>
    %135 = vector.shape_cast %134 : vector<16xf32> to vector<16x1xf32>
    %136 = tpu.reciprocal %135 {approx = true} : vector<16x1xf32> -> vector<16x1xf32>
    %137 = vector.broadcast %136 : vector<16x1xf32> to vector<16x16xf32>
    %138 = arith.mulf %133, %137 : vector<16x16xf32>
    %cst_43 = arith.constant dense<0.000000e+00> : vector<16x8xf32>
    %139 = tpu.matmul %138, %123, %cst_43 {dimension_numbers = #tpu.dot_dimension_numbers<[1], [0], [0], [1], [0, 0, 1, 1], [], []>} : vector<16x16xf32>, vector<16x8xf32>, vector<16x8xf32> -> vector<16x8xf32>
    %140 = tpu.concatenate %82, %101, %120, %139 in 1 : vector<16x8xf32>, vector<16x8xf32>, vector<16x8xf32>, vector<16x8xf32> -> vector<16x32xf32>
    %141 = arith.truncf %140 : vector<16x32xf32> to vector<16x32xbf16>
    %c0_44 = arith.constant 0 : index
    %c0_45 = arith.constant 0 : index
    %c0_46 = arith.constant 0 : index
    %142 = vector.load %arg4[%c0_44, %c0_45, %c0_46] : memref<2x32x32xbf16, #tpu.memory_space<vmem>>, vector<1x32x32xbf16>
    %143 = vector.shape_cast %142 : vector<1x32x32xbf16> to vector<32x32xbf16>
    %cst_47 = arith.constant dense<0.000000e+00> : vector<16x32xf32>
    %144 = tpu.matmul %141, %143, %cst_47 {dimension_numbers = #tpu.dot_dimension_numbers<[1], [0], [0], [1], [0, 0, 1, 1], [], []>} : vector<16x32xbf16>, vector<32x32xbf16>, vector<16x32xf32> -> vector<16x32xf32>
    %145 = vector.broadcast %52 : vector<1x32xf32> to vector<16x32xf32>
    %146 = arith.addf %144, %145 : vector<16x32xf32>
    %147 = arith.addf %146, %48 : vector<16x32xf32>
    %cst_48 = arith.constant dense<0.000000e+00> : vector<16xf32>
    %148 = vector.multi_reduction <add>, %147, %cst_48 [1] : vector<16x32xf32> to vector<16xf32>
    %149 = vector.shape_cast %148 : vector<16xf32> to vector<16x1xf32>
    %cst_49 = arith.constant 3.200000e+01 : f32
    %150 = vector.broadcast %cst_49 : f32 to vector<16x1xf32>
    %151 = arith.divf %149, %150 : vector<16x1xf32>
    %152 = vector.broadcast %151 : vector<16x1xf32> to vector<16x32xf32>
    %153 = arith.subf %147, %152 : vector<16x32xf32>
    %154 = arith.mulf %153, %153 : vector<16x32xf32>
    %cst_50 = arith.constant dense<0.000000e+00> : vector<16xf32>
    %155 = vector.multi_reduction <add>, %154, %cst_50 [1] : vector<16x32xf32> to vector<16xf32>
    %156 = vector.shape_cast %155 : vector<16xf32> to vector<16x1xf32>
    %cst_51 = arith.constant 3.200000e+01 : f32
    %157 = vector.broadcast %cst_51 : f32 to vector<16x1xf32>
    %158 = arith.divf %156, %157 : vector<16x1xf32>
    %159 = vector.broadcast %151 : vector<16x1xf32> to vector<16x32xf32>
    %160 = arith.subf %147, %159 : vector<16x32xf32>
    %cst_52 = arith.constant 9.99999974E-6 : f32
    %161 = vector.broadcast %cst_52 : f32 to vector<16x1xf32>
    %162 = arith.addf %158, %161 : vector<16x1xf32>
    %163 = math.rsqrt %162 : vector<16x1xf32>
    %164 = vector.broadcast %163 : vector<16x1xf32> to vector<16x32xf32>
    %165 = arith.mulf %160, %164 : vector<16x32xf32>
    %166 = vector.broadcast %53 : vector<1x32xf32> to vector<16x32xf32>
    %167 = arith.mulf %165, %166 : vector<16x32xf32>
    %168 = vector.broadcast %54 : vector<1x32xf32> to vector<16x32xf32>
    %169 = arith.addf %167, %168 : vector<16x32xf32>
    %170 = arith.truncf %169 : vector<16x32xf32> to vector<16x32xbf16>
    %c0_53 = arith.constant 0 : index
    %c0_54 = arith.constant 0 : index
    %c0_55 = arith.constant 0 : index
    %171 = vector.load %arg5[%c0_53, %c0_54, %c0_55] : memref<2x32x2048xbf16, #tpu.memory_space<vmem>>, vector<1x32x2048xbf16>
    %172 = vector.shape_cast %171 : vector<1x32x2048xbf16> to vector<32x2048xbf16>
    %cst_56 = arith.constant dense<0.000000e+00> : vector<16x2048xf32>
    %173 = tpu.matmul %170, %172, %cst_56 {dimension_numbers = #tpu.dot_dimension_numbers<[1], [0], [0], [1], [0, 0, 1, 1], [], []>} : vector<16x32xbf16>, vector<32x2048xbf16>, vector<16x2048xf32> -> vector<16x2048xf32>
    %174 = arith.truncf %173 : vector<16x2048xf32> to vector<16x2048xbf16>
    %c0_57 = arith.constant 0 : index
    %c0_58 = arith.constant 0 : index
    %c0_59 = arith.constant 0 : index
    %175 = vector.load %arg6[%c0_57, %c0_58, %c0_59] : memref<2x1x2048xf32, #tpu.memory_space<vmem>>, vector<1x1x2048xf32>
    %176 = vector.shape_cast %175 : vector<1x1x2048xf32> to vector<1x2048xf32>
    %177 = arith.truncf %176 : vector<1x2048xf32> to vector<1x2048xbf16>
    %178 = vector.broadcast %177 : vector<1x2048xbf16> to vector<16x2048xbf16>
    %179 = arith.addf %174, %178 : vector<16x2048xbf16>
    %cst_60 = arith.constant 0.000000e+00 : bf16
    %180 = vector.broadcast %cst_60 : bf16 to vector<16x2048xbf16>
    %181 = arith.maximumf %179, %180 : vector<16x2048xbf16>
    %c0_61 = arith.constant 0 : index
    %c0_62 = arith.constant 0 : index
    %c0_63 = arith.constant 0 : index
    %182 = vector.load %arg7[%c0_61, %c0_62, %c0_63] : memref<2x2048x32xbf16, #tpu.memory_space<vmem>>, vector<1x2048x32xbf16>
    %183 = vector.shape_cast %182 : vector<1x2048x32xbf16> to vector<2048x32xbf16>
    %cst_64 = arith.constant dense<0.000000e+00> : vector<16x32xf32>
    %184 = tpu.matmul %181, %183, %cst_64 {dimension_numbers = #tpu.dot_dimension_numbers<[1], [0], [0], [1], [0, 0, 1, 1], [], []>} : vector<16x2048xbf16>, vector<2048x32xbf16>, vector<16x32xf32> -> vector<16x32xf32>
    %185 = vector.broadcast %55 : vector<1x32xf32> to vector<16x32xf32>
    %186 = arith.addf %184, %185 : vector<16x32xf32>
    %187 = arith.addf %186, %169 : vector<16x32xf32>
    %cst_65 = arith.constant dense<0.000000e+00> : vector<16xf32>
    %188 = vector.multi_reduction <add>, %187, %cst_65 [1] : vector<16x32xf32> to vector<16xf32>
    %189 = vector.shape_cast %188 : vector<16xf32> to vector<16x1xf32>
    %cst_66 = arith.constant 3.200000e+01 : f32
    %190 = vector.broadcast %cst_66 : f32 to vector<16x1xf32>
    %191 = arith.divf %189, %190 : vector<16x1xf32>
    %192 = vector.broadcast %191 : vector<16x1xf32> to vector<16x32xf32>
    %193 = arith.subf %187, %192 : vector<16x32xf32>
    %194 = arith.mulf %193, %193 : vector<16x32xf32>
    %cst_67 = arith.constant dense<0.000000e+00> : vector<16xf32>
    %195 = vector.multi_reduction <add>, %194, %cst_67 [1] : vector<16x32xf32> to vector<16xf32>
    %196 = vector.shape_cast %195 : vector<16xf32> to vector<16x1xf32>
    %cst_68 = arith.constant 3.200000e+01 : f32
    %197 = vector.broadcast %cst_68 : f32 to vector<16x1xf32>
    %198 = arith.divf %196, %197 : vector<16x1xf32>
    %199 = vector.broadcast %191 : vector<16x1xf32> to vector<16x32xf32>
    %200 = arith.subf %187, %199 : vector<16x32xf32>
    %cst_69 = arith.constant 9.99999974E-6 : f32
    %201 = vector.broadcast %cst_69 : f32 to vector<16x1xf32>
    %202 = arith.addf %198, %201 : vector<16x1xf32>
    %203 = math.rsqrt %202 : vector<16x1xf32>
    %204 = vector.broadcast %203 : vector<16x1xf32> to vector<16x32xf32>
    %205 = arith.mulf %200, %204 : vector<16x32xf32>
    %206 = vector.broadcast %56 : vector<1x32xf32> to vector<16x32xf32>
    %207 = arith.mulf %205, %206 : vector<16x32xf32>
    %208 = vector.broadcast %57 : vector<1x32xf32> to vector<16x32xf32>
    %209 = arith.addf %207, %208 : vector<16x32xf32>
    %c1 = arith.constant 1 : index
    %c0_70 = arith.constant 0 : index
    %c0_71 = arith.constant 0 : index
    %210 = vector.load %arg8[%c1, %c0_70, %c0_71] : memref<2x7x96xf32, #tpu.memory_space<vmem>>, vector<1x7x96xf32>
    %211 = vector.shape_cast %210 : vector<1x7x96xf32> to vector<7x96xf32>
    %212 = vector.extract_strided_slice %211 {offsets = [0, 0], sizes = [1, 96], strides = [1, 1]} : vector<7x96xf32> to vector<1x96xf32>
    %213 = vector.extract_strided_slice %211 {offsets = [1, 0], sizes = [1, 32], strides = [1, 1]} : vector<7x96xf32> to vector<1x32xf32>
    %214 = vector.extract_strided_slice %211 {offsets = [2, 0], sizes = [1, 32], strides = [1, 1]} : vector<7x96xf32> to vector<1x32xf32>
    %215 = vector.extract_strided_slice %211 {offsets = [3, 0], sizes = [1, 32], strides = [1, 1]} : vector<7x96xf32> to vector<1x32xf32>
    %216 = vector.extract_strided_slice %211 {offsets = [4, 0], sizes = [1, 32], strides = [1, 1]} : vector<7x96xf32> to vector<1x32xf32>
    %217 = vector.extract_strided_slice %211 {offsets = [5, 0], sizes = [1, 32], strides = [1, 1]} : vector<7x96xf32> to vector<1x32xf32>
    %218 = vector.extract_strided_slice %211 {offsets = [6, 0], sizes = [1, 32], strides = [1, 1]} : vector<7x96xf32> to vector<1x32xf32>
    %219 = arith.truncf %209 : vector<16x32xf32> to vector<16x32xbf16>
    %c1_72 = arith.constant 1 : index
    %c0_73 = arith.constant 0 : index
    %c0_74 = arith.constant 0 : index
    %220 = vector.load %arg3[%c1_72, %c0_73, %c0_74] : memref<2x32x96xbf16, #tpu.memory_space<vmem>>, vector<1x32x96xbf16>
    %221 = vector.shape_cast %220 : vector<1x32x96xbf16> to vector<32x96xbf16>
    %cst_75 = arith.constant dense<0.000000e+00> : vector<16x96xf32>
    %222 = tpu.matmul %219, %221, %cst_75 {dimension_numbers = #tpu.dot_dimension_numbers<[1], [0], [0], [1], [0, 0, 1, 1], [], []>} : vector<16x32xbf16>, vector<32x96xbf16>, vector<16x96xf32> -> vector<16x96xf32>
    %223 = vector.broadcast %212 : vector<1x96xf32> to vector<16x96xf32>
    %224 = arith.addf %222, %223 : vector<16x96xf32>
    %225 = vector.extract_strided_slice %224 {offsets = [0, 0], sizes = [16, 8], strides = [1, 1]} : vector<16x96xf32> to vector<16x8xf32>
    %226 = vector.extract_strided_slice %224 {offsets = [0, 32], sizes = [16, 8], strides = [1, 1]} : vector<16x96xf32> to vector<16x8xf32>
    %227 = vector.extract_strided_slice %224 {offsets = [0, 64], sizes = [16, 8], strides = [1, 1]} : vector<16x96xf32> to vector<16x8xf32>
    %228 = tpu.transpose %226, [1, 0] : vector<16x8xf32> -> vector<8x16xf32>
    %cst_76 = arith.constant dense<0.000000e+00> : vector<16x16xf32>
    %229 = tpu.matmul %225, %228, %cst_76 {dimension_numbers = #tpu.dot_dimension_numbers<[1], [0], [0], [1], [0, 0, 1, 1], [], []>} : vector<16x8xf32>, vector<8x16xf32>, vector<16x16xf32> -> vector<16x16xf32>
    %cst_77 = arith.constant 0.353553385 : f32
    %230 = vector.broadcast %cst_77 : f32 to vector<16x16xf32>
    %231 = arith.mulf %229, %230 : vector<16x16xf32>
    %232 = arith.addf %231, %27 : vector<16x16xf32>
    %cst_78 = arith.constant dense<0xFF800000> : vector<16xf32>
    %233 = vector.multi_reduction <maximumf>, %232, %cst_78 [1] : vector<16x16xf32> to vector<16xf32>
    %234 = vector.shape_cast %233 : vector<16xf32> to vector<16x1xf32>
    %235 = vector.broadcast %234 : vector<16x1xf32> to vector<16x16xf32>
    %236 = arith.subf %232, %235 : vector<16x16xf32>
    %237 = math.exp %236 : vector<16x16xf32>
    %cst_79 = arith.constant dense<0.000000e+00> : vector<16xf32>
    %238 = vector.multi_reduction <add>, %237, %cst_79 [1] : vector<16x16xf32> to vector<16xf32>
    %239 = vector.shape_cast %238 : vector<16xf32> to vector<16x1xf32>
    %240 = tpu.reciprocal %239 {approx = true} : vector<16x1xf32> -> vector<16x1xf32>
    %241 = vector.broadcast %240 : vector<16x1xf32> to vector<16x16xf32>
    %242 = arith.mulf %237, %241 : vector<16x16xf32>
    %cst_80 = arith.constant dense<0.000000e+00> : vector<16x8xf32>
    %243 = tpu.matmul %242, %227, %cst_80 {dimension_numbers = #tpu.dot_dimension_numbers<[1], [0], [0], [1], [0, 0, 1, 1], [], []>} : vector<16x16xf32>, vector<16x8xf32>, vector<16x8xf32> -> vector<16x8xf32>
    %244 = vector.extract_strided_slice %224 {offsets = [0, 8], sizes = [16, 8], strides = [1, 1]} : vector<16x96xf32> to vector<16x8xf32>
    %245 = vector.extract_strided_slice %224 {offsets = [0, 40], sizes = [16, 8], strides = [1, 1]} : vector<16x96xf32> to vector<16x8xf32>
    %246 = vector.extract_strided_slice %224 {offsets = [0, 72], sizes = [16, 8], strides = [1, 1]} : vector<16x96xf32> to vector<16x8xf32>
    %247 = tpu.transpose %245, [1, 0] : vector<16x8xf32> -> vector<8x16xf32>
    %cst_81 = arith.constant dense<0.000000e+00> : vector<16x16xf32>
    %248 = tpu.matmul %244, %247, %cst_81 {dimension_numbers = #tpu.dot_dimension_numbers<[1], [0], [0], [1], [0, 0, 1, 1], [], []>} : vector<16x8xf32>, vector<8x16xf32>, vector<16x16xf32> -> vector<16x16xf32>
    %cst_82 = arith.constant 0.353553385 : f32
    %249 = vector.broadcast %cst_82 : f32 to vector<16x16xf32>
    %250 = arith.mulf %248, %249 : vector<16x16xf32>
    %251 = arith.addf %250, %27 : vector<16x16xf32>
    %cst_83 = arith.constant dense<0xFF800000> : vector<16xf32>
    %252 = vector.multi_reduction <maximumf>, %251, %cst_83 [1] : vector<16x16xf32> to vector<16xf32>
    %253 = vector.shape_cast %252 : vector<16xf32> to vector<16x1xf32>
    %254 = vector.broadcast %253 : vector<16x1xf32> to vector<16x16xf32>
    %255 = arith.subf %251, %254 : vector<16x16xf32>
    %256 = math.exp %255 : vector<16x16xf32>
    %cst_84 = arith.constant dense<0.000000e+00> : vector<16xf32>
    %257 = vector.multi_reduction <add>, %256, %cst_84 [1] : vector<16x16xf32> to vector<16xf32>
    %258 = vector.shape_cast %257 : vector<16xf32> to vector<16x1xf32>
    %259 = tpu.reciprocal %258 {approx = true} : vector<16x1xf32> -> vector<16x1xf32>
    %260 = vector.broadcast %259 : vector<16x1xf32> to vector<16x16xf32>
    %261 = arith.mulf %256, %260 : vector<16x16xf32>
    %cst_85 = arith.constant dense<0.000000e+00> : vector<16x8xf32>
    %262 = tpu.matmul %261, %246, %cst_85 {dimension_numbers = #tpu.dot_dimension_numbers<[1], [0], [0], [1], [0, 0, 1, 1], [], []>} : vector<16x16xf32>, vector<16x8xf32>, vector<16x8xf32> -> vector<16x8xf32>
    %263 = vector.extract_strided_slice %224 {offsets = [0, 16], sizes = [16, 8], strides = [1, 1]} : vector<16x96xf32> to vector<16x8xf32>
    %264 = vector.extract_strided_slice %224 {offsets = [0, 48], sizes = [16, 8], strides = [1, 1]} : vector<16x96xf32> to vector<16x8xf32>
    %265 = vector.extract_strided_slice %224 {offsets = [0, 80], sizes = [16, 8], strides = [1, 1]} : vector<16x96xf32> to vector<16x8xf32>
    %266 = tpu.transpose %264, [1, 0] : vector<16x8xf32> -> vector<8x16xf32>
    %cst_86 = arith.constant dense<0.000000e+00> : vector<16x16xf32>
    %267 = tpu.matmul %263, %266, %cst_86 {dimension_numbers = #tpu.dot_dimension_numbers<[1], [0], [0], [1], [0, 0, 1, 1], [], []>} : vector<16x8xf32>, vector<8x16xf32>, vector<16x16xf32> -> vector<16x16xf32>
    %cst_87 = arith.constant 0.353553385 : f32
    %268 = vector.broadcast %cst_87 : f32 to vector<16x16xf32>
    %269 = arith.mulf %267, %268 : vector<16x16xf32>
    %270 = arith.addf %269, %27 : vector<16x16xf32>
    %cst_88 = arith.constant dense<0xFF800000> : vector<16xf32>
    %271 = vector.multi_reduction <maximumf>, %270, %cst_88 [1] : vector<16x16xf32> to vector<16xf32>
    %272 = vector.shape_cast %271 : vector<16xf32> to vector<16x1xf32>
    %273 = vector.broadcast %272 : vector<16x1xf32> to vector<16x16xf32>
    %274 = arith.subf %270, %273 : vector<16x16xf32>
    %275 = math.exp %274 : vector<16x16xf32>
    %cst_89 = arith.constant dense<0.000000e+00> : vector<16xf32>
    %276 = vector.multi_reduction <add>, %275, %cst_89 [1] : vector<16x16xf32> to vector<16xf32>
    %277 = vector.shape_cast %276 : vector<16xf32> to vector<16x1xf32>
    %278 = tpu.reciprocal %277 {approx = true} : vector<16x1xf32> -> vector<16x1xf32>
    %279 = vector.broadcast %278 : vector<16x1xf32> to vector<16x16xf32>
    %280 = arith.mulf %275, %279 : vector<16x16xf32>
    %cst_90 = arith.constant dense<0.000000e+00> : vector<16x8xf32>
    %281 = tpu.matmul %280, %265, %cst_90 {dimension_numbers = #tpu.dot_dimension_numbers<[1], [0], [0], [1], [0, 0, 1, 1], [], []>} : vector<16x16xf32>, vector<16x8xf32>, vector<16x8xf32> -> vector<16x8xf32>
    %282 = vector.extract_strided_slice %224 {offsets = [0, 24], sizes = [16, 8], strides = [1, 1]} : vector<16x96xf32> to vector<16x8xf32>
    %283 = vector.extract_strided_slice %224 {offsets = [0, 56], sizes = [16, 8], strides = [1, 1]} : vector<16x96xf32> to vector<16x8xf32>
    %284 = vector.extract_strided_slice %224 {offsets = [0, 88], sizes = [16, 8], strides = [1, 1]} : vector<16x96xf32> to vector<16x8xf32>
    %285 = tpu.transpose %283, [1, 0] : vector<16x8xf32> -> vector<8x16xf32>
    %cst_91 = arith.constant dense<0.000000e+00> : vector<16x16xf32>
    %286 = tpu.matmul %282, %285, %cst_91 {dimension_numbers = #tpu.dot_dimension_numbers<[1], [0], [0], [1], [0, 0, 1, 1], [], []>} : vector<16x8xf32>, vector<8x16xf32>, vector<16x16xf32> -> vector<16x16xf32>
    %cst_92 = arith.constant 0.353553385 : f32
    %287 = vector.broadcast %cst_92 : f32 to vector<16x16xf32>
    %288 = arith.mulf %286, %287 : vector<16x16xf32>
    %289 = arith.addf %288, %27 : vector<16x16xf32>
    %cst_93 = arith.constant dense<0xFF800000> : vector<16xf32>
    %290 = vector.multi_reduction <maximumf>, %289, %cst_93 [1] : vector<16x16xf32> to vector<16xf32>
    %291 = vector.shape_cast %290 : vector<16xf32> to vector<16x1xf32>
    %292 = vector.broadcast %291 : vector<16x1xf32> to vector<16x16xf32>
    %293 = arith.subf %289, %292 : vector<16x16xf32>
    %294 = math.exp %293 : vector<16x16xf32>
    %cst_94 = arith.constant dense<0.000000e+00> : vector<16xf32>
    %295 = vector.multi_reduction <add>, %294, %cst_94 [1] : vector<16x16xf32> to vector<16xf32>
    %296 = vector.shape_cast %295 : vector<16xf32> to vector<16x1xf32>
    %297 = tpu.reciprocal %296 {approx = true} : vector<16x1xf32> -> vector<16x1xf32>
    %298 = vector.broadcast %297 : vector<16x1xf32> to vector<16x16xf32>
    %299 = arith.mulf %294, %298 : vector<16x16xf32>
    %cst_95 = arith.constant dense<0.000000e+00> : vector<16x8xf32>
    %300 = tpu.matmul %299, %284, %cst_95 {dimension_numbers = #tpu.dot_dimension_numbers<[1], [0], [0], [1], [0, 0, 1, 1], [], []>} : vector<16x16xf32>, vector<16x8xf32>, vector<16x8xf32> -> vector<16x8xf32>
    %301 = tpu.concatenate %243, %262, %281, %300 in 1 : vector<16x8xf32>, vector<16x8xf32>, vector<16x8xf32>, vector<16x8xf32> -> vector<16x32xf32>
    %302 = arith.truncf %301 : vector<16x32xf32> to vector<16x32xbf16>
    %c1_96 = arith.constant 1 : index
    %c0_97 = arith.constant 0 : index
    %c0_98 = arith.constant 0 : index
    %303 = vector.load %arg4[%c1_96, %c0_97, %c0_98] : memref<2x32x32xbf16, #tpu.memory_space<vmem>>, vector<1x32x32xbf16>
    %304 = vector.shape_cast %303 : vector<1x32x32xbf16> to vector<32x32xbf16>
    %cst_99 = arith.constant dense<0.000000e+00> : vector<16x32xf32>
    %305 = tpu.matmul %302, %304, %cst_99 {dimension_numbers = #tpu.dot_dimension_numbers<[1], [0], [0], [1], [0, 0, 1, 1], [], []>} : vector<16x32xbf16>, vector<32x32xbf16>, vector<16x32xf32> -> vector<16x32xf32>
    %306 = vector.broadcast %213 : vector<1x32xf32> to vector<16x32xf32>
    %307 = arith.addf %305, %306 : vector<16x32xf32>
    %308 = arith.addf %307, %209 : vector<16x32xf32>
    %cst_100 = arith.constant dense<0.000000e+00> : vector<16xf32>
    %309 = vector.multi_reduction <add>, %308, %cst_100 [1] : vector<16x32xf32> to vector<16xf32>
    %310 = vector.shape_cast %309 : vector<16xf32> to vector<16x1xf32>
    %cst_101 = arith.constant 3.200000e+01 : f32
    %311 = vector.broadcast %cst_101 : f32 to vector<16x1xf32>
    %312 = arith.divf %310, %311 : vector<16x1xf32>
    %313 = vector.broadcast %312 : vector<16x1xf32> to vector<16x32xf32>
    %314 = arith.subf %308, %313 : vector<16x32xf32>
    %315 = arith.mulf %314, %314 : vector<16x32xf32>
    %cst_102 = arith.constant dense<0.000000e+00> : vector<16xf32>
    %316 = vector.multi_reduction <add>, %315, %cst_102 [1] : vector<16x32xf32> to vector<16xf32>
    %317 = vector.shape_cast %316 : vector<16xf32> to vector<16x1xf32>
    %cst_103 = arith.constant 3.200000e+01 : f32
    %318 = vector.broadcast %cst_103 : f32 to vector<16x1xf32>
    %319 = arith.divf %317, %318 : vector<16x1xf32>
    %320 = vector.broadcast %312 : vector<16x1xf32> to vector<16x32xf32>
    %321 = arith.subf %308, %320 : vector<16x32xf32>
    %cst_104 = arith.constant 9.99999974E-6 : f32
    %322 = vector.broadcast %cst_104 : f32 to vector<16x1xf32>
    %323 = arith.addf %319, %322 : vector<16x1xf32>
    %324 = math.rsqrt %323 : vector<16x1xf32>
    %325 = vector.broadcast %324 : vector<16x1xf32> to vector<16x32xf32>
    %326 = arith.mulf %321, %325 : vector<16x32xf32>
    %327 = vector.broadcast %214 : vector<1x32xf32> to vector<16x32xf32>
    %328 = arith.mulf %326, %327 : vector<16x32xf32>
    %329 = vector.broadcast %215 : vector<1x32xf32> to vector<16x32xf32>
    %330 = arith.addf %328, %329 : vector<16x32xf32>
    %331 = arith.truncf %330 : vector<16x32xf32> to vector<16x32xbf16>
    %c1_105 = arith.constant 1 : index
    %c0_106 = arith.constant 0 : index
    %c0_107 = arith.constant 0 : index
    %332 = vector.load %arg5[%c1_105, %c0_106, %c0_107] : memref<2x32x2048xbf16, #tpu.memory_space<vmem>>, vector<1x32x2048xbf16>
    %333 = vector.shape_cast %332 : vector<1x32x2048xbf16> to vector<32x2048xbf16>
    %cst_108 = arith.constant dense<0.000000e+00> : vector<16x2048xf32>
    %334 = tpu.matmul %331, %333, %cst_108 {dimension_numbers = #tpu.dot_dimension_numbers<[1], [0], [0], [1], [0, 0, 1, 1], [], []>} : vector<16x32xbf16>, vector<32x2048xbf16>, vector<16x2048xf32> -> vector<16x2048xf32>
    %335 = arith.truncf %334 : vector<16x2048xf32> to vector<16x2048xbf16>
    %c1_109 = arith.constant 1 : index
    %c0_110 = arith.constant 0 : index
    %c0_111 = arith.constant 0 : index
    %336 = vector.load %arg6[%c1_109, %c0_110, %c0_111] : memref<2x1x2048xf32, #tpu.memory_space<vmem>>, vector<1x1x2048xf32>
    %337 = vector.shape_cast %336 : vector<1x1x2048xf32> to vector<1x2048xf32>
    %338 = arith.truncf %337 : vector<1x2048xf32> to vector<1x2048xbf16>
    %339 = vector.broadcast %338 : vector<1x2048xbf16> to vector<16x2048xbf16>
    %340 = arith.addf %335, %339 : vector<16x2048xbf16>
    %cst_112 = arith.constant 0.000000e+00 : bf16
    %341 = vector.broadcast %cst_112 : bf16 to vector<16x2048xbf16>
    %342 = arith.maximumf %340, %341 : vector<16x2048xbf16>
    %c1_113 = arith.constant 1 : index
    %c0_114 = arith.constant 0 : index
    %c0_115 = arith.constant 0 : index
    %343 = vector.load %arg7[%c1_113, %c0_114, %c0_115] : memref<2x2048x32xbf16, #tpu.memory_space<vmem>>, vector<1x2048x32xbf16>
    %344 = vector.shape_cast %343 : vector<1x2048x32xbf16> to vector<2048x32xbf16>
    %cst_116 = arith.constant dense<0.000000e+00> : vector<16x32xf32>
    %345 = tpu.matmul %342, %344, %cst_116 {dimension_numbers = #tpu.dot_dimension_numbers<[1], [0], [0], [1], [0, 0, 1, 1], [], []>} : vector<16x2048xbf16>, vector<2048x32xbf16>, vector<16x32xf32> -> vector<16x32xf32>
    %346 = vector.broadcast %216 : vector<1x32xf32> to vector<16x32xf32>
    %347 = arith.addf %345, %346 : vector<16x32xf32>
    %348 = arith.addf %347, %330 : vector<16x32xf32>
    %cst_117 = arith.constant dense<0.000000e+00> : vector<16xf32>
    %349 = vector.multi_reduction <add>, %348, %cst_117 [1] : vector<16x32xf32> to vector<16xf32>
    %350 = vector.shape_cast %349 : vector<16xf32> to vector<16x1xf32>
    %cst_118 = arith.constant 3.200000e+01 : f32
    %351 = vector.broadcast %cst_118 : f32 to vector<16x1xf32>
    %352 = arith.divf %350, %351 : vector<16x1xf32>
    %353 = vector.broadcast %352 : vector<16x1xf32> to vector<16x32xf32>
    %354 = arith.subf %348, %353 : vector<16x32xf32>
    %355 = arith.mulf %354, %354 : vector<16x32xf32>
    %cst_119 = arith.constant dense<0.000000e+00> : vector<16xf32>
    %356 = vector.multi_reduction <add>, %355, %cst_119 [1] : vector<16x32xf32> to vector<16xf32>
    %357 = vector.shape_cast %356 : vector<16xf32> to vector<16x1xf32>
    %cst_120 = arith.constant 3.200000e+01 : f32
    %358 = vector.broadcast %cst_120 : f32 to vector<16x1xf32>
    %359 = arith.divf %357, %358 : vector<16x1xf32>
    %360 = vector.broadcast %352 : vector<16x1xf32> to vector<16x32xf32>
    %361 = arith.subf %348, %360 : vector<16x32xf32>
    %cst_121 = arith.constant 9.99999974E-6 : f32
    %362 = vector.broadcast %cst_121 : f32 to vector<16x1xf32>
    %363 = arith.addf %359, %362 : vector<16x1xf32>
    %364 = math.rsqrt %363 : vector<16x1xf32>
    %365 = vector.broadcast %364 : vector<16x1xf32> to vector<16x32xf32>
    %366 = arith.mulf %361, %365 : vector<16x32xf32>
    %367 = vector.broadcast %217 : vector<1x32xf32> to vector<16x32xf32>
    %368 = arith.mulf %366, %367 : vector<16x32xf32>
    %369 = vector.broadcast %218 : vector<1x32xf32> to vector<16x32xf32>
    %370 = arith.addf %368, %369 : vector<16x32xf32>
    %cst_122 = arith.constant dense<0.000000e+00> : vector<2x32xf32>
    %371 = tpu.matmul %41, %370, %cst_122 {dimension_numbers = #tpu.dot_dimension_numbers<[1], [0], [0], [1], [0, 0, 1, 1], [], []>} : vector<2x16xf32>, vector<16x32xf32>, vector<2x32xf32> -> vector<2x32xf32>
    %c0_123 = arith.constant 0 : index
    %c0_124 = arith.constant 0 : index
    %372 = vector.load %arg9[%c0_123, %c0_124] : memref<2x32xf32, #tpu.memory_space<vmem>>, vector<2x32xf32>
    tpu.vector_store %arg9[%c0_123, %c0_124], %371 {strides = array<i32>} : memref<2x32xf32, #tpu.memory_space<vmem>>, vector<2x32xf32>,
    return
  }
}

</mosaic_0001>

<bundles_post_ra>
// kernel: _forward_jit.1
= control target key start
LH: loop header
LB: loop body
LE: loop exit
PB: predicated region body
PF: predicated region fallthrough
CT: control target
= control target key end

     0   :  { %v8530_v1 = vmov 0.0   ;;  %vm91_vm0 = vcmask 130048   ;;  %vm8531_vm1 = vmmov 0   ;;  %s10375_s0 = inlined_call_operand.vmem [shape: f32[16,16], index: 0, kind: input, shape index: {}]   ;;  %s10376_s1 = inlined_call_operand.vmem [shape: bf16[16,32], index: 1, kind: input, shape index: {}]   ;;  %s10377_s2 = inlined_call_operand.vmem [shape: f32[1,32], index: 2, kind: input, shape index: {}]   ;;  %s10378_s3 = inlined_call_operand.vmem [shape: bf16[2,32,96], index: 3, kind: input, shape index: {}]   ;;  %s10379_s4 = inlined_call_operand.vmem [shape: bf16[2,32,32], index: 4, kind: input, shape index: {}]   ;;  %s10380_s5 = inlined_call_operand.vmem [shape: bf16[2,32,2048], index: 5, kind: input, shape index: {}]   ;;  %s10381_s6 = inlined_call_operand.vmem [shape: f32[2,1,2048], index: 6, kind: input, shape index: {}]   ;;  %s10382_s7 = inlined_call_operand.vmem [shape: bf16[2,2048,32], index: 7, kind: input, shape index: {}]   ;;  %s10383_s8 = inlined_call_operand.vmem [shape: f32[2,7,96], index: 8, kind: input, shape index: {}]   ;;  %s10384_s9 = inlined_call_operand.hbm [shape: f32[2,32], index: 9, kind: output, shape index: {}]  }
   0x1   :  { %v8159_v0 = vld [vmem:[%s10376_s1] sm:$0xff]   ;;  %7789 = vmatprep.subr.bf16.mxu0 %v8530_v1  ;;  %v74_v3 = vld [vmem:[%s10375_s0 + $0x8] sm:$0xff]  ;;  %7795 = vmatprep.subr.bf16.mxu1 %v8530_v1 }
   0x2   :  { %v73_v2 = vld [vmem:[%s10375_s0] sm:$0xff]  ;;  %7790 = vmatpush3.bf16.msra.mxu0 %v8159_v0  ;;  %7791 = vmatprep.mubr.msk.bf16.mxu0 %vm8531_vm1, %v8530_v1  ;;  %v8161_v6 = vld [vmem:[%s10378_s3 + $0x8] sm:$0xff]  }
   0x3   :  { %v75_v4 = vpack.c.bf16 %v74_v3, %v73_v2  ;;  %7799 = vmatprep.mubr.msk.bf16.mxu1 %vm8531_vm1, %v8530_v1  ;;  %v8160_v5 = vld [vmem:[%s10378_s3] sm:$0xff]  }
   0x4   :  { %7796 = vmatpush3.bf16.msra.mxu1 %v8160_v5 }
   0x5   :  { %7792 = vmatmul.mubr.msk.bf16.vlgmr.msra.gmra.mrb[0].mxu0 %vm91_vm0, %v75_v4  ;;  %7797 = vmatprep.subr.bf16.mxu1 %v8530_v1 }
   0x8   :  { %7798 = vmatpush3.bf16.msra.mxu1 %v8161_v6 }
   0x9   :  { %14 = vsyncpa [#allocation3], 0  ;;  %v6657_v7 = vld [vmem:[%s10377_s2] ss:$0 sm:$0xff]  ;;  %vm158_vm2 = vcmask 261120   ;;  %v34_v15 = vlaneseq  ;;  %vm209_vm3 = vcmask 64512  }
   0xa   :  { %v8641_v18 = vld [vmem:[%s10383_s8] sm:$0x7f]  ;;  %s8532_s20 = smov 120   ;;  %s8533_s21 = smov 80   ;;  %vm8672_vm4 = vmpackc.low %vm209_vm3, %vm209_vm3  ;;  %v8537_v46 = vmov -1e+30  }
   0xb   :  { %v8633_v16 = vshrl.u32 %v34_v15, 7  ;;  %s8534_s22 = smov 96   ;;  %s8535_s23 = smov 112   ;;  %v8693_v44 = vand.u32 127, %v34_v15  ;;  %vm1046_vm9 = vcmask 195584   ;;  %vm6641_vm13 = vcmask 254976  }
   0xc   :  { %s8536_s24 = smov 88   ;;  %s8538_s25 = smov 56  }
   0xd   :  { %v8636_v17 = vsub.s32 0, %v8633_v16  ;;  %vm57_vm5 = vcmp.ge.s32.totalorder %v8693_v44, 8  ;;  %vm60_vm6 = vcmp.lt.s32.totalorder %v8693_v44, 16  ;;  %vm48_vm8 = vcmp.lt.s32.totalorder %v8693_v44, 8  ;;  %s8539_s26 = smov 64   ;;  %s8540_s27 = smov 48  }
   0xe   :  { %vm62_vm7 = vmand %vm57_vm5, %vm60_vm6  ;;  %v8700_v50 = vsel %vm48_vm8, 0.0, %v8537_v46  ;;  %s8541_s28 = smov 72   ;;  %s8542_s29 = smov 104  }
   0xf   :  { %v145_v19 = vrot.slane %v8641_v18, %v8636_v17  ;;  %v8698_v47 = vsel %vm62_vm7, 0.0, %v8537_v46  ;;  %s8543_s30 = smov 8   ;;  %s8544_s10 = smov 16  }
  0x10   :  { %s8545_s11 = smov 40   ;;  %s8546_s15 = smov 24  }
  0xd8   :  { %v129_v8 = vpop.f32.mrb[0].mxu0 }
  0xd9   :  { %v7793_v9 = vpop.f32.mrb[1].mxu0  ;;  %v8626_v11 = vadd.f32 %v6657_v7, %v129_v8 }
  0xda   :  { %v132_v10 = vpop.f32.mrb[2].mxu0 }
  0xdb   :  { %v8628_v12 = vadd.f32 %v6657_v7, %v132_v10  ;;  %v7794_v13 = vpop.f32.mrb[3].mxu0 }
  0xdd   :  { %v137_v14 = vpack.c.bf16 %v8628_v12, %v8626_v11 }
  0xdf   :  { %7800 = vmatmul.mubr.msk.bf16.vlgmr.msra.gmra.mrb[0].mxu1 %vm158_vm2, %v137_v14 }
 0x1b2   :  { %v196_v20 = vpop.f32.mrb[0].mxu1 }
 0x1b3   :  { %v8645_v21 = vadd.f32 %v196_v20, %v145_v19  ;;  %v7801_v22 = vpop.f32.mrb[1].mxu1 }
 0x1b4   :  { %v199_v23 = vpop.f32.mrb[2].mxu1 }
 0x1b5   :  { %v8647_v24 = vadd.f32 %v199_v23, %v145_v19  ;;  %v7802_v25 = vpop.f32.mrb[3].mxu1  ;;  %406 = vrot.lane.b32.xlu1 %v8645_v21, %s8532_s20  ;;  %7807 = vmatprep.mubr.msk.f32.mxu0 %vm209_vm3, %v8645_v21 }
 0x1b7   :  { %v8655_v26 = vpack.i.bf16 %v8647_v24, %v8645_v21 }
 0x1b9   :  { %8060 = vrot.lane.b32.xlu1 %v8655_v26, %s8533_s21  ;;  %8050 = vrot.lane.b32.xlu0 %v8655_v26, %s8534_s22 }
 0x1bd   :  { %610 = vrot.lane.b32.xlu1 %v8645_v21, %s8535_s23  ;;  %8055 = vrot.lane.b32.xlu0 %v8655_v26, %s8536_s24 }
 0x1c1   :  { %408 = vrot.lane.b32.xlu0 %v8647_v24, %s8532_s20 }
 0x1c5   :  { %612 = vrot.lane.b32.xlu0 %v8647_v24, %s8535_s23 }
 0x227   :  { %v407_v27 = vpop.permute.xlu1 %406 }
 0x228   :  { %7821 = vmatprep.mubr.msk.f32.mxu1 %vm209_vm3, %v407_v27 }
 0x22b   :  { %v8051_v28 = vpop.permute.xlu0 %8050  ;;  %v8061_v31 = vpop.permute.xlu1 %8060 }
 0x22c   :  { %v8053_v29 = vunpack.i.h.bf16 %v8051_v28  ;;  %v8052_v30 = vunpack.i.l.bf16 %v8051_v28  ;;  %v8063_v35 = vunpack.i.h.bf16 %v8061_v31  ;;  %v8062_v36 = vunpack.i.l.bf16 %v8061_v31 }
 0x22e   :  { %v7946_v33 = vpack.c.bf16 %v8053_v29, %v8052_v30  ;;  %v7966_v40 = vpack.c.bf16 %v8063_v35, %v8062_v36 }
 0x22f   :  { %v8056_v34 = vpop.permute.xlu0 %8055  ;;  %v611_v42 = vpop.permute.xlu1 %610 }
 0x230   :  { %v8058_v37 = vunpack.i.h.bf16 %v8056_v34  ;;  %v8057_v38 = vunpack.i.l.bf16 %v8056_v34  ;;  %7948 = vmatprep.subr.msk.bf16.mxu0 %vm8672_vm4, %v7946_v33 }
 0x231   :  { %7951 = vmatpush3.bf16.xpose.msk.msra.mxu0 %vm8672_vm4, %v7946_v33 }
 0x232   :  { %v7956_v39 = vpack.c.bf16 %v8058_v37, %v8057_v38 }
 0x233   :  { %v409_v41 = vpop.permute.xlu0 %408 }
 0x234   :  { %7958 = vmatprep.subr.msk.bf16.mxu1 %vm8672_vm4, %v7956_v39 }
 0x235   :  { %7961 = vmatpush3.bf16.xpose.msk.msra.mxu1 %vm8672_vm4, %v7956_v39 }
 0x236   :  { %7968 = vmatprep.subr.msk.bf16.mxu1 %vm8672_vm4, %v7966_v40 }
 0x237   :  { %v613_v43 = vpop.permute.xlu0 %612 }
 0x238   :  { %7808 = vmatmul.mubr.msk.f32.vlgmr.msra.gmra.mrb[4].mxu0 %vm209_vm3, %v8647_v24 }
 0x23c   :  { %7822 = vmatmul.mubr.msk.f32.vlgmr.msra.gmra.mrb[4].mxu1 %vm209_vm3, %v409_v41 }
 0x23d   :  { %7971 = vmatpush3.bf16.xpose.msk.msra.mxu1 %vm8672_vm4, %v7966_v40  ;;  %7835 = vmatprep.mubr.msk.f32.mxu1 %vm209_vm3, %v611_v42 }
 0x244   :  { %7836 = vmatmul.mubr.msk.f32.vlgmr.msra.gmra.mrb[6].mxu1 %vm209_vm3, %v613_v43 }
 0x30b   :  { %v7809_v45 = vpop.f32.mrb[4].mxu0 }
 0x30c   :  { %v294_v48 = vmul.f32 0.35355338, %v7809_v45  ;;  %v284_v49 = vpop.f32.mrb[5].mxu0 }
 0x30d   :  { %v293_v51 = vmul.f32 0.35355338, %v284_v49 }
 0x30e   :  { %v296_v52 = vadd.f32 %v294_v48, %v8698_v47 }
 0x30f   :  { %v7823_v53 = vpop.f32.mrb[4].mxu1  ;;  %v295_v54 = vadd.f32 %v293_v51, %v8700_v50 }
 0x310   :  { %v498_v55 = vmul.f32 0.35355338, %v7823_v53  ;;  %v488_v56 = vpop.f32.mrb[5].mxu1  ;;  %v300_v57 = vsel %vm91_vm0, %v296_v52, -inf }
 0x311   :  { %v497_v58 = vmul.f32 0.35355338, %v488_v56  ;;  %301 = vmax.xlane.f32.xlu0 %v300_v57  ;;  %v297_v59 = vsel %vm91_vm0, %v295_v54, -inf }
 0x312   :  { %298 = vmax.xlane.f32.xlu1 %v297_v59  ;;  %v500_v60 = vadd.f32 %v498_v55, %v8698_v47 }
 0x313   :  { %v499_v61 = vadd.f32 %v497_v58, %v8700_v50 }
 0x314   :  { %v504_v62 = vsel %vm91_vm0, %v500_v60, -inf }
 0x315   :  { %v501_v63 = vsel %vm91_vm0, %v499_v61, -inf }
 0x316   :  { %502 = vmax.xlane.f32.xlu0 %v501_v63  ;;  %505 = vmax.xlane.f32.xlu1 %v504_v62 }
 0x317   :  { %v7837_v0 = vpop.f32.mrb[6].mxu1 }
 0x318   :  { %v702_v2 = vmul.f32 0.35355338, %v7837_v0  ;;  %v692_v3 = vpop.f32.mrb[7].mxu1 }
 0x319   :  { %v701_v4 = vmul.f32 0.35355338, %v692_v3 }
 0x31a   :  { %v8711_v5 = vadd.f32 %v702_v2, %v8698_v47 }
 0x31b   :  { %v703_v6 = vadd.f32 %v701_v4, %v8700_v50 }
 0x31c   :  { %v708_v7 = vsel %vm91_vm0, %v8711_v5, -inf }
 0x31d   :  { %709 = vmax.xlane.f32.xlu1 %v708_v7  ;;  %v705_v8 = vsel %vm91_vm0, %v703_v6, -inf }
 0x31e   :  { %706 = vmax.xlane.f32.xlu0 %v705_v8 }
 0x32e   :  { %8070 = vrot.lane.b32.xlu1 %v8655_v26, %s8538_s25 }
 0x334   :  { %8065 = vrot.lane.b32.xlu0 %v8655_v26, %s8539_s26 }
 0x39e   :  { %v302_v9 = vpop.xlane.xlu0 %301 }
 0x39f   :  { %v304_v10 = vsub.f32 %v296_v52, %v302_v9  ;;  %v299_v13 = vpop.xlane.xlu1 %298 }
 0x3a0   :  { %v303_v14 = vsub.f32 %v295_v54, %v299_v13 }
 0x3a1   :  { %v307_v15 = vmul.f32 1.442695, %v304_v10 }
 0x3a2   :  { %v305_v19 = vmul.f32 1.442695, %v303_v14 }
 0x3a3   :  { %8424 = vpow2.f32 %v307_v15  ;;  %v503_v20 = vpop.xlane.xlu0 %502  ;;  %v506_v22 = vpop.xlane.xlu1 %505 }
 0x3a4   :  { %8426 = vpow2.f32 %v305_v19  ;;  %v507_v23 = vsub.f32 %v499_v61, %v503_v20  ;;  %v508_v25 = vsub.f32 %v500_v60, %v506_v22 }
 0x3a6   :  { %v509_v27 = vmul.f32 1.442695, %v507_v23  ;;  %v511_v28 = vmul.f32 1.442695, %v508_v25 }
 0x3a8   :  { %8428 = vpow2.f32 %v509_v27 }
 0x3a9   :  { %8430 = vpow2.f32 %v511_v28 }
 0x3aa   :  { %v710_v29 = vpop.xlane.xlu1 %709 }
 0x3ab   :  { %v707_v30 = vpop.xlane.xlu0 %706  ;;  %v712_v55 = vsub.f32 %v8711_v5, %v710_v29 }
 0x3ac   :  { %v711_v31 = vsub.f32 %v703_v6, %v707_v30 }
 0x3ad   :  { %v8425_v33 = vpop.eup %8424  ;;  %v715_v56 = vmul.f32 1.442695, %v712_v55 }
 0x3ae   :  { %v8427_v34 = vpop.eup %8426  ;;  %v713_v35 = vmul.f32 1.442695, %v711_v31  ;;  %v8071_v36 = vpop.permute.xlu1 %8070  ;;  %v312_v37 = vsel %vm91_vm0, %v8425_v33, 0.0 }
 0x3af   :  { %v8073_v38 = vunpack.i.h.bf16 %v8071_v36  ;;  %v8066_v39 = vpop.permute.xlu0 %8065  ;;  %313 = vadd.xlane.f32.xlu1 %v312_v37  ;;  %v309_v40 = vsel %vm91_vm0, %v8427_v34, 0.0  ;;  %v8072_v41 = vunpack.i.l.bf16 %v8071_v36 }
 0x3b0   :  { %8432 = vpow2.f32 %v713_v35  ;;  %v8068_v42 = vunpack.i.h.bf16 %v8066_v39  ;;  %v8067_v43 = vunpack.i.l.bf16 %v8066_v39  ;;  %310 = vadd.xlane.f32.xlu0 %v309_v40 }
 0x3b1   :  { %v7962_v51 = vpack.c.bf16 %v8073_v38, %v8072_v41  ;;  %8434 = vpow2.f32 %v715_v56 }
 0x3b2   :  { %v8429_v45 = vpop.eup %8428  ;;  %v7952_v46 = vpack.c.bf16 %v8068_v42, %v8067_v43 }
 0x3b3   :  { %v8431_v48 = vpop.eup %8430  ;;  %v513_v49 = vsel %vm91_vm0, %v8429_v45, 0.0 }
 0x3b4   :  { %7953 = vmatprep.subr.bf16.mxu0 %v7952_v46  ;;  %514 = vadd.xlane.f32.xlu0 %v513_v49  ;;  %v516_v52 = vsel %vm91_vm0, %v8431_v48, 0.0 }
 0x3b5   :  { %517 = vadd.xlane.f32.xlu1 %v516_v52  ;;  %7955 = vmatpush3.bf16.msra.mxu0 %v7952_v46 }
 0x3b6   :  { %7963 = vmatprep.subr.bf16.mxu0 %v7962_v51 }
 0x3ba   :  { %v8433_v53 = vpop.eup %8432 }
 0x3bb   :  { %v717_v54 = vsel %vm91_vm0, %v8433_v53, 0.0  ;;  %v8435_v57 = vpop.eup %8434 }
 0x3bc   :  { %718 = vadd.xlane.f32.xlu0 %v717_v54  ;;  %v720_v58 = vsel %vm91_vm0, %v8435_v57, 0.0 }
 0x3c6   :  { %8075 = vrot.lane.b32.xlu1 %v8655_v26, %s8540_s27 }
 0x3d2   :  { %8080 = vrot.lane.b32.xlu0 %v8655_v26, %s8541_s28 }
 0x3d6   :  { %816 = vrot.lane.b32.xlu0 %v8647_v24, %s8542_s29 }
 0x3ea   :  { %721 = vadd.xlane.f32.xlu1 %v720_v58 }
 0x3fb   :  { %814 = vrot.lane.b32.xlu1 %v8645_v21, %s8542_s29 }
 0x43c   :  { %v314_v59 = vpop.xlane.xlu1 %313 }
 0x43d   :  { %8436 = vrcp.f32 %v314_v59  ;;  %v311_v60 = vpop.xlane.xlu0 %310 }
 0x43e   :  { %8438 = vrcp.f32 %v311_v60 }
 0x441   :  { %v515_v61 = vpop.xlane.xlu0 %514 }
 0x442   :  { %8440 = vrcp.f32 %v515_v61  ;;  %v518_v62 = vpop.xlane.xlu1 %517 }
 0x443   :  { %8442 = vrcp.f32 %v518_v62 }
 0x446   :  { %v8076_v63 = vpop.permute.xlu1 %8075 }
 0x447   :  { %v8437_v0 = vpop.eup %8436  ;;  %v8078_v2 = vunpack.i.h.bf16 %v8076_v63  ;;  %v8077_v3 = vunpack.i.l.bf16 %v8076_v63 }
 0x448   :  { %v8439_v24 = vpop.eup %8438  ;;  %v318_v6 = vmul.f32 %v8437_v0, %v8425_v33 }
 0x449   :  { %v719_v4 = vpop.xlane.xlu0 %718  ;;  %v317_v5 = vmul.f32 %v8439_v24, %v8427_v34  ;;  %v7972_v7 = vpack.c.bf16 %v8078_v2, %v8077_v3 }
 0x44a   :  { %8444 = vrcp.f32 %v719_v4 }
 0x44b   :  { %7814 = vmatprep.mubr.msk.f32.mxu0 %vm91_vm0, %v317_v5 }
 0x44c   :  { %v8441_v21 = vpop.eup %8440  ;;  %7815 = vmatmul.mubr.msk.f32.vlgmr.msra.gmra.mrb[6].mxu0 %vm91_vm0, %v318_v6  ;;  %v8163_v6 = vld [vmem:[%s10379_s4 + $0x8] sm:$0xff]  }
 0x44d   :  { %v8443_v8 = vpop.eup %8442  ;;  %7965 = vmatpush3.bf16.msra.mxu0 %v7962_v51  ;;  %v8081_v9 = vpop.permute.xlu0 %8080  ;;  %v521_v10 = vmul.f32 %v8441_v21, %v8429_v45 }
 0x44e   :  { %v522_v13 = vmul.f32 %v8443_v8, %v8431_v48  ;;  %v8083_v14 = vunpack.i.h.bf16 %v8081_v9  ;;  %v8082_v15 = vunpack.i.l.bf16 %v8081_v9  ;;  %7973 = vmatprep.subr.bf16.mxu0 %v7972_v7 }
 0x44f   :  { %7828 = vmatprep.mubr.msk.f32.mxu0 %vm91_vm0, %v521_v10 }
 0x450   :  { %v7976_v19 = vpack.c.bf16 %v8083_v14, %v8082_v15  ;;  %7829 = vmatmul.mubr.msk.f32.vlgmr.msra.gmra.mrb[8].mxu0 %vm91_vm0, %v522_v13 }
 0x451   :  { %7975 = vmatpush3.bf16.msra.mxu0 %v7972_v7  ;;  %v817_v29 = vpop.permute.xlu0 %816 }
 0x452   :  { %7978 = vmatprep.subr.msk.bf16.mxu0 %vm8672_vm4, %v7976_v19 }
 0x454   :  { %v8445_v20 = vpop.eup %8444 }
 0x455   :  { %v725_v22 = vmul.f32 %v8445_v20, %v8433_v53 }
 0x457   :  { %7842 = vmatprep.mubr.msk.f32.mxu0 %vm91_vm0, %v725_v22 }
 0x477   :  { %v722_v23 = vpop.xlane.xlu1 %721 }
 0x478   :  { %8446 = vrcp.f32 %v722_v23 }
 0x47b   :  { %v815_v28 = vpop.permute.xlu1 %814 }
 0x482   :  { %v8447_v25 = vpop.eup %8446 }
 0x483   :  { %v726_v27 = vmul.f32 %v8447_v25, %v8435_v57 }
 0x485   :  { %7843 = vmatmul.mubr.msk.f32.vlgmr.msra.gmra.mrb[10].mxu0 %vm91_vm0, %v726_v27 }
 0x486   :  { %7981 = vmatpush3.bf16.xpose.msk.msra.mxu0 %vm8672_vm4, %v7976_v19  ;;  %7849 = vmatprep.mubr.msk.f32.mxu0 %vm209_vm3, %v815_v28 }
 0x48d   :  { %7850 = vmatmul.mubr.msk.f32.vlgmr.msra.gmra.mrb[12].mxu0 %vm209_vm3, %v817_v29 }
 0x51f   :  { %v8748_v30 = vpop.f32.mrb[6].mxu0 }
 0x520   :  { %v8750_v31 = vpop.f32.mrb[7].mxu0 }
 0x523   :  { %v7830_v33 = vpop.f32.mrb[8].mxu0 }
 0x524   :  { %v601_v34 = vpop.f32.mrb[9].mxu0 }
 0x525   :  { %v8089_v35 = vpack.i.bf16 %v7830_v33, %v601_v34 }
 0x558   :  { %v7844_v36 = vpop.f32.mrb[10].mxu0 }
 0x559   :  { %v805_v37 = vpop.f32.mrb[11].mxu0 }
 0x55a   :  { %v8094_v38 = vpack.i.bf16 %v7844_v36, %v805_v37  ;;  %v8785_v36 = vsub.s32 1, %v8633_v16 }
 0x560   :  { %v7851_v39 = vpop.f32.mrb[12].mxu0 }
 0x561   :  { %v906_v40 = vmul.f32 0.35355338, %v7851_v39  ;;  %v896_v41 = vpop.f32.mrb[13].mxu0 }
 0x562   :  { %v905_v42 = vmul.f32 0.35355338, %v896_v41 }
 0x563   :  { %v908_v43 = vadd.f32 %v906_v40, %v8698_v47 }
 0x564   :  { %v907_v45 = vadd.f32 %v905_v42, %v8700_v50 }
 0x565   :  { %v912_v46 = vsel %vm91_vm0, %v908_v43, -inf }
 0x566   :  { %913 = vmax.xlane.f32.xlu0 %v912_v46  ;;  %v909_v48 = vsel %vm91_vm0, %v907_v45, -inf }
 0x567   :  { %910 = vmax.xlane.f32.xlu1 %v909_v48 }
 0x5f3   :  { %v914_v49 = vpop.xlane.xlu0 %913 }
 0x5f4   :  { %v916_v51 = vsub.f32 %v908_v43, %v914_v49  ;;  %v911_v52 = vpop.xlane.xlu1 %910 }
 0x5f5   :  { %v915_v53 = vsub.f32 %v907_v45, %v911_v52 }
 0x5f6   :  { %v919_v54 = vmul.f32 1.442695, %v916_v51 }
 0x5f7   :  { %v917_v55 = vmul.f32 1.442695, %v915_v53 }
 0x5f8   :  { %8448 = vpow2.f32 %v919_v54 }
 0x5f9   :  { %8450 = vpow2.f32 %v917_v55 }
 0x602   :  { %v8449_v56 = vpop.eup %8448 }
 0x603   :  { %v8451_v57 = vpop.eup %8450  ;;  %v924_v58 = vsel %vm91_vm0, %v8449_v56, 0.0 }
 0x604   :  { %925 = vadd.xlane.f32.xlu1 %v924_v58  ;;  %v921_v59 = vsel %vm91_vm0, %v8451_v57, 0.0  ;;  %v1164_v58 = vld [vmem:[%s10380_s5 + $0x40] sm:$0xff] }
 0x605   :  { %922 = vadd.xlane.f32.xlu0 %v921_v59  ;;  %v1157_v59 = vld [vmem:[%s10380_s5 + $0x8] sm:$0xff] }
 0x615   :  { %8090 = vrot.lane.b32.xlu1 %v8089_v35, %s8543_s30 }
 0x619   :  { %8095 = vrot.lane.b32.xlu1 %v8094_v38, %s8544_s10 }
 0x61b   :  { %8085 = vrot.lane.b32.xlu0 %v8655_v26, %s8545_s11  ;;  %v8162_v26 = vld [vmem:[%s10379_s4] sm:$0xff]  }
 0x691   :  { %v926_v60 = vpop.xlane.xlu1 %925 }
 0x692   :  { %8452 = vrcp.f32 %v926_v60  ;;  %v923_v61 = vpop.xlane.xlu0 %922 }
 0x693   :  { %8454 = vrcp.f32 %v923_v61  ;;  %v1165_v61 = vld [vmem:[%s10380_s5 + $0x48] sm:$0xff] }
 0x695   :  { %v8091_v9 = vpop.permute.xlu1 %8090 }
 0x696   :  { %v8086_v62 = vpop.permute.xlu0 %8085  ;;  %v8093_v13 = vunpack.i.h.bf16 %v8091_v9  ;;  %v8092_v14 = vunpack.i.l.bf16 %v8091_v9  ;;  %v1159_v9 = vld [vmem:[%s10380_s5 + $0x18] sm:$0xff] }
 0x697   :  { %v8088_v63 = vunpack.i.h.bf16 %v8086_v62  ;;  %v8087_v0 = vunpack.i.l.bf16 %v8086_v62 }
 0x698   :  { %v1043_v22 = vsel %vm209_vm3, %v8748_v30, %v8093_v13  ;;  %v1042_v23 = vsel %vm209_vm3, %v8750_v31, %v8092_v14  ;;  %v1057_v30 = vrot.slane %v8641_v18, %v8785_v36  ;;  %v1167_v13 = vld [vmem:[%s10380_s5 + $0x58] sm:$0xff]  ;;  %v8547_v14 = vmov 0  }
 0x699   :  { %v7982_v24 = vpack.c.bf16 %v8088_v63, %v8087_v0  ;;  %v8096_v10 = vpop.permute.xlu1 %8095  ;;  %v6692_v63 = vcombine.low %v1157_v59, %v1165_v61  ;;  %v6693_v0 = vcombine.high %v1157_v59, %v1165_v61  ;;  %1383 = vmatprep.mubr.bf16.mxu0 %v8547_v14  ;;  %v1176_v59 = vld [vmem:[%s10380_s5 + $0xa0] sm:$0xff]  ;;  %v1177_v61 = vld [vmem:[%s10380_s5 + $0xa8] sm:$0xff] }
 0x69a   :  { %v8098_v15 = vunpack.i.h.bf16 %v8096_v10  ;;  %v8097_v19 = vunpack.i.l.bf16 %v8096_v10 }
 0x69b   :  { %7983 = vmatprep.subr.bf16.mxu1 %v7982_v24 }
 0x69c   :  { %v8453_v2 = vpop.eup %8452  ;;  %7985 = vmatpush3.bf16.msra.mxu1 %v7982_v24  ;;  %v1044_v28 = vsel %vm91_vm0, %v1042_v23, %v8097_v19  ;;  %v1045_v29 = vsel %vm91_vm0, %v1043_v22, %v8098_v15  ;;  %v1172_v24 = vld [vmem:[%s10380_s5 + $0x80] sm:$0xff]  ;;  %v6696_v19 = vcombine.low %v1159_v9, %v1167_v13 }
 0x69d   :  { %v8455_v3 = vpop.eup %8454  ;;  %7859 = vmatprep.subr.bf16.mxu1 %v8530_v1  ;;  %v930_v5 = vmul.f32 %v8453_v2, %v8449_v56  ;;  %v1180_v2 = vld [vmem:[%s10380_s5 + $0xc0] sm:$0xff] }
 0x69e   :  { %v929_v4 = vmul.f32 %v8455_v3, %v8451_v57  ;;  %v1173_v3 = vld [vmem:[%s10380_s5 + $0x88] sm:$0xff] }
 0x6a0   :  { %7856 = vmatprep.mubr.msk.f32.mxu1 %vm91_vm0, %v929_v4  ;;  %v6707_v4 = vcombine.high %v1172_v24, %v1180_v2 }
 0x6a1   :  { %7857 = vmatmul.mubr.msk.f32.vlgmr.msra.gmra.mrb[8].mxu1 %vm91_vm0, %v930_v5  ;;  %v1181_v5 = vld [vmem:[%s10380_s5 + $0xc8] sm:$0xff] }
 0x6a2   :  { %7863 = vmatprep.mubr.msk.bf16.mxu1 %vm8531_vm1, %v8530_v1  ;;  %7860 = vmatpush3.bf16.msra.mxu1 %v8162_v26  ;;  %v6706_v26 = vcombine.low %v1172_v24, %v1180_v2 }
 0x6a3   :  { %7861 = vmatprep.subr.bf16.mxu1 %v8530_v1 }
 0x6a6   :  { %7862 = vmatpush3.bf16.msra.mxu1 %v8163_v6  ;;  %v6708_v6 = vcombine.low %v1173_v3, %v1181_v5 }
 0x6a7   :  { %1394 = vmatprep.subr.bf16.mxu1 %v6693_v0 }
 0x774   :  { %v7858_v21 = vpop.f32.mrb[8].mxu1 }
 0x775   :  { %v1009_v7 = vpop.f32.mrb[9].mxu1 }
 0x776   :  { %v8099_v8 = vpack.i.bf16 %v7858_v21, %v1009_v7  ;;  %v6709_v21 = vcombine.high %v1173_v3, %v1181_v5  ;;  %v1158_v7 = vld [vmem:[%s10380_s5 + $0x10] sm:$0xff]  ;;  %v1163_v5 = vld [vmem:[%s10380_s5 + $0x38] sm:$0xff] }
 0x777   :  { %v1162_v3 = vld [vmem:[%s10380_s5 + $0x30] sm:$0xff] }
 0x778   :  { %8100 = vrot.lane.b32.xlu0 %v8099_v8, %s8546_s15  ;;  %v1166_v8 = vld [vmem:[%s10380_s5 + $0x50] sm:$0xff] }
 0x779   :  { %v6695_v10 = vcombine.high %v1158_v7, %v1166_v8  ;;  %v6694_v15 = vcombine.low %v1158_v7, %v1166_v8 }
 0x7ea   :  { %v8101_v20 = vpop.permute.xlu0 %8100 }
 0x7eb   :  { %v8103_v25 = vunpack.i.h.bf16 %v8101_v20  ;;  %v8102_v27 = vunpack.i.l.bf16 %v8101_v20  ;;  %v6697_v20 = vcombine.high %v1159_v9, %v1167_v13  ;;  %v1178_v9 = vld [vmem:[%s10380_s5 + $0xb0] sm:$0xff]  ;;  %v1179_v13 = vld [vmem:[%s10380_s5 + $0xb8] sm:$0xff] }
 0x7ed   :  { %v1047_v33 = vsel %vm1046_vm9, %v1044_v28, %v8102_v27  ;;  %v1048_v34 = vsel %vm1046_vm9, %v1045_v29, %v8103_v25 }
 0x7ee   :  { %v1049_v35 = vpack.c.bf16 %v1048_v34, %v1047_v33  ;;  %v8834_v33 = vsub.s32 2, %v8633_v16 }
 0x7f0   :  { %7864 = vmatmul.mubr.msk.bf16.vlgmr.msra.gmra.mrb[12].mxu1 %vm158_vm2, %v1049_v35  ;;  %v1146_v34 = vrot.slane %v8641_v18, %v8834_v33  ;;  %v8839_v35 = vsub.s32 3, %v8633_v16 }
 0x7f1   :  { %1395 = vmatpush1.bf16.msra.mxu1 %v6692_v63  ;;  %1426 = vmatprep.mubr.bf16.mxu1 %v8547_v14 }
 0x7f2   :  { %1396 = vmatprep.subr.bf16.mxu1 %v6709_v21 }
 0x7f5   :  { %1397 = vmatpush1.bf16.msra.mxu1 %v6708_v6 }
 0x7f6   :  { %1480 = vmatprep.subr.bf16.mxu1 %v6697_v20 }
 0x8c3   :  { %v1107_v31 = vpop.f32.mrb[12].mxu1 }
 0x8c4   :  { %v1108_v37 = vadd.f32 %v1107_v31, %v1057_v30  ;;  %v7865_v38 = vpop.f32.mrb[13].mxu1 }
 0x8c5   :  { %v1110_v39 = vpop.f32.mrb[14].mxu1  ;;  %v1152_v38 = vrot.slane %v8641_v18, %v8839_v35 }
 0x8c6   :  { %v1111_v40 = vadd.f32 %v1110_v39, %v1057_v30  ;;  %v7866_v41 = vpop.f32.mrb[15].mxu1  ;;  %v1114_v42 = vadd.f32 %v1108_v37, %v8626_v11 }
 0x8c8   :  { %v1116_v43 = vsel %vm158_vm2, %v1114_v42, 0.0  ;;  %v1115_v45 = vadd.f32 %v1111_v40, %v8628_v12  ;;  %v1156_v12 = vld [vmem:[%s10380_s5] sm:$0xff] }
 0x8c9   :  { %1117 = vadd.xlane.f32.xlu1 %v1116_v43  ;;  %v6691_v60 = vcombine.high %v1156_v12, %v1164_v58  ;;  %v6690_v62 = vcombine.low %v1156_v12, %v1164_v58  ;;  %v1182_v43 = vld [vmem:[%s10380_s5 + $0xd0] sm:$0xff] }
 0x8ca   :  { %v1119_v46 = vsel %vm158_vm2, %v1115_v45, 0.0 }
 0x8cb   :  { %1120 = vadd.xlane.f32.xlu0 %v1119_v46  ;;  %1351 = vmatprep.subr.bf16.mxu0 %v6691_v60  ;;  %v1183_v46 = vld [vmem:[%s10380_s5 + $0xd8] sm:$0xff]  ;;  %v1184_v60 = vld [vmem:[%s10380_s5 + $0xe0] sm:$0xff] }
 0x8cc   :  { %1352 = vmatpush1.bf16.msra.mxu0 %v6690_v62  ;;  %v1185_v62 = vld [vmem:[%s10380_s5 + $0xe8] sm:$0xff]  ;;  %v6715_v24 = vcombine.high %v1176_v59, %v1184_v60  ;;  %v6714_v6 = vcombine.low %v1176_v59, %v1184_v60  ;;  %v8189_v59 = vld [vmem:[%s10382_s7 + $0xf0] sm:$0xff]  }
 0x8cd   :  { %1353 = vmatprep.subr.bf16.mxu0 %v6707_v4  ;;  %v6717_v2 = vcombine.high %v1177_v61, %v1185_v62  ;;  %v1170_v4 = vld [vmem:[%s10380_s5 + $0x70] sm:$0xff]  ;;  %v6716_v21 = vcombine.low %v1177_v61, %v1185_v62  ;;  %v8192_v62 = vld [vmem:[%s10382_s7 + $0x78] sm:$0xff]  }
 0x8ce   :  { %v6703_v7 = vcombine.high %v1162_v3, %v1170_v4  ;;  %v8190_v60 = vld [vmem:[%s10382_s7 + $0x30] sm:$0xff]  }
 0x8cf   :  { %v8191_v61 = vld [vmem:[%s10382_s7 + $0xb0] sm:$0xff]  }
 0x8d0   :  { %1354 = vmatpush1.bf16.msra.mxu0 %v6706_v26  ;;  %v1171_v26 = vld [vmem:[%s10380_s5 + $0x78] sm:$0xff] }
 0x8d1   :  { %1437 = vmatprep.subr.bf16.mxu0 %v6695_v10  ;;  %v6705_v8 = vcombine.high %v1163_v5, %v1171_v26  ;;  %v1186_v10 = vld [vmem:[%s10380_s5 + $0xf0] sm:$0xff]  ;;  %v6704_v20 = vcombine.low %v1163_v5, %v1171_v26 }
 0x956   :  { %v1118_v48 = vpop.xlane.xlu1 %1117 }
 0x957   :  { %v1123_v49 = vmul.f32 0.03125, %v1118_v48 }
 0x958   :  { %v1121_v51 = vpop.xlane.xlu0 %1120 }
 0x959   :  { %v1125_v52 = vsub.f32 %v1114_v42, %v1123_v49  ;;  %v1124_v53 = vmul.f32 0.03125, %v1121_v51  ;;  %v1174_v42 = vld [vmem:[%s10380_s5 + $0x90] sm:$0xff] }
 0x95a   :  { %v6711_v51 = vcombine.high %v1174_v42, %v1182_v43 }
 0x95b   :  { %v1126_v54 = vsub.f32 %v1115_v45, %v1124_v53  ;;  %v1127_v55 = vmul.f32 %v1125_v52, %v1125_v52  ;;  %v1175_v45 = vld [vmem:[%s10380_s5 + $0x98] sm:$0xff]  ;;  %v1160_v53 = vld [vmem:[%s10380_s5 + $0x20] sm:$0xff] }
 0x95d   :  { %v1129_v56 = vsel %vm158_vm2, %v1127_v55, 0.0  ;;  %v1128_v57 = vmul.f32 %v1126_v54, %v1126_v54  ;;  %v1161_v55 = vld [vmem:[%s10380_s5 + $0x28] sm:$0xff] }
 0x95e   :  { %1130 = vadd.xlane.f32.xlu0 %v1129_v56  ;;  %v1169_v56 = vld [vmem:[%s10380_s5 + $0x68] sm:$0xff] }
 0x95f   :  { %v1132_v11 = vsel %vm158_vm2, %v1128_v57, 0.0  ;;  %v6710_v57 = vcombine.low %v1174_v42, %v1182_v43  ;;  %v6701_v58 = vcombine.high %v1161_v55, %v1169_v56  ;;  %v6700_v0 = vcombine.low %v1161_v55, %v1169_v56  ;;  %v8174_v42 = vld [vmem:[%s10382_s7 + $0x10] sm:$0xff]   ;;  %v8183_v55 = vld [vmem:[%s10382_s7 + $0xa0] sm:$0xff]   ;;  %v8184_v56 = vld [vmem:[%s10382_s7 + $0x68] sm:$0xff]  }
 0x960   :  { %1133 = vadd.xlane.f32.xlu1 %v1132_v11  ;;  %v6712_v11 = vcombine.low %v1175_v45, %v1183_v46  ;;  %v8175_v43 = vld [vmem:[%s10382_s7 + $0x90] sm:$0xff]  }
 0x9eb   :  { %v1131_v22 = vpop.xlane.xlu0 %1130 }
 0x9ec   :  { %v1135_v23 = vmul.f32 0.03125, %v1131_v22  ;;  %v6719_v22 = vcombine.high %v1178_v9, %v1186_v10 }
 0x9ed   :  { %v1134_v25 = vpop.xlane.xlu1 %1133 }
 0x9ee   :  { %v1137_v27 = vadd.f32 1e-05, %v1135_v23  ;;  %v1136_v28 = vmul.f32 0.03125, %v1134_v25  ;;  %v6718_v25 = vcombine.low %v1178_v9, %v1186_v10 }
 0x9f0   :  { %8456 = vrsqrt.f32 %v1137_v27  ;;  %v1138_v29 = vadd.f32 1e-05, %v1136_v28  ;;  %v8164_v28 = vld [vmem:[%s10382_s7 + $0x40] sm:$0xff]  }
 0x9f2   :  { %8458 = vrsqrt.f32 %v1138_v29  ;;  %v8165_v29 = vld [vmem:[%s10382_s7 + $0xc0] sm:$0xff]  }
 0x9fa   :  { %v8457_v30 = vpop.eup %8456 }
 0x9fb   :  { %v1141_v31 = vmul.f32 %v8457_v30, %v1125_v52  ;;  %v6713_v52 = vcombine.high %v1175_v45, %v1183_v46  ;;  %v8167_v30 = vld [vmem:[%s10382_s7 + $0x80] sm:$0xff]   ;;  %v8176_v45 = vld [vmem:[%s10382_s7 + $0x58] sm:$0xff]  }
 0x9fc   :  { %v8459_v37 = vpop.eup %8458  ;;  %v8177_v46 = vld [vmem:[%s10382_s7 + $0xd8] sm:$0xff]  }
 0x9fd   :  { %v1147_v39 = vmul.f32 %v1146_v34, %v1141_v31  ;;  %v1142_v40 = vmul.f32 %v8459_v37, %v1126_v54  ;;  %v1168_v54 = vld [vmem:[%s10380_s5 + $0x60] sm:$0xff]  ;;  %v8168_v31 = vld [vmem:[%s10382_s7 + $0x48] sm:$0xff]  }
 0x9fe   :  { %v6699_v12 = vcombine.high %v1160_v53, %v1168_v54  ;;  %v6698_v63 = vcombine.low %v1160_v53, %v1168_v54  ;;  %v8169_v37 = vld [vmem:[%s10382_s7 + $0xc8] sm:$0xff]   ;;  %v8181_v53 = vld [vmem:[%s10382_s7 + $0xe0] sm:$0xff]  }
 0x9ff   :  { %v1148_v41 = vmul.f32 %v1146_v34, %v1142_v40  ;;  %v8855_v18 = vadd.f32 %v1152_v38, %v1147_v39  ;;  %v8166_v34 = vld [vmem:[%s10382_s7] sm:$0xff]   ;;  %v8171_v39 = vld [vmem:[%s10382_s7 + $0x88] sm:$0xff]   ;;  %v8172_v40 = vld [vmem:[%s10382_s7 + $0x50] sm:$0xff]  }
 0xa00   :  { %v8182_v54 = vld [vmem:[%s10382_s7 + $0x20] sm:$0xff]  }
 0xa01   :  { %v8857_v48 = vadd.f32 %v1152_v38, %v1148_v41  ;;  %v8170_v38 = vld [vmem:[%s10382_s7 + $0x8] sm:$0xff]   ;;  %v8173_v41 = vld [vmem:[%s10382_s7 + $0xd0] sm:$0xff]  }
 0xa03   :  { %v8861_v49 = vpack.c.bf16 %v8857_v48, %v8855_v18 }
 0xa05   :  { %6722 = vmatmul.mubr.msk.bf16.vlgmr.msra.gmra.mrb[16].mxu0 %vm158_vm2, %v8861_v49  ;;  %6723 = vmatmul.mubr.msk.bf16.vlgmr.msra.gmra.mrb[16].mxu1 %vm158_vm2, %v8861_v49 }
 0xa06   :  { %1438 = vmatpush1.bf16.msra.mxu0 %v6694_v15  ;;  %1481 = vmatpush1.bf16.msra.mxu1 %v6696_v19  ;;  %v1187_v15 = vld [vmem:[%s10380_s5 + $0xf8] sm:$0xff]  ;;  %v6702_v19 = vcombine.low %v1162_v3, %v1170_v4  ;;  %v8197_v3 = vld [vmem:[%s10382_s7 + $0x1c0] sm:$0xff]  }
 0xa07   :  { %1439 = vmatprep.subr.bf16.mxu0 %v6711_v51  ;;  %1482 = vmatprep.subr.bf16.mxu1 %v6713_v52  ;;  %v6721_v23 = vcombine.high %v1179_v13, %v1187_v15  ;;  %v6720_v27 = vcombine.low %v1179_v13, %v1187_v15  ;;  %v8179_v51 = vld [vmem:[%s10382_s7 + $0x98] sm:$0xff]   ;;  %v8180_v52 = vld [vmem:[%s10382_s7 + $0x60] sm:$0xff]   ;;  %v9049_v13 = vsub.s32 5, %v8633_v16  ;;  %v9052_v15 = vsub.s32 7, %v8633_v16 }
 0xa08   :  { %1469 = vmatprep.mubr.bf16.mxu0 %v8547_v14  ;;  %1512 = vmatprep.mubr.bf16.mxu1 %v8547_v14  ;;  %v9038_v4 = vld [vmem:[%s10381_s6] sm:$0xff] }
 0xa09   :  { %v1718_v5 = vrot.slane %v9038_v4, %v8636_v17  ;;  %v1726_v26 = vrot.slane %v9038_v4, %v8834_v33 }
 0xa0a   :  { %1440 = vmatpush1.bf16.msra.mxu0 %v6710_v57  ;;  %1483 = vmatpush1.bf16.msra.mxu1 %v6712_v11  ;;  %v8185_v57 = vld [vmem:[%s10382_s7 + $0xe8] sm:$0xff]  }
 0xa0b   :  { %1523 = vmatprep.subr.bf16.mxu0 %v6699_v12  ;;  %1566 = vmatprep.subr.bf16.mxu1 %v6701_v58  ;;  %v8186_v11 = vld [vmem:[%s10382_s7 + $0x28] sm:$0xff]   ;;  %v8188_v58 = vld [vmem:[%s10382_s7 + $0x70] sm:$0xff]  }
 0xa0c   :  { %v8187_v12 = vld [vmem:[%s10382_s7 + $0xa8] sm:$0xff]  }
 0xa0d   :  { %6724 = vmatmul.mubr.msk.bf16.vlgmr.msra.gmra.mrb[20].mxu0 %vm158_vm2, %v8861_v49  ;;  %6725 = vmatmul.mubr.msk.bf16.vlgmr.msra.gmra.mrb[20].mxu1 %vm158_vm2, %v8861_v49 }
 0xa0e   :  { %1524 = vmatpush1.bf16.msra.mxu0 %v6698_v63  ;;  %1567 = vmatpush1.bf16.msra.mxu1 %v6700_v0  ;;  %v8193_v63 = vld [vmem:[%s10382_s7 + $0xf8] sm:$0xff]  }
 0xa0f   :  { %1525 = vmatprep.subr.bf16.mxu0 %v6715_v24  ;;  %1568 = vmatprep.subr.bf16.mxu1 %v6717_v2  ;;  %v8194_v0 = vld [vmem:[%s10382_s7 + $0x38] sm:$0xff]   ;;  %v8196_v2 = vld [vmem:[%s10382_s7 + $0x140] sm:$0xff]  }
 0xa10   :  { %1555 = vmatprep.mubr.bf16.mxu0 %v8547_v14  ;;  %1598 = vmatprep.mubr.bf16.mxu1 %v8547_v14  ;;  %v8195_v24 = vld [vmem:[%s10382_s7 + $0xb8] sm:$0xff]  }
 0xa12   :  { %1526 = vmatpush1.bf16.msra.mxu0 %v6714_v6  ;;  %1569 = vmatpush1.bf16.msra.mxu1 %v6716_v21  ;;  %v1722_v6 = vrot.slane %v9038_v4, %v8785_v36  ;;  %v1730_v21 = vrot.slane %v9038_v4, %v8839_v35 }
 0xa13   :  { %1609 = vmatprep.subr.bf16.mxu0 %v6703_v7  ;;  %1652 = vmatprep.subr.bf16.mxu1 %v6705_v8  ;;  %v1795_v7 = vpack.c.bf16 %v1718_v5, %v1718_v5  ;;  %v1797_v8 = vpack.c.bf16 %v1726_v26, %v1726_v26  ;;  %v8200_v5 = vld [vmem:[%s10382_s7 + $0x148] sm:$0xff]  }
 0xa14   :  { %v1796_v9 = vpack.c.bf16 %v1722_v6, %v1722_v6  ;;  %v1798_v10 = vpack.c.bf16 %v1730_v21, %v1730_v21  ;;  %v8201_v26 = vld [vmem:[%s10382_s7 + $0x1c8] sm:$0xff]  }
 0xa15   :  { %6726 = vmatmul.mubr.msk.bf16.vlgmr.msra.gmra.mrb[24].mxu0 %vm158_vm2, %v8861_v49  ;;  %6727 = vmatmul.mubr.msk.bf16.vlgmr.msra.gmra.mrb[24].mxu1 %vm158_vm2, %v8861_v49 }
 0xa16   :  { %1610 = vmatpush1.bf16.msra.mxu0 %v6702_v19  ;;  %1653 = vmatpush1.bf16.msra.mxu1 %v6704_v20  ;;  %v1812_v19 = vpack.i.b16 %v1795_v7, %v1795_v7  ;;  %v1826_v20 = vpack.i.b16 %v1797_v8, %v1797_v8 }
 0xa17   :  { %1611 = vmatprep.subr.bf16.mxu0 %v6719_v22  ;;  %1654 = vmatprep.subr.bf16.mxu1 %v6721_v23  ;;  %v1819_v22 = vpack.i.b16 %v1796_v9, %v1796_v9  ;;  %v1833_v23 = vpack.i.b16 %v1798_v10, %v1798_v10 }
 0xa18   :  { %1641 = vmatprep.mubr.bf16.mxu0 %v8547_v14  ;;  %1684 = vmatprep.mubr.bf16.mxu1 %v8547_v14 }
 0xa1a   :  { %1612 = vmatpush1.bf16.msra.mxu0 %v6718_v25  ;;  %1655 = vmatpush1.bf16.msra.mxu1 %v6720_v27  ;;  %v1738_v25 = vrot.slane %v9038_v4, %v9049_v13  ;;  %v1746_v27 = vrot.slane %v9038_v4, %v9052_v15 }
 0xa1b   :  { %7396 = vmatprep.subr.bf16.mxu0 %v8164_v28  ;;  %7418 = vmatprep.subr.bf16.mxu1 %v8165_v29 }
 0xa1d   :  { %6728 = vmatmul.mubr.msk.bf16.vlgmr.msra.gmra.mrb[28].mxu0 %vm158_vm2, %v8861_v49  ;;  %6729 = vmatmul.mubr.msk.bf16.vlgmr.msra.gmra.mrb[28].mxu1 %vm158_vm2, %v8861_v49  ;;  %v8178_v49 = vld [vmem:[%s10382_s7 + $0x18] sm:$0xff]  }
 0xa1e   :  { %7397 = vmatpush3.bf16.msra.mxu0 %v8166_v34  ;;  %7419 = vmatpush3.bf16.msra.mxu1 %v8167_v30 }
 0xa1f   :  { %7398 = vmatprep.subr.bf16.mxu0 %v8168_v31  ;;  %7420 = vmatprep.subr.bf16.mxu1 %v8169_v37  ;;  %v1817_v31 = vrot.slane %v1812_v19, %v8636_v17  ;;  %v1831_v37 = vrot.slane %v1826_v20, %v8636_v17  ;;  %v9093_v19 = vsub.s32 6, %v8633_v16 }
 0xa22   :  { %7399 = vmatpush3.bf16.msra.mxu0 %v8170_v38  ;;  %7421 = vmatpush3.bf16.msra.mxu1 %v8171_v39 }
 0xa23   :  { %7400 = vmatprep.subr.bf16.mxu0 %v8172_v40  ;;  %7422 = vmatprep.subr.bf16.mxu1 %v8173_v41  ;;  %v1824_v40 = vrot.slane %v1819_v22, %v8636_v17  ;;  %v1838_v41 = vrot.slane %v1833_v23, %v8636_v17 }
 0xa26   :  { %7401 = vmatpush3.bf16.msra.mxu0 %v8174_v42  ;;  %7423 = vmatpush3.bf16.msra.mxu1 %v8175_v43  ;;  %v1800_v42 = vpack.c.bf16 %v1738_v25, %v1738_v25  ;;  %v1802_v43 = vpack.c.bf16 %v1746_v27, %v1746_v27  ;;  %v8202_v27 = vld [vmem:[%s10382_s7 + $0x108] sm:$0xff]  }
 0xa27   :  { %7402 = vmatprep.subr.bf16.mxu0 %v8176_v45  ;;  %7424 = vmatprep.subr.bf16.mxu1 %v8177_v46 }
 0xa2a   :  { %7403 = vmatpush3.bf16.msra.mxu0 %v8178_v49  ;;  %7425 = vmatpush3.bf16.msra.mxu1 %v8179_v51 }
 0xa2b   :  { %7404 = vmatprep.subr.bf16.mxu0 %v8180_v52  ;;  %7426 = vmatprep.subr.bf16.mxu1 %v8181_v53 }
 0xa2e   :  { %7405 = vmatpush3.bf16.msra.mxu0 %v8182_v54  ;;  %7427 = vmatpush3.bf16.msra.mxu1 %v8183_v55 }
 0xa2f   :  { %7406 = vmatprep.subr.bf16.mxu0 %v8184_v56  ;;  %7428 = vmatprep.subr.bf16.mxu1 %v8185_v57 }
 0xa32   :  { %7407 = vmatpush3.bf16.msra.mxu0 %v8186_v11  ;;  %7429 = vmatpush3.bf16.msra.mxu1 %v8187_v12  ;;  %v1847_v11 = vpack.i.b16 %v1800_v42, %v1800_v42  ;;  %v1861_v12 = vpack.i.b16 %v1802_v43, %v1802_v43  ;;  %v8206_v43 = vld [vmem:[%s10382_s7 + $0x110] sm:$0xff]  }
 0xa33   :  { %7408 = vmatprep.subr.bf16.mxu0 %v8188_v58  ;;  %7430 = vmatprep.subr.bf16.mxu1 %v8189_v59 }
 0xa34   :  { %v1852_v7 = vrot.slane %v1847_v11, %v8636_v17  ;;  %v1866_v8 = vrot.slane %v1861_v12, %v8636_v17 }
 0xa36   :  { %7409 = vmatpush3.bf16.msra.mxu0 %v8190_v60  ;;  %7431 = vmatpush3.bf16.msra.mxu1 %v8191_v61 }
 0xa37   :  { %7410 = vmatprep.subr.bf16.mxu0 %v8192_v62  ;;  %7432 = vmatprep.subr.bf16.mxu1 %v8193_v63  ;;  %v8198_v62 = vld [vmem:[%s10382_s7 + $0x100] sm:$0xff]  }
 0xa38   :  { %v8199_v63 = vld [vmem:[%s10382_s7 + $0x180] sm:$0xff]  }
 0xa3a   :  { %7411 = vmatpush3.bf16.msra.mxu0 %v8194_v0  ;;  %7433 = vmatpush3.bf16.msra.mxu1 %v8195_v24 }
 0xa3b   :  { %7440 = vmatprep.subr.bf16.mxu0 %v8196_v2  ;;  %7462 = vmatprep.subr.bf16.mxu1 %v8197_v3 }
 0xad8   :  { %v1385_v28 = vpop.f32.mrb[16].mxu0  ;;  %v1428_v29 = vpop.f32.mrb[16].mxu1 }
 0xad9   :  { %v1387_v34 = vpop.f32.mrb[17].mxu0  ;;  %v1430_v30 = vpop.f32.mrb[17].mxu1 }
 0xada   :  { %v1389_v38 = vpop.f32.mrb[18].mxu0  ;;  %v1432_v39 = vpop.f32.mrb[18].mxu1 }
 0xadb   :  { %v1695_v45 = vpack.c.bf16 %v1389_v38, %v1385_v28  ;;  %v1697_v46 = vpack.c.bf16 %v1432_v39, %v1428_v29  ;;  %v1391_v49 = vpop.f32.mrb[19].mxu0  ;;  %v1434_v51 = vpop.f32.mrb[19].mxu1  ;;  %v8203_v28 = vld [vmem:[%s10382_s7 + $0x188] sm:$0xff]  }
 0xadc   :  { %v1696_v52 = vpack.c.bf16 %v1391_v49, %v1387_v34  ;;  %v1698_v53 = vpack.c.bf16 %v1434_v51, %v1430_v30  ;;  %v9104_v29 = vld [vmem:[%s10381_s6 + $0x8] sm:$0xff]  ;;  %v8204_v34 = vld [vmem:[%s10382_s7 + $0x150] sm:$0xff]  }
 0xadd   :  { %v1923_v54 = vadd.bf16 %v1817_v31, %v1695_v45  ;;  %v1925_v55 = vadd.bf16 %v1831_v37, %v1697_v46  ;;  %v8205_v30 = vld [vmem:[%s10382_s7 + $0x1d0] sm:$0xff]   ;;  %v1774_v31 = vrot.slane %v9104_v29, %v9093_v19  ;;  %v9127_v46 = vsub.s32 4, %v8633_v16 }
 0xade   :  { %v1924_v56 = vadd.bf16 %v1824_v40, %v1696_v52  ;;  %v1926_v57 = vadd.bf16 %v1838_v41, %v1698_v53  ;;  %v8207_v45 = vld [vmem:[%s10382_s7 + $0x190] sm:$0xff]   ;;  %v8208_v52 = vld [vmem:[%s10382_s7 + $0x158] sm:$0xff]  }
 0xadf   :  { %v1939_v0 = vmax.bf16 %v8547_v14, %v1923_v54  ;;  %v1941_v24 = vmax.bf16 %v8547_v14, %v1925_v55  ;;  %v8209_v53 = vld [vmem:[%s10382_s7 + $0x1d8] sm:$0xff]   ;;  %v1809_v54 = vpack.c.bf16 %v1774_v31, %v1774_v31  ;;  %v8216_v31 = vld [vmem:[%s10382_s7 + $0x168] sm:$0xff]  }
 0xae0   :  { %v9062_v58 = vpop.f32.mrb[20].mxu0  ;;  %v9064_v59 = vpop.f32.mrb[20].mxu1  ;;  %v1940_v60 = vmax.bf16 %v8547_v14, %v1924_v56  ;;  %v1942_v61 = vmax.bf16 %v8547_v14, %v1926_v57 }
 0xae1   :  { %v1473_v2 = vpop.f32.mrb[21].mxu0  ;;  %v1516_v3 = vpop.f32.mrb[21].mxu1 }
 0xae2   :  { %v9082_v6 = vpop.f32.mrb[22].mxu0  ;;  %v9084_v21 = vpop.f32.mrb[22].mxu1  ;;  %3015 = vmatprep.mubr.bf16.mxu0 %v1940_v60  ;;  %3056 = vmatprep.mubr.bf16.mxu1 %v1942_v61 }
 0xae3   :  { %v1699_v9 = vpack.c.bf16 %v9082_v6, %v9062_v58  ;;  %v1701_v10 = vpack.c.bf16 %v9084_v21, %v9064_v59  ;;  %v1477_v20 = vpop.f32.mrb[23].mxu0  ;;  %v1520_v22 = vpop.f32.mrb[23].mxu1  ;;  %3016 = vmatmul.mubr.bf16.vlgmr.msra.gmra.mrb[32].mxu0 %v1939_v0  ;;  %3057 = vmatmul.mubr.bf16.vlgmr.msra.gmra.mrb[32].mxu1 %v1941_v24  ;;  %v8211_v0 = vld [vmem:[%s10382_s7 + $0x198] sm:$0xff]   ;;  %v1734_v24 = vrot.slane %v9038_v4, %v9127_v46  ;;  %v8230_v59 = vld [vmem:[%s10382_s7 + $0x200] sm:$0xff]  }
 0xae4   :  { %v1700_v23 = vpack.c.bf16 %v1477_v20, %v1473_v2  ;;  %v1702_v25 = vpack.c.bf16 %v1520_v22, %v1516_v3  ;;  %7441 = vmatpush3.bf16.msra.mxu0 %v8198_v62  ;;  %7463 = vmatpush3.bf16.msra.mxu1 %v8199_v63  ;;  %v8210_v63 = vld [vmem:[%s10382_s7 + $0x118] sm:$0xff]   ;;  %v1742_v2 = vrot.slane %v9038_v4, %v9093_v19  ;;  %v8214_v22 = vld [vmem:[%s10382_s7 + $0x120] sm:$0xff]  }
 0xae5   :  { %7442 = vmatprep.subr.bf16.mxu0 %v8200_v5  ;;  %7464 = vmatprep.subr.bf16.mxu1 %v8201_v26  ;;  %v1910_v3 = vpack.i.b16 %v1809_v54, %v1809_v54  ;;  %v8212_v5 = vld [vmem:[%s10382_s7 + $0x160] sm:$0xff]  }
 0xae6   :  { %v1928_v37 = vadd.bf16 %v1852_v7, %v1700_v23  ;;  %v1930_v38 = vadd.bf16 %v1866_v8, %v1702_v25  ;;  %v8213_v26 = vld [vmem:[%s10382_s7 + $0x1e0] sm:$0xff]   ;;  %v1754_v7 = vrot.slane %v9104_v29, %v8785_v36  ;;  %v1762_v8 = vrot.slane %v9104_v29, %v8839_v35 }
 0xae7   :  { %v8215_v23 = vld [vmem:[%s10382_s7 + $0x1a0] sm:$0xff]   ;;  %v1799_v25 = vpack.c.bf16 %v1734_v24, %v1734_v24  ;;  %v8218_v24 = vld [vmem:[%s10382_s7 + $0x128] sm:$0xff]  }
 0xae8   :  { %7443 = vmatpush3.bf16.msra.mxu0 %v8202_v27  ;;  %7465 = vmatpush3.bf16.msra.mxu1 %v8203_v28  ;;  %v9114_v39 = vpop.f32.mrb[24].mxu0  ;;  %v9116_v40 = vpop.f32.mrb[24].mxu1  ;;  %v1944_v41 = vmax.bf16 %v8547_v14, %v1928_v37  ;;  %v1946_v42 = vmax.bf16 %v8547_v14, %v1930_v38  ;;  %v1801_v27 = vpack.c.bf16 %v1742_v2, %v1742_v2  ;;  %v8217_v37 = vld [vmem:[%s10382_s7 + $0x1e8] sm:$0xff]  }
 0xae9   :  { %v9129_v49 = vpop.f32.mrb[25].mxu0  ;;  %v9131_v51 = vpop.f32.mrb[25].mxu1  ;;  %7444 = vmatprep.subr.bf16.mxu0 %v8204_v34  ;;  %7466 = vmatprep.subr.bf16.mxu1 %v8205_v30  ;;  %v1915_v30 = vrot.slane %v1910_v3, %v8636_v17  ;;  %v1804_v38 = vpack.c.bf16 %v1754_v7, %v1754_v7  ;;  %v8219_v2 = vld [vmem:[%s10382_s7 + $0x1a8] sm:$0xff]   ;;  %v1840_v3 = vpack.i.b16 %v1799_v25, %v1799_v25  ;;  %v8220_v7 = vld [vmem:[%s10382_s7 + $0x170] sm:$0xff]  }
 0xaea   :  { %v9139_v55 = vpop.f32.mrb[26].mxu0  ;;  %v9141_v56 = vpop.f32.mrb[26].mxu1  ;;  %3097 = vmatprep.mubr.bf16.mxu0 %v1944_v41  ;;  %3138 = vmatprep.mubr.bf16.mxu1 %v1946_v42  ;;  %v8223_v25 = vld [vmem:[%s10382_s7 + $0x1b0] sm:$0xff]  }
 0xaeb   :  { %v1703_v57 = vpack.c.bf16 %v9139_v55, %v9114_v39  ;;  %v1705_v11 = vpack.c.bf16 %v9141_v56, %v9116_v40  ;;  %v9147_v12 = vpop.f32.mrb[27].mxu0  ;;  %v9149_v60 = vpop.f32.mrb[27].mxu1  ;;  %v8261_v39 = vld [vmem:[%s10382_s7 + $0x3c0] sm:$0xff]  }
 0xaec   :  { %v1704_v61 = vpack.c.bf16 %v9147_v12, %v9129_v49  ;;  %v1706_v62 = vpack.c.bf16 %v9149_v60, %v9131_v51  ;;  %7445 = vmatpush3.bf16.msra.mxu0 %v8206_v43  ;;  %7467 = vmatpush3.bf16.msra.mxu1 %v8207_v45  ;;  %v1806_v43 = vpack.c.bf16 %v1762_v8, %v1762_v8  ;;  %v8221_v8 = vld [vmem:[%s10382_s7 + $0x1f0] sm:$0xff]   ;;  %v8232_v49 = vld [vmem:[%s10382_s7 + $0x248] sm:$0xff]   ;;  %v8263_v56 = vld [vmem:[%s10382_s7 + $0x380] sm:$0xff]  }
 0xaed   :  { %7446 = vmatprep.subr.bf16.mxu0 %v8208_v52  ;;  %7468 = vmatprep.subr.bf16.mxu1 %v8209_v53  ;;  %v8233_v51 = vld [vmem:[%s10382_s7 + $0x2c8] sm:$0xff]  }
 0xaee   :  { %v8234_v60 = vld [vmem:[%s10382_s7 + $0x208] sm:$0xff]  }
 0xaf0   :  { %7447 = vmatpush3.bf16.msra.mxu0 %v8210_v63  ;;  %7469 = vmatpush3.bf16.msra.mxu1 %v8211_v0  ;;  %v9175_v4 = vpop.f32.mrb[28].mxu0  ;;  %v1686_v20 = vpop.f32.mrb[28].mxu1 }
 0xaf1   :  { %v9183_v28 = vpop.f32.mrb[29].mxu0  ;;  %v9185_v34 = vpop.f32.mrb[29].mxu1  ;;  %7448 = vmatprep.subr.bf16.mxu0 %v8212_v5  ;;  %7470 = vmatprep.subr.bf16.mxu1 %v8213_v26  ;;  %v1854_v5 = vpack.i.b16 %v1801_v27, %v1801_v27  ;;  %v1845_v27 = vrot.slane %v1840_v3, %v8636_v17  ;;  %v8228_v3 = vld [vmem:[%s10382_s7 + $0x240] sm:$0xff]  }
 0xaf2   :  { %v9194_v41 = vpop.f32.mrb[30].mxu0  ;;  %v1690_v42 = vpop.f32.mrb[30].mxu1 }
 0xaf3   :  { %v1707_v45 = vpack.c.bf16 %v9194_v41, %v9175_v4  ;;  %v1709_v52 = vpack.c.bf16 %v1690_v42, %v1686_v20  ;;  %v9198_v53 = vpop.f32.mrb[31].mxu0  ;;  %v9200_v54 = vpop.f32.mrb[31].mxu1  ;;  %v1875_v20 = vpack.i.b16 %v1804_v38, %v1804_v38 }
 0xaf4   :  { %v1708_v63 = vpack.c.bf16 %v9198_v53, %v9183_v28  ;;  %v1710_v0 = vpack.c.bf16 %v9200_v54, %v9185_v34  ;;  %7449 = vmatpush3.bf16.msra.mxu0 %v8214_v22  ;;  %7471 = vmatpush3.bf16.msra.mxu1 %v8215_v23  ;;  %v1889_v22 = vpack.i.b16 %v1806_v43, %v1806_v43  ;;  %v8222_v23 = vld [vmem:[%s10382_s7 + $0x130] sm:$0xff]   ;;  %v8226_v43 = vld [vmem:[%s10382_s7 + $0x138] sm:$0xff]   ;;  %v8264_v28 = vld [vmem:[%s10382_s7 + $0x348] sm:$0xff]  }
 0xaf5   :  { %v9212_v26 = vadd.bf16 %v1915_v30, %v1709_v52  ;;  %7450 = vmatprep.subr.bf16.mxu0 %v8216_v31  ;;  %7472 = vmatprep.subr.bf16.mxu1 %v8217_v37  ;;  %v1859_v30 = vrot.slane %v1854_v5, %v8636_v17  ;;  %v8224_v31 = vld [vmem:[%s10382_s7 + $0x178] sm:$0xff]   ;;  %v1880_v38 = vrot.slane %v1875_v20, %v8636_v17  ;;  %v8229_v5 = vld [vmem:[%s10382_s7 + $0x2c0] sm:$0xff]   ;;  %v8238_v20 = vld [vmem:[%s10382_s7 + $0x210] sm:$0xff]  }
 0xaf6   :  { %v8225_v37 = vld [vmem:[%s10382_s7 + $0x1f8] sm:$0xff]   ;;  %v1894_v42 = vrot.slane %v1889_v22, %v8636_v17  ;;  %v8239_v22 = vld [vmem:[%s10382_s7 + $0x290] sm:$0xff]   ;;  %v8265_v53 = vld [vmem:[%s10382_s7 + $0x3c8] sm:$0xff]  }
 0xaf7   :  { %v8227_v52 = vld [vmem:[%s10382_s7 + $0x1b8] sm:$0xff]  }
 0xaf8   :  { %7451 = vmatpush3.bf16.msra.mxu0 %v8218_v24  ;;  %7473 = vmatpush3.bf16.msra.mxu1 %v8219_v2  ;;  %v1927_v24 = vadd.bf16 %v1845_v27, %v1699_v9  ;;  %v1929_v2 = vadd.bf16 %v1859_v30, %v1701_v10  ;;  %v1934_v58 = vadd.bf16 %v1894_v42, %v1706_v62  ;;  %v8231_v9 = vld [vmem:[%s10382_s7 + $0x280] sm:$0xff]   ;;  %v8236_v62 = vld [vmem:[%s10382_s7 + $0x250] sm:$0xff]   ;;  %v8242_v27 = vld [vmem:[%s10382_s7 + $0x218] sm:$0xff]  }
 0xaf9   :  { %7452 = vmatprep.subr.bf16.mxu0 %v8220_v7  ;;  %7474 = vmatprep.subr.bf16.mxu1 %v8221_v8  ;;  %v1932_v7 = vadd.bf16 %v1880_v38, %v1704_v61  ;;  %v8235_v61 = vld [vmem:[%s10382_s7 + $0x288] sm:$0xff]   ;;  %v8237_v8 = vld [vmem:[%s10382_s7 + $0x2d0] sm:$0xff]   ;;  %v1750_v30 = vrot.slane %v9104_v29, %v8636_v17  ;;  %v1758_v38 = vrot.slane %v9104_v29, %v8834_v33  ;;  %v8245_v42 = vld [vmem:[%s10382_s7 + $0x2e0] sm:$0xff]  }
 0xafa   :  { %v1943_v6 = vmax.bf16 %v8547_v14, %v1927_v24  ;;  %v1945_v21 = vmax.bf16 %v8547_v14, %v1929_v2  ;;  %v1950_v12 = vmax.bf16 %v8547_v14, %v1934_v58  ;;  %v8246_v24 = vld [vmem:[%s10382_s7 + $0x220] sm:$0xff]   ;;  %v8249_v58 = vld [vmem:[%s10382_s7 + $0x2e8] sm:$0xff]  }
 0xafb   :  { %v1948_v10 = vmax.bf16 %v8547_v14, %v1932_v7  ;;  %v1803_v2 = vpack.c.bf16 %v1750_v30, %v1750_v30  ;;  %v1805_v7 = vpack.c.bf16 %v1758_v38, %v1758_v38  ;;  %v8259_v38 = vld [vmem:[%s10382_s7 + $0x2b8] sm:$0xff]  }
 0xafc   :  { %7453 = vmatpush3.bf16.msra.mxu0 %v8222_v23  ;;  %7475 = vmatpush3.bf16.msra.mxu1 %v8223_v25  ;;  %v8240_v23 = vld [vmem:[%s10382_s7 + $0x258] sm:$0xff]  }
 0xafd   :  { %7454 = vmatprep.subr.bf16.mxu0 %v8224_v31  ;;  %7476 = vmatprep.subr.bf16.mxu1 %v8225_v37  ;;  %v8241_v25 = vld [vmem:[%s10382_s7 + $0x2d8] sm:$0xff]   ;;  %v8244_v37 = vld [vmem:[%s10382_s7 + $0x260] sm:$0xff]  }
 0xafe   :  { %v8243_v31 = vld [vmem:[%s10382_s7 + $0x298] sm:$0xff]  }
 0xb00   :  { %7455 = vmatpush3.bf16.msra.mxu0 %v8226_v43  ;;  %7477 = vmatpush3.bf16.msra.mxu1 %v8227_v52  ;;  %v1770_v43 = vrot.slane %v9104_v29, %v9049_v13  ;;  %v1778_v52 = vrot.slane %v9104_v29, %v9052_v15 }
 0xb01   :  { %7484 = vmatprep.subr.bf16.mxu0 %v8228_v3  ;;  %7506 = vmatprep.subr.bf16.mxu1 %v8229_v5  ;;  %v8247_v3 = vld [vmem:[%s10382_s7 + $0x2a0] sm:$0xff]   ;;  %v8248_v5 = vld [vmem:[%s10382_s7 + $0x268] sm:$0xff]  }
 0xb03   :  { %3098 = vmatmul.mubr.bf16.vlgmr.msra.gmra.mrb[36].mxu0 %v1943_v6  ;;  %3139 = vmatmul.mubr.bf16.vlgmr.msra.gmra.mrb[36].mxu1 %v1945_v21  ;;  %v1810_v6 = vpack.c.bf16 %v1778_v52, %v1778_v52  ;;  %v8250_v21 = vld [vmem:[%s10382_s7 + $0x228] sm:$0xff]   ;;  %v8262_v52 = vld [vmem:[%s10382_s7 + $0x300] sm:$0xff]  }
 0xb04   :  { %7485 = vmatpush3.bf16.msra.mxu0 %v8230_v59  ;;  %3179 = vmatprep.mubr.bf16.mxu0 %v1948_v10  ;;  %v1808_v59 = vpack.c.bf16 %v1770_v43, %v1770_v43  ;;  %v8251_v10 = vld [vmem:[%s10382_s7 + $0x2a8] sm:$0xff]  }
 0xb05   :  { %7507 = vmatpush3.bf16.msra.mxu1 %v8231_v9  ;;  %3220 = vmatprep.mubr.bf16.mxu1 %v1950_v12  ;;  %v1868_v9 = vpack.i.b16 %v1803_v2, %v1803_v2  ;;  %v8253_v12 = vld [vmem:[%s10382_s7 + $0x2f0] sm:$0xff]  }
 0xb06   :  { %7486 = vmatprep.subr.bf16.mxu0 %v8232_v49  ;;  %7508 = vmatprep.subr.bf16.mxu1 %v8233_v51  ;;  %v8252_v49 = vld [vmem:[%s10382_s7 + $0x270] sm:$0xff]   ;;  %v1882_v51 = vpack.i.b16 %v1805_v7, %v1805_v7  ;;  %v8272_v7 = vld [vmem:[%s10382_s7 + $0x358] sm:$0xff]  }
 0xb07   :  { %v8269_v2 = vld [vmem:[%s10382_s7 + $0x3d0] sm:$0xff]  }
 0xb08   :  { %7487 = vmatpush3.bf16.msra.mxu0 %v8234_v60  ;;  %v1903_v60 = vpack.i.b16 %v1808_v59, %v1808_v59  ;;  %v8274_v59 = vld [vmem:[%s10382_s7 + $0x318] sm:$0xff]  }
 0xb09   :  { %7509 = vmatpush3.bf16.msra.mxu1 %v8235_v61  ;;  %7488 = vmatprep.subr.bf16.mxu0 %v8236_v62  ;;  %v1917_v61 = vpack.i.b16 %v1810_v6, %v1810_v6  ;;  %v8254_v62 = vld [vmem:[%s10382_s7 + $0x230] sm:$0xff]   ;;  %v1766_v6 = vrot.slane %v9104_v29, %v9127_v46  ;;  %v8278_v29 = vld [vmem:[%s10382_s7 + $0x320] sm:$0xff]  }
 0xb0a   :  { %7510 = vmatprep.subr.bf16.mxu1 %v8237_v8  ;;  %v1873_v8 = vrot.slane %v1868_v9, %v8636_v17  ;;  %v8276_v9 = vld [vmem:[%s10382_s7 + $0x360] sm:$0xff]  }
 0xb0b   :  { %v1922_v30 = vrot.slane %v1917_v61, %v8636_v17  ;;  %v8282_v61 = vld [vmem:[%s10382_s7 + $0x328] sm:$0xff]  }
 0xb0c   :  { %7489 = vmatpush3.bf16.msra.mxu0 %v8238_v20  ;;  %v8255_v20 = vld [vmem:[%s10382_s7 + $0x2b0] sm:$0xff]  }
 0xb0d   :  { %7511 = vmatpush3.bf16.msra.mxu1 %v8239_v22  ;;  %7490 = vmatprep.subr.bf16.mxu0 %v8240_v23  ;;  %v8256_v22 = vld [vmem:[%s10382_s7 + $0x278] sm:$0xff]   ;;  %v1887_v23 = vrot.slane %v1882_v51, %v8636_v17  ;;  %v8279_v51 = vld [vmem:[%s10382_s7 + $0x3a0] sm:$0xff]  }
 0xb0e   :  { %7512 = vmatprep.subr.bf16.mxu1 %v8241_v25  ;;  %v8257_v25 = vld [vmem:[%s10382_s7 + $0x2f8] sm:$0xff]  }
 0xb0f   :  { %v1933_v43 = vadd.bf16 %v1887_v23, %v1705_v11  ;;  %v8286_v23 = vld [vmem:[%s10382_s7 + $0x330] sm:$0xff]  }
 0xb10   :  { %7491 = vmatpush3.bf16.msra.mxu0 %v8242_v27  ;;  %v1908_v27 = vrot.slane %v1903_v60, %v8636_v17  ;;  %v8281_v60 = vld [vmem:[%s10382_s7 + $0x3e8] sm:$0xff]  }
 0xb11   :  { %7513 = vmatpush3.bf16.msra.mxu1 %v8243_v31  ;;  %7492 = vmatprep.subr.bf16.mxu0 %v8244_v37  ;;  %v8258_v31 = vld [vmem:[%s10382_s7 + $0x238] sm:$0xff]   ;;  %v1931_v37 = vadd.bf16 %v1873_v8, %v1703_v57  ;;  %v1938_v57 = vadd.bf16 %v1922_v30, %v1710_v0  ;;  %v1949_v11 = vmax.bf16 %v8547_v14, %v1933_v43  ;;  %v8267_v0 = vld [vmem:[%s10382_s7 + $0x388] sm:$0xff]  }
 0xb12   :  { %7514 = vmatprep.subr.bf16.mxu1 %v8245_v42  ;;  %v8260_v42 = vld [vmem:[%s10382_s7 + $0x340] sm:$0xff]   ;;  %v1936_v55 = vadd.bf16 %v1908_v27, %v1708_v63  ;;  %v8266_v63 = vld [vmem:[%s10382_s7 + $0x308] sm:$0xff]   ;;  %v8287_v27 = vld [vmem:[%s10382_s7 + $0x3b0] sm:$0xff]  }
 0xb13   :  { %v1947_v40 = vmax.bf16 %v8547_v14, %v1931_v37  ;;  %v1954_v54 = vmax.bf16 %v8547_v14, %v1938_v57  ;;  %v8283_v8 = vld [vmem:[%s10382_s7 + $0x3a8] sm:$0xff]   ;;  %v8288_v30 = vld [vmem:[%s10382_s7 + $0x378] sm:$0xff]  }
 0xb14   :  { %7493 = vmatpush3.bf16.msra.mxu0 %v8246_v24  ;;  %v1952_v34 = vmax.bf16 %v8547_v14, %v1936_v55  ;;  %v8268_v24 = vld [vmem:[%s10382_s7 + $0x350] sm:$0xff]   ;;  %v8290_v37 = vld [vmem:[%s10382_s7 + $0x338] sm:$0xff]  }
 0xb15   :  { %7515 = vmatpush3.bf16.msra.mxu1 %v8247_v3  ;;  %7494 = vmatprep.subr.bf16.mxu0 %v8248_v5  ;;  %v8270_v3 = vld [vmem:[%s10382_s7 + $0x310] sm:$0xff]  }
 0xb16   :  { %7516 = vmatprep.subr.bf16.mxu1 %v8249_v58  ;;  %v8271_v5 = vld [vmem:[%s10382_s7 + $0x390] sm:$0xff]   ;;  %v8273_v58 = vld [vmem:[%s10382_s7 + $0x3d8] sm:$0xff]  }
 0xb18   :  { %7495 = vmatpush3.bf16.msra.mxu0 %v8250_v21  ;;  %v8275_v21 = vld [vmem:[%s10382_s7 + $0x398] sm:$0xff]  }
 0xb19   :  { %7517 = vmatpush3.bf16.msra.mxu1 %v8251_v10  ;;  %7496 = vmatprep.subr.bf16.mxu0 %v8252_v49  ;;  %v8277_v10 = vld [vmem:[%s10382_s7 + $0x3e0] sm:$0xff]   ;;  %v1807_v49 = vpack.c.bf16 %v1766_v6, %v1766_v6 }
 0xb1a   :  { %7518 = vmatprep.subr.bf16.mxu1 %v8253_v12  ;;  %v8280_v12 = vld [vmem:[%s10382_s7 + $0x368] sm:$0xff]  }
 0xb1c   :  { %7497 = vmatpush3.bf16.msra.mxu0 %v8254_v62  ;;  %v1896_v62 = vpack.i.b16 %v1807_v49, %v1807_v49 }
 0xb1d   :  { %7519 = vmatpush3.bf16.msra.mxu1 %v8255_v20  ;;  %7498 = vmatprep.subr.bf16.mxu0 %v8256_v22  ;;  %v8284_v20 = vld [vmem:[%s10382_s7 + $0x370] sm:$0xff]  }
 0xb1e   :  { %7520 = vmatprep.subr.bf16.mxu1 %v8257_v25  ;;  %v8285_v22 = vld [vmem:[%s10382_s7 + $0x3f0] sm:$0xff]   ;;  %v1901_v25 = vrot.slane %v1896_v62, %v8636_v17 }
 0xb20   :  { %7499 = vmatpush3.bf16.msra.mxu0 %v8258_v31  ;;  %v8289_v31 = vld [vmem:[%s10382_s7 + $0x3f8] sm:$0xff]  }
 0xb21   :  { %7521 = vmatpush3.bf16.msra.mxu1 %v8259_v38  ;;  %7528 = vmatprep.subr.bf16.mxu0 %v8260_v42  ;;  %v1935_v38 = vadd.bf16 %v1901_v25, %v1707_v45  ;;  %v8291_v42 = vld [vmem:[%s10382_s7 + $0x3b8] sm:$0xff]   ;;  %v9493_v45 = vld [vmem:[%s10383_s8] sm:$0x7f] }
 0xb22   :  { %7550 = vmatprep.subr.bf16.mxu1 %v8261_v39  ;;  %v1953_v39 = vmax.bf16 %v8547_v14, %v9212_v26  ;;  %v2214_v55 = vrot.slane %v9493_v45, %v9127_v46 }
 0xb23   :  { %3180 = vmatmul.mubr.bf16.vlgmr.msra.gmra.mrb[40].mxu0 %v1947_v40  ;;  %v1951_v43 = vmax.bf16 %v8547_v14, %v1935_v38 }
 0xb24   :  { %3221 = vmatmul.mubr.bf16.vlgmr.msra.gmra.mrb[40].mxu1 %v1949_v11  ;;  %7529 = vmatpush3.bf16.msra.mxu0 %v8262_v52 }
 0xb25   :  { %3261 = vmatprep.mubr.bf16.mxu0 %v1952_v34  ;;  %7551 = vmatpush3.bf16.msra.mxu1 %v8263_v56 }
 0xb26   :  { %3302 = vmatprep.mubr.bf16.mxu1 %v1954_v54  ;;  %7530 = vmatprep.subr.bf16.mxu0 %v8264_v28 }
 0xb27   :  { %7552 = vmatprep.subr.bf16.mxu1 %v8265_v53 }
 0xb28   :  { %7531 = vmatpush3.bf16.msra.mxu0 %v8266_v63 }
 0xb29   :  { %7553 = vmatpush3.bf16.msra.mxu1 %v8267_v0  ;;  %7532 = vmatprep.subr.bf16.mxu0 %v8268_v24 }
 0xb2a   :  { %7554 = vmatprep.subr.bf16.mxu1 %v8269_v2 }
 0xb2c   :  { %7533 = vmatpush3.bf16.msra.mxu0 %v8270_v3 }
 0xb2d   :  { %7555 = vmatpush3.bf16.msra.mxu1 %v8271_v5  ;;  %7534 = vmatprep.subr.bf16.mxu0 %v8272_v7 }
 0xb2e   :  { %7556 = vmatprep.subr.bf16.mxu1 %v8273_v58 }
 0xb30   :  { %7535 = vmatpush3.bf16.msra.mxu0 %v8274_v59 }
 0xb31   :  { %7557 = vmatpush3.bf16.msra.mxu1 %v8275_v21  ;;  %7536 = vmatprep.subr.bf16.mxu0 %v8276_v9 }
 0xb32   :  { %7558 = vmatprep.subr.bf16.mxu1 %v8277_v10 }
 0xb34   :  { %7537 = vmatpush3.bf16.msra.mxu0 %v8278_v29 }
 0xb35   :  { %7559 = vmatpush3.bf16.msra.mxu1 %v8279_v51  ;;  %7538 = vmatprep.subr.bf16.mxu0 %v8280_v12 }
 0xb36   :  { %7560 = vmatprep.subr.bf16.mxu1 %v8281_v60 }
 0xb38   :  { %7539 = vmatpush3.bf16.msra.mxu0 %v8282_v61 }
 0xb39   :  { %7561 = vmatpush3.bf16.msra.mxu1 %v8283_v8  ;;  %7540 = vmatprep.subr.bf16.mxu0 %v8284_v20 }
 0xb3a   :  { %7562 = vmatprep.subr.bf16.mxu1 %v8285_v22 }
 0xb3c   :  { %7541 = vmatpush3.bf16.msra.mxu0 %v8286_v23 }
 0xb3d   :  { %7563 = vmatpush3.bf16.msra.mxu1 %v8287_v27  ;;  %7542 = vmatprep.subr.bf16.mxu0 %v8288_v30 }
 0xb3e   :  { %7564 = vmatprep.subr.bf16.mxu1 %v8289_v31 }
 0xb40   :  { %7543 = vmatpush3.bf16.msra.mxu0 %v8290_v37 }
 0xb41   :  { %7565 = vmatpush3.bf16.msra.mxu1 %v8291_v42  ;;  %7867 = vmatprep.subr.bf16.mxu0 %v8530_v1 }
 0xb43   :  { %3262 = vmatmul.mubr.bf16.vlgmr.msra.gmra.mrb[44].mxu0 %v1951_v43 }
 0xb44   :  { %3303 = vmatmul.mubr.bf16.vlgmr.msra.gmra.mrb[44].mxu1 %v1953_v39  ;;  %7871 = vmatprep.mubr.msk.bf16.mxu0 %vm8531_vm1, %v8530_v1 }
 0xbb6   :  { %v7412_v4 = vpop.f32.mrb[32].mxu0  ;;  %v7434_v41 = vpop.f32.mrb[32].mxu1 }
 0xbb7   :  { %v7413_v57 = vpop.f32.mrb[33].mxu0  ;;  %v7435_v52 = vpop.f32.mrb[33].mxu1 }
 0xbb8   :  { %v7414_v40 = vadd.f32 %v7413_v57, %v7412_v4  ;;  %v7436_v56 = vadd.f32 %v7435_v52, %v7434_v41  ;;  %v7415_v26 = vpop.f32.mrb[34].mxu0  ;;  %v7437_v11 = vpop.f32.mrb[34].mxu1 }
 0xbb9   :  { %v7416_v28 = vpop.f32.mrb[35].mxu0  ;;  %v7438_v34 = vpop.f32.mrb[35].mxu1 }
 0xbba   :  { %v3018_v53 = vadd.f32 %v7414_v40, %v2214_v55  ;;  %v7417_v54 = vadd.f32 %v7416_v28, %v7415_v26  ;;  %v7439_v63 = vadd.f32 %v7438_v34, %v7437_v11 }
 0xbbc   :  { %v3059_v0 = vadd.f32 %v7436_v56, %v3018_v53  ;;  %v3021_v24 = vadd.f32 %v7417_v54, %v2214_v55 }
 0xbbe   :  { %v3062_v2 = vadd.f32 %v7439_v63, %v3021_v24 }
 0xbd6   :  { %v7456_v3 = vpop.f32.mrb[36].mxu0  ;;  %v7478_v5 = vpop.f32.mrb[36].mxu1 }
 0xbd7   :  { %v7457_v7 = vpop.f32.mrb[37].mxu0  ;;  %v7479_v58 = vpop.f32.mrb[37].mxu1 }
 0xbd8   :  { %v7458_v59 = vadd.f32 %v7457_v7, %v7456_v3  ;;  %v7480_v6 = vadd.f32 %v7479_v58, %v7478_v5  ;;  %v7459_v21 = vpop.f32.mrb[38].mxu0  ;;  %v7481_v9 = vpop.f32.mrb[38].mxu1 }
 0xbd9   :  { %v7460_v10 = vpop.f32.mrb[39].mxu0  ;;  %v7482_v29 = vpop.f32.mrb[39].mxu1 }
 0xbda   :  { %v3100_v49 = vadd.f32 %v7458_v59, %v3059_v0  ;;  %v7461_v51 = vadd.f32 %v7460_v10, %v7459_v21  ;;  %v7483_v12 = vadd.f32 %v7482_v29, %v7481_v9 }
 0xbdc   :  { %v3141_v60 = vadd.f32 %v7480_v6, %v3100_v49  ;;  %v3103_v61 = vadd.f32 %v7461_v51, %v3062_v2 }
 0xbde   :  { %v3144_v62 = vadd.f32 %v7483_v12, %v3103_v61 }
 0xbf6   :  { %v7500_v8 = vpop.f32.mrb[40].mxu0 }
 0xbf7   :  { %v7522_v20 = vpop.f32.mrb[40].mxu1  ;;  %v7501_v22 = vpop.f32.mrb[41].mxu0 }
 0xbf8   :  { %v7502_v23 = vadd.f32 %v7501_v22, %v7500_v8  ;;  %v7523_v25 = vpop.f32.mrb[41].mxu1  ;;  %v7503_v27 = vpop.f32.mrb[42].mxu0 }
 0xbf9   :  { %v7524_v30 = vadd.f32 %v7523_v25, %v7522_v20  ;;  %v7525_v31 = vpop.f32.mrb[42].mxu1  ;;  %v7504_v37 = vpop.f32.mrb[43].mxu0 }
 0xbfa   :  { %v3182_v38 = vadd.f32 %v7502_v23, %v3141_v60  ;;  %v7505_v42 = vadd.f32 %v7504_v37, %v7503_v27  ;;  %v7526_v43 = vpop.f32.mrb[43].mxu1 }
 0xbfb   :  { %v7527_v39 = vadd.f32 %v7526_v43, %v7525_v31 }
 0xbfc   :  { %v3223_v4 = vadd.f32 %v7524_v30, %v3182_v38  ;;  %v3185_v41 = vadd.f32 %v7505_v42, %v3144_v62  ;;  %v8293_v62 = vld [vmem:[%s10378_s3 + $0x18] sm:$0xff]   ;;  %v3342_v30 = vrot.slane %v9493_v45, %v9049_v13 }
 0xbfe   :  { %v3226_v55 = vadd.f32 %v7527_v39, %v3185_v41  ;;  %v3348_v39 = vrot.slane %v9493_v45, %v9093_v19 }
 0xc16   :  { %v7544_v57 = vpop.f32.mrb[44].mxu0 }
 0xc17   :  { %v7566_v52 = vpop.f32.mrb[44].mxu1  ;;  %v7545_v40 = vpop.f32.mrb[45].mxu0 }
 0xc18   :  { %v7546_v56 = vadd.f32 %v7545_v40, %v7544_v57  ;;  %v7567_v26 = vpop.f32.mrb[45].mxu1  ;;  %v7547_v11 = vpop.f32.mrb[46].mxu0 }
 0xc19   :  { %v7568_v28 = vadd.f32 %v7567_v26, %v7566_v52  ;;  %v7569_v34 = vpop.f32.mrb[46].mxu1  ;;  %v7548_v53 = vpop.f32.mrb[47].mxu0  ;;  %v9524_v52 = vld [vmem:[%s10383_s8 + $0x8] sm:$0x7f] }
 0xc1a   :  { %v3264_v54 = vadd.f32 %v7546_v56, %v3223_v4  ;;  %v7549_v63 = vadd.f32 %v7548_v53, %v7547_v11  ;;  %v7570_v0 = vpop.f32.mrb[47].mxu1  ;;  %v3362_v40 = vrot.slane %v9524_v52, %v8636_v17 }
 0xc1b   :  { %v7571_v24 = vadd.f32 %v7570_v0, %v7569_v34 }
 0xc1c   :  { %v3305_v2 = vadd.f32 %v7568_v28, %v3264_v54  ;;  %v3267_v3 = vadd.f32 %v7549_v63, %v3226_v55 }
 0xc1e   :  { %v3308_v5 = vadd.f32 %v7571_v24, %v3267_v3  ;;  %v3311_v7 = vadd.f32 %v3305_v2, %v8855_v18 }
 0xc20   :  { %v3313_v58 = vsel %vm158_vm2, %v3311_v7, 0.0  ;;  %v3312_v59 = vadd.f32 %v3308_v5, %v8857_v48  ;;  %v8292_v48 = vld [vmem:[%s10378_s3 + $0x10] sm:$0xff]  }
 0xc21   :  { %3314 = vadd.xlane.f32.xlu0 %v3313_v58  ;;  %7868 = vmatpush3.bf16.msra.mxu0 %v8292_v48 }
 0xc22   :  { %v3316_v6 = vsel %vm158_vm2, %v3312_v59, 0.0  ;;  %7869 = vmatprep.subr.bf16.mxu0 %v8530_v1 }
 0xc23   :  { %3317 = vadd.xlane.f32.xlu1 %v3316_v6 }
 0xc25   :  { %7870 = vmatpush3.bf16.msra.mxu0 %v8293_v62 }
 0xcae   :  { %v3315_v21 = vpop.xlane.xlu0 %3314 }
 0xcaf   :  { %v3319_v9 = vmul.f32 0.03125, %v3315_v21 }
 0xcb0   :  { %v3318_v10 = vpop.xlane.xlu1 %3317 }
 0xcb1   :  { %v3321_v29 = vsub.f32 %v3311_v7, %v3319_v9  ;;  %v3320_v49 = vmul.f32 0.03125, %v3318_v10 }
 0xcb3   :  { %v3322_v51 = vsub.f32 %v3312_v59, %v3320_v49  ;;  %v3323_v12 = vmul.f32 %v3321_v29, %v3321_v29 }
 0xcb5   :  { %v3325_v60 = vsel %vm158_vm2, %v3323_v12, 0.0  ;;  %v3324_v61 = vmul.f32 %v3322_v51, %v3322_v51 }
 0xcb6   :  { %3326 = vadd.xlane.f32.xlu0 %v3325_v60 }
 0xcb7   :  { %v3328_v18 = vsel %vm158_vm2, %v3324_v61, 0.0 }
 0xcb8   :  { %3329 = vadd.xlane.f32.xlu1 %v3328_v18 }
 0xd43   :  { %v3327_v8 = vpop.xlane.xlu0 %3326 }
 0xd44   :  { %v3331_v20 = vmul.f32 0.03125, %v3327_v8 }
 0xd45   :  { %v3330_v22 = vpop.xlane.xlu1 %3329 }
 0xd46   :  { %v3333_v23 = vadd.f32 1e-05, %v3331_v20  ;;  %v3332_v25 = vmul.f32 0.03125, %v3330_v22 }
 0xd48   :  { %8460 = vrsqrt.f32 %v3333_v23  ;;  %v3334_v27 = vadd.f32 1e-05, %v3332_v25 }
 0xd4a   :  { %8462 = vrsqrt.f32 %v3334_v27 }
 0xd52   :  { %v8461_v31 = vpop.eup %8460 }
 0xd53   :  { %v3337_v37 = vmul.f32 %v8461_v31, %v3321_v29 }
 0xd54   :  { %v8463_v38 = vpop.eup %8462 }
 0xd55   :  { %v3343_v42 = vmul.f32 %v3342_v30, %v3337_v37  ;;  %v3338_v43 = vmul.f32 %v8463_v38, %v3322_v51 }
 0xd57   :  { %v3344_v4 = vmul.f32 %v3342_v30, %v3338_v43  ;;  %v9514_v41 = vadd.f32 %v3348_v39, %v3343_v42 }
 0xd59   :  { %v9516_v55 = vadd.f32 %v3348_v39, %v3344_v4 }
 0xd5b   :  { %v3353_v57 = vpack.c.bf16 %v9516_v55, %v9514_v41 }
 0xd5d   :  { %7872 = vmatmul.mubr.msk.bf16.vlgmr.msra.gmra.mrb[48].mxu0 %vm158_vm2, %v3353_v57 }
 0xe30   :  { %v3412_v56 = vpop.f32.mrb[48].mxu0 }
 0xe31   :  { %v9528_v45 = vadd.f32 %v3412_v56, %v3362_v40  ;;  %v7873_v26 = vpop.f32.mrb[49].mxu0 }
 0xe32   :  { %v3415_v11 = vpop.f32.mrb[50].mxu0 }
 0xe33   :  { %v9530_v28 = vadd.f32 %v3415_v11, %v3362_v40  ;;  %v7874_v34 = vpop.f32.mrb[51].mxu0  ;;  %7879 = vmatprep.mubr.msk.f32.mxu1 %vm209_vm3, %v9528_v45 }
 0xe35   :  { %v9536_v53 = vpack.i.bf16 %v9530_v28, %v9528_v45 }
 0xe37   :  { %8110 = vrot.lane.b32.xlu1 %v9536_v53, %s8536_s24  ;;  %8105 = vrot.lane.b32.xlu0 %v9536_v53, %s8534_s22 }
 0xe3b   :  { %3621 = vrot.lane.b32.xlu1 %v9528_v45, %s8532_s20  ;;  %3623 = vrot.lane.b32.xlu0 %v9530_v28, %s8532_s20 }
 0xea9   :  { %v8111_v54 = vpop.permute.xlu1 %8110  ;;  %v8106_v63 = vpop.permute.xlu0 %8105 }
 0xeaa   :  { %v8113_v0 = vunpack.i.h.bf16 %v8111_v54  ;;  %v8112_v24 = vunpack.i.l.bf16 %v8111_v54  ;;  %v8108_v2 = vunpack.i.h.bf16 %v8106_v63  ;;  %v8107_v3 = vunpack.i.l.bf16 %v8106_v63 }
 0xeac   :  { %v7986_v5 = vpack.c.bf16 %v8108_v2, %v8107_v3  ;;  %v7996_v7 = vpack.c.bf16 %v8113_v0, %v8112_v24 }
 0xead   :  { %v3622_v58 = vpop.permute.xlu1 %3621  ;;  %v3624_v59 = vpop.permute.xlu0 %3623 }
 0xeae   :  { %7988 = vmatprep.subr.msk.bf16.mxu1 %vm8672_vm4, %v7986_v5 }
 0xeaf   :  { %7991 = vmatpush3.bf16.xpose.msk.msra.mxu1 %vm8672_vm4, %v7986_v5 }
 0xeb0   :  { %7998 = vmatprep.subr.msk.bf16.mxu1 %vm8672_vm4, %v7996_v7 }
 0xeb6   :  { %7880 = vmatmul.mubr.msk.f32.vlgmr.msra.gmra.mrb[10].mxu1 %vm209_vm3, %v9530_v28 }
 0xeb7   :  { %8001 = vmatpush3.bf16.xpose.msk.msra.mxu1 %vm8672_vm4, %v7996_v7  ;;  %7893 = vmatprep.mubr.msk.f32.mxu1 %vm209_vm3, %v3622_v58 }
 0xebe   :  { %7894 = vmatmul.mubr.msk.f32.vlgmr.msra.gmra.mrb[48].mxu1 %vm209_vm3, %v3624_v59 }
 0xf89   :  { %v7881_v6 = vpop.f32.mrb[10].mxu1 }
 0xf8a   :  { %v3509_v21 = vmul.f32 0.35355338, %v7881_v6  ;;  %v3499_v9 = vpop.f32.mrb[11].mxu1 }
 0xf8b   :  { %v3508_v10 = vmul.f32 0.35355338, %v3499_v9 }
 0xf8c   :  { %v3511_v29 = vadd.f32 %v3509_v21, %v8698_v47 }
 0xf8d   :  { %v3510_v49 = vadd.f32 %v3508_v10, %v8700_v50 }
 0xf8e   :  { %v3515_v51 = vsel %vm91_vm0, %v3511_v29, -inf }
 0xf8f   :  { %3516 = vmax.xlane.f32.xlu0 %v3515_v51  ;;  %v3512_v12 = vsel %vm91_vm0, %v3510_v49, -inf }
 0xf90   :  { %3513 = vmax.xlane.f32.xlu1 %v3512_v12 }
 0xf91   :  { %v7895_v60 = vpop.f32.mrb[48].mxu1 }
 0xf92   :  { %v3713_v61 = vmul.f32 0.35355338, %v7895_v60  ;;  %v3703_v18 = vpop.f32.mrb[49].mxu1 }
 0xf93   :  { %v3712_v48 = vmul.f32 0.35355338, %v3703_v18 }
 0xf94   :  { %v3715_v62 = vadd.f32 %v3713_v61, %v8698_v47 }
 0xf95   :  { %v3714_v8 = vadd.f32 %v3712_v48, %v8700_v50 }
 0xf96   :  { %v3719_v20 = vsel %vm91_vm0, %v3715_v62, -inf }
 0xf97   :  { %3720 = vmax.xlane.f32.xlu1 %v3719_v20  ;;  %v3716_v22 = vsel %vm91_vm0, %v3714_v8, -inf }
 0xf98   :  { %3717 = vmax.xlane.f32.xlu0 %v3716_v22 }
0x101c   :  { %v3517_v23 = vpop.xlane.xlu0 %3516 }
0x101d   :  { %v3519_v25 = vsub.f32 %v3511_v29, %v3517_v23  ;;  %v3514_v27 = vpop.xlane.xlu1 %3513 }
0x101e   :  { %v3518_v30 = vsub.f32 %v3510_v49, %v3514_v27 }
0x101f   :  { %v3522_v31 = vmul.f32 1.442695, %v3519_v25 }
0x1020   :  { %v3520_v37 = vmul.f32 1.442695, %v3518_v30 }
0x1021   :  { %8464 = vpow2.f32 %v3522_v31 }
0x1022   :  { %8466 = vpow2.f32 %v3520_v37 }
0x1024   :  { %v3721_v38 = vpop.xlane.xlu1 %3720 }
0x1025   :  { %v3723_v42 = vsub.f32 %v3715_v62, %v3721_v38  ;;  %v3718_v43 = vpop.xlane.xlu0 %3717 }
0x1026   :  { %v3722_v39 = vsub.f32 %v3714_v8, %v3718_v43 }
0x1027   :  { %v3726_v4 = vmul.f32 1.442695, %v3723_v42 }
0x1028   :  { %v3724_v57 = vmul.f32 1.442695, %v3722_v39 }
0x1029   :  { %8468 = vpow2.f32 %v3726_v4 }
0x102a   :  { %8470 = vpow2.f32 %v3724_v57 }
0x102b   :  { %v8465_v40 = vpop.eup %8464 }
0x102c   :  { %v8467_v56 = vpop.eup %8466  ;;  %v3527_v26 = vsel %vm91_vm0, %v8465_v40, 0.0 }
0x102d   :  { %3528 = vadd.xlane.f32.xlu1 %v3527_v26  ;;  %v3524_v11 = vsel %vm91_vm0, %v8467_v56, 0.0 }
0x102e   :  { %3525 = vadd.xlane.f32.xlu0 %v3524_v11 }
0x1033   :  { %v8469_v34 = vpop.eup %8468 }
0x1034   :  { %v8471_v54 = vpop.eup %8470  ;;  %v3731_v63 = vsel %vm91_vm0, %v8469_v34, 0.0 }
0x1035   :  { %3732 = vadd.xlane.f32.xlu1 %v3731_v63  ;;  %v3728_v0 = vsel %vm91_vm0, %v8471_v54, 0.0 }
0x1036   :  { %3729 = vadd.xlane.f32.xlu0 %v3728_v0 }
0x1046   :  { %8120 = vrot.lane.b32.xlu1 %v9536_v53, %s8538_s25 }
0x104a   :  { %8125 = vrot.lane.b32.xlu1 %v9536_v53, %s8533_s21 }
0x104c   :  { %8115 = vrot.lane.b32.xlu0 %v9536_v53, %s8539_s26 }
0x104e   :  { %3827 = vrot.lane.b32.xlu1 %v9530_v28, %s8535_s23 }
0x1050   :  { %3825 = vrot.lane.b32.xlu0 %v9528_v45, %s8535_s23 }
0x10ba   :  { %v3529_v2 = vpop.xlane.xlu1 %3528 }
0x10bb   :  { %v3526_v24 = vpop.xlane.xlu0 %3525 }
0x10bc   :  { %8472 = vrcp.f32 %v3526_v24 }
0x10bd   :  { %8474 = vrcp.f32 %v3529_v2 }
0x10c2   :  { %v3733_v3 = vpop.xlane.xlu1 %3732 }
0x10c3   :  { %v3730_v5 = vpop.xlane.xlu0 %3729 }
0x10c4   :  { %8476 = vrcp.f32 %v3730_v5 }
0x10c5   :  { %8478 = vrcp.f32 %v3733_v3 }
0x10c6   :  { %v8473_v7 = vpop.eup %8472  ;;  %v8121_v58 = vpop.permute.xlu1 %8120 }
0x10c7   :  { %v8116_v59 = vpop.permute.xlu0 %8115  ;;  %v3532_v6 = vmul.f32 %v8473_v7, %v8467_v56  ;;  %v8123_v21 = vunpack.i.h.bf16 %v8121_v58  ;;  %v8122_v9 = vunpack.i.l.bf16 %v8121_v58  ;;  %v8475_v12 = vpop.eup %8474 }
0x10c8   :  { %v8118_v10 = vunpack.i.h.bf16 %v8116_v59  ;;  %v8117_v29 = vunpack.i.l.bf16 %v8116_v59  ;;  %v3533_v62 = vmul.f32 %v8475_v12, %v8465_v40 }
0x10c9   :  { %7886 = vmatprep.mubr.msk.f32.mxu0 %vm91_vm0, %v3532_v6  ;;  %v8002_v60 = vpack.c.bf16 %v8123_v21, %v8122_v9 }
0x10ca   :  { %v7992_v49 = vpack.c.bf16 %v8118_v10, %v8117_v29  ;;  %v8126_v51 = vpop.permute.xlu1 %8125 }
0x10cb   :  { %v8128_v61 = vunpack.i.h.bf16 %v8126_v51  ;;  %v8127_v18 = vunpack.i.l.bf16 %v8126_v51  ;;  %v3826_v25 = vpop.permute.xlu0 %3825 }
0x10cc   :  { %7993 = vmatprep.subr.bf16.mxu0 %v7992_v49 }
0x10cd   :  { %7995 = vmatpush3.bf16.msra.mxu0 %v7992_v49  ;;  %v8006_v22 = vpack.c.bf16 %v8128_v61, %v8127_v18 }
0x10ce   :  { %v8477_v48 = vpop.eup %8476  ;;  %8003 = vmatprep.subr.bf16.mxu0 %v8002_v60  ;;  %v3828_v27 = vpop.permute.xlu1 %3827 }
0x10cf   :  { %v8479_v8 = vpop.eup %8478  ;;  %v3736_v20 = vmul.f32 %v8477_v48, %v8471_v54 }
0x10d0   :  { %7887 = vmatmul.mubr.msk.f32.vlgmr.msra.gmra.mrb[14].mxu0 %vm91_vm0, %v3533_v62  ;;  %v3737_v23 = vmul.f32 %v8479_v8, %v8469_v34 }
0x10d1   :  { %8005 = vmatpush3.bf16.msra.mxu0 %v8002_v60  ;;  %7900 = vmatprep.mubr.msk.f32.mxu0 %vm91_vm0, %v3736_v20 }
0x10d2   :  { %8008 = vmatprep.subr.msk.bf16.mxu0 %vm8672_vm4, %v8006_v22 }
0x10d4   :  { %7901 = vmatmul.mubr.msk.f32.vlgmr.msra.gmra.mrb[52].mxu0 %vm91_vm0, %v3737_v23 }
0x10d5   :  { %7907 = vmatprep.mubr.msk.f32.mxu0 %vm209_vm3, %v3826_v25 }
0x10da   :  { %8011 = vmatpush3.bf16.xpose.msk.msra.mxu0 %vm8672_vm4, %v8006_v22 }
0x10e1   :  { %7908 = vmatmul.mubr.msk.f32.vlgmr.msra.gmra.mrb[54].mxu0 %vm209_vm3, %v3828_v27 }
0x11a3   :  { %v9590_v30 = vpop.f32.mrb[14].mxu0 }
0x11a4   :  { %v9592_v31 = vpop.f32.mrb[15].mxu0 }
0x11a7   :  { %v9594_v37 = vpop.f32.mrb[52].mxu0 }
0x11a8   :  { %v9596_v38 = vpop.f32.mrb[53].mxu0 }
0x11a9   :  { %v8144_v42 = vpack.i.bf16 %v9594_v37, %v9596_v38  ;;  %v8294_v37 = vld [vmem:[%s10379_s4 + $0x10] sm:$0xff]   ;;  %v8295_v38 = vld [vmem:[%s10379_s4 + $0x18] sm:$0xff]  }
0x11b4   :  { %v7909_v43 = vpop.f32.mrb[54].mxu0 }
0x11b5   :  { %v3917_v39 = vmul.f32 0.35355338, %v7909_v43  ;;  %v3907_v4 = vpop.f32.mrb[55].mxu0 }
0x11b6   :  { %v3916_v57 = vmul.f32 0.35355338, %v3907_v4 }
0x11b7   :  { %v3919_v40 = vadd.f32 %v3917_v39, %v8698_v47 }
0x11b8   :  { %v3918_v56 = vadd.f32 %v3916_v57, %v8700_v50 }
0x11b9   :  { %v3923_v26 = vsel %vm91_vm0, %v3919_v40, -inf }
0x11ba   :  { %3924 = vmax.xlane.f32.xlu1 %v3923_v26  ;;  %v3920_v11 = vsel %vm91_vm0, %v3918_v56, -inf }
0x11bb   :  { %3921 = vmax.xlane.f32.xlu0 %v3920_v11 }
0x11cb   :  { %8130 = vrot.lane.b32.xlu1 %v9536_v53, %s8540_s27 }
0x11cf   :  { %4029 = vrot.lane.b32.xlu1 %v9528_v45, %s8542_s29 }
0x11d3   :  { %4031 = vrot.lane.b32.xlu1 %v9530_v28, %s8542_s29 }
0x1247   :  { %v3925_v34 = vpop.xlane.xlu1 %3924 }
0x1248   :  { %v3927_v54 = vsub.f32 %v3919_v40, %v3925_v34  ;;  %v3922_v63 = vpop.xlane.xlu0 %3921 }
0x1249   :  { %v3926_v0 = vsub.f32 %v3918_v56, %v3922_v63 }
0x124a   :  { %v3930_v24 = vmul.f32 1.442695, %v3927_v54 }
0x124b   :  { %v3928_v2 = vmul.f32 1.442695, %v3926_v0  ;;  %v8131_v3 = vpop.permute.xlu1 %8130 }
0x124c   :  { %8480 = vpow2.f32 %v3930_v24  ;;  %v8133_v5 = vunpack.i.h.bf16 %v8131_v3  ;;  %v8132_v7 = vunpack.i.l.bf16 %v8131_v3 }
0x124d   :  { %8482 = vpow2.f32 %v3928_v2 }
0x124e   :  { %v8012_v58 = vpack.c.bf16 %v8133_v5, %v8132_v7 }
0x124f   :  { %v4030_v48 = vpop.permute.xlu1 %4029 }
0x1250   :  { %8013 = vmatprep.subr.bf16.mxu1 %v8012_v58 }
0x1251   :  { %8015 = vmatpush3.bf16.msra.mxu1 %v8012_v58 }
0x1253   :  { %v4032_v62 = vpop.permute.xlu1 %4031 }
0x1256   :  { %v8481_v59 = vpop.eup %8480 }
0x1257   :  { %v3935_v45 = vsel %vm91_vm0, %v8481_v59, 0.0  ;;  %v8483_v6 = vpop.eup %8482 }
0x1258   :  { %3936 = vadd.xlane.f32.xlu0 %v3935_v45  ;;  %v3932_v28 = vsel %vm91_vm0, %v8483_v6, 0.0 }
0x125c   :  { %3933 = vadd.xlane.f32.xlu0 %v3932_v28 }
0x1272   :  { %8135 = vrot.lane.b32.xlu0 %v9536_v53, %s8541_s28 }
0x12e5   :  { %v3937_v21 = vpop.xlane.xlu0 %3936 }
0x12e6   :  { %8484 = vrcp.f32 %v3937_v21 }
0x12e9   :  { %v3934_v9 = vpop.xlane.xlu0 %3933 }
0x12ea   :  { %8486 = vrcp.f32 %v3934_v9 }
0x12ed   :  { %v8136_v10 = vpop.permute.xlu0 %8135 }
0x12ee   :  { %v8138_v29 = vunpack.i.h.bf16 %v8136_v10  ;;  %v8137_v49 = vunpack.i.l.bf16 %v8136_v10 }
0x12f0   :  { %v8016_v51 = vpack.c.bf16 %v8138_v29, %v8137_v49  ;;  %v8485_v12 = vpop.eup %8484 }
0x12f1   :  { %v3941_v18 = vmul.f32 %v8485_v12, %v8481_v59 }
0x12f2   :  { %8018 = vmatprep.subr.msk.bf16.mxu1 %vm8672_vm4, %v8016_v51 }
0x12f4   :  { %v8487_v60 = vpop.eup %8486 }
0x12f5   :  { %v3940_v61 = vmul.f32 %v8487_v60, %v8483_v6 }
0x12f7   :  { %7914 = vmatprep.mubr.msk.f32.mxu1 %vm91_vm0, %v3940_v61 }
0x12f8   :  { %7915 = vmatmul.mubr.msk.f32.vlgmr.msra.gmra.mrb[50].mxu1 %vm91_vm0, %v3941_v18 }
0x12f9   :  { %8021 = vmatpush3.bf16.xpose.msk.msra.mxu1 %vm8672_vm4, %v8016_v51  ;;  %7921 = vmatprep.mubr.msk.f32.mxu1 %vm209_vm3, %v4030_v48 }
0x1300   :  { %7922 = vmatmul.mubr.msk.f32.vlgmr.msra.gmra.mrb[52].mxu1 %vm209_vm3, %v4032_v62 }
0x1301   :  { %4598 = vmatprep.mubr.bf16.mxu1 %v8547_v14 }
0x13cb   :  { %v7916_v8 = vpop.f32.mrb[50].mxu1 }
0x13cc   :  { %v4020_v20 = vpop.f32.mrb[51].mxu1 }
0x13cd   :  { %v8149_v22 = vpack.i.bf16 %v7916_v8, %v4020_v20 }
0x13d3   :  { %v7923_v23 = vpop.f32.mrb[52].mxu1 }
0x13d4   :  { %v4121_v25 = vmul.f32 0.35355338, %v7923_v23  ;;  %v4111_v27 = vpop.f32.mrb[53].mxu1 }
0x13d5   :  { %v4120_v43 = vmul.f32 0.35355338, %v4111_v27 }
0x13d6   :  { %v4123_v39 = vadd.f32 %v4121_v25, %v8698_v47 }
0x13d7   :  { %v4122_v4 = vadd.f32 %v4120_v43, %v8700_v50 }
0x13d8   :  { %v4127_v32 = vsel %vm91_vm0, %v4123_v39, -inf }
0x13d9   :  { %4128 = vmax.xlane.f32.xlu1 %v4127_v32  ;;  %v4124_v57 = vsel %vm91_vm0, %v4122_v4, -inf }
0x13da   :  { %4125 = vmax.xlane.f32.xlu0 %v4124_v57 }
0x13ea   :  { %8140 = vrot.lane.b32.xlu1 %v9536_v53, %s8545_s11 }
0x13ee   :  { %8150 = vrot.lane.b32.xlu1 %v8149_v22, %s8544_s10 }
0x1466   :  { %v4129_v40 = vpop.xlane.xlu1 %4128 }
0x1467   :  { %v4131_v56 = vsub.f32 %v4123_v39, %v4129_v40  ;;  %v4126_v26 = vpop.xlane.xlu0 %4125 }
0x1468   :  { %v4130_v11 = vsub.f32 %v4122_v4, %v4126_v26 }
0x1469   :  { %v4134_v34 = vmul.f32 1.442695, %v4131_v56 }
0x146a   :  { %v4132_v54 = vmul.f32 1.442695, %v4130_v11  ;;  %v8141_v47 = vpop.permute.xlu1 %8140 }
0x146b   :  { %v8143_v63 = vunpack.i.h.bf16 %v8141_v47  ;;  %v8142_v50 = vunpack.i.l.bf16 %v8141_v47 }
0x146c   :  { %8488 = vpow2.f32 %v4132_v54 }
0x146d   :  { %v8022_v0 = vpack.c.bf16 %v8143_v63, %v8142_v50  ;;  %8490 = vpow2.f32 %v4134_v34 }
0x146e   :  { %v8151_v49 = vpop.permute.xlu1 %8150 }
0x146f   :  { %8023 = vmatprep.subr.bf16.mxu0 %v8022_v0  ;;  %v8153_v60 = vunpack.i.h.bf16 %v8151_v49  ;;  %v8152_v61 = vunpack.i.l.bf16 %v8151_v49  ;;  %v6907_v49 = vld [vmem:[%s10380_s5 + $0x150] sm:$0xff] }
0x1470   :  { %8025 = vmatpush3.bf16.msra.mxu0 %v8022_v0 }
0x1471   :  { %7931 = vmatprep.subr.bf16.mxu0 %v8530_v1 }
0x1476   :  { %v8489_v24 = vpop.eup %8488 }
0x1477   :  { %v4136_v53 = vsel %vm91_vm0, %v8489_v24, 0.0  ;;  %v8491_v2 = vpop.eup %8490 }
0x1478   :  { %4137 = vadd.xlane.f32.xlu0 %v4136_v53  ;;  %v4139_v3 = vsel %vm91_vm0, %v8491_v2, 0.0 }
0x147c   :  { %4140 = vadd.xlane.f32.xlu0 %v4139_v3  ;;  %v6898_v3 = vld [vmem:[%s10380_s5 + $0x108] sm:$0xff] }
0x1492   :  { %8145 = vrot.lane.b32.xlu0 %v8144_v42, %s8543_s30 }
0x1505   :  { %v4138_v5 = vpop.xlane.xlu0 %4137 }
0x1506   :  { %8492 = vrcp.f32 %v4138_v5 }
0x1509   :  { %v4141_v7 = vpop.xlane.xlu0 %4140 }
0x150a   :  { %8494 = vrcp.f32 %v4141_v7  ;;  %v6906_v7 = vld [vmem:[%s10380_s5 + $0x148] sm:$0xff] }
0x150d   :  { %v8146_v9 = vpop.permute.xlu0 %8145 }
0x150e   :  { %v8148_v10 = vunpack.i.h.bf16 %v8146_v9  ;;  %v8147_v29 = vunpack.i.l.bf16 %v8146_v9 }
0x1510   :  { %v8493_v58 = vpop.eup %8492  ;;  %v4258_v51 = vsel %vm209_vm3, %v9590_v30, %v8148_v10  ;;  %v4257_v12 = vsel %vm209_vm3, %v9592_v31, %v8147_v29  ;;  %v4272_v30 = vrot.slane %v9524_v52, %v8785_v36  ;;  %v6899_v29 = vld [vmem:[%s10380_s5 + $0x110] sm:$0xff] }
0x1511   :  { %v4144_v59 = vmul.f32 %v8493_v58, %v8489_v24  ;;  %v4259_v8 = vsel %vm91_vm0, %v4257_v12, %v8152_v61  ;;  %v4260_v20 = vsel %vm91_vm0, %v4258_v51, %v8153_v60  ;;  %v6900_v51 = vld [vmem:[%s10380_s5 + $0x118] sm:$0xff]  ;;  %v6934_v12 = vcombine.high %v6899_v29, %v6907_v49 }
0x1512   :  { %v6908_v60 = vld [vmem:[%s10380_s5 + $0x158] sm:$0xff]  ;;  %v6933_v61 = vcombine.low %v6899_v29, %v6907_v49 }
0x1513   :  { %7928 = vmatprep.mubr.msk.f32.mxu0 %vm91_vm0, %v4144_v59  ;;  %v6931_v59 = vcombine.low %v6898_v3, %v6906_v7 }
0x1514   :  { %v8495_v45 = vpop.eup %8494 }
0x1515   :  { %v4145_v6 = vmul.f32 %v8495_v45, %v8491_v2  ;;  %v6905_v2 = vld [vmem:[%s10380_s5 + $0x140] sm:$0xff]  ;;  %v6932_v45 = vcombine.high %v6898_v3, %v6906_v7 }
0x1516   :  { %v6925_v7 = vld [vmem:[%s10380_s5 + $0x1e0] sm:$0xff] }
0x1517   :  { %7929 = vmatmul.mubr.msk.f32.vlgmr.msra.gmra.mrb[56].mxu0 %vm91_vm0, %v4145_v6  ;;  %v6913_v6 = vld [vmem:[%s10380_s5 + $0x180] sm:$0xff] }
0x1518   :  { %7935 = vmatprep.mubr.msk.bf16.mxu0 %vm8531_vm1, %v8530_v1  ;;  %7932 = vmatpush3.bf16.msra.mxu0 %v8294_v37  ;;  %v6921_v37 = vld [vmem:[%s10380_s5 + $0x1c0] sm:$0xff] }
0x1519   :  { %7933 = vmatprep.subr.bf16.mxu0 %v8530_v1 }
0x151c   :  { %7934 = vmatpush3.bf16.msra.mxu0 %v8295_v38  ;;  %v6914_v38 = vld [vmem:[%s10380_s5 + $0x188] sm:$0xff] }
0x151d   :  { %4609 = vmatprep.subr.bf16.mxu0 %v6932_v45 }
0x15ea   :  { %v7930_v42 = vpop.f32.mrb[56].mxu0 }
0x15eb   :  { %v4224_v28 = vpop.f32.mrb[57].mxu0 }
0x15ec   :  { %v8154_v21 = vpack.i.bf16 %v7930_v42, %v4224_v28  ;;  %v6946_v42 = vcombine.high %v6913_v6, %v6921_v37  ;;  %v6922_v28 = vld [vmem:[%s10380_s5 + $0x1c8] sm:$0xff] }
0x15ed   :  { %v6947_v9 = vcombine.low %v6914_v38, %v6922_v28  ;;  %v6948_v10 = vcombine.high %v6914_v38, %v6922_v28  ;;  %v6911_v28 = vld [vmem:[%s10380_s5 + $0x170] sm:$0xff] }
0x15ee   :  { %8155 = vrot.lane.b32.xlu1 %v8154_v21, %s8546_s15  ;;  %v6945_v21 = vcombine.low %v6913_v6, %v6921_v37 }
0x1660   :  { %v8156_v18 = vpop.permute.xlu1 %8155 }
0x1661   :  { %v8158_v48 = vunpack.i.h.bf16 %v8156_v18  ;;  %v8157_v62 = vunpack.i.l.bf16 %v8156_v18  ;;  %v6935_v18 = vcombine.low %v6900_v51, %v6908_v60 }
0x1663   :  { %v4261_v22 = vsel %vm1046_vm9, %v4259_v8, %v8157_v62  ;;  %v4262_v23 = vsel %vm1046_vm9, %v4260_v20, %v8158_v48  ;;  %v6936_v48 = vcombine.high %v6900_v51, %v6908_v60  ;;  %v6927_v60 = vld [vmem:[%s10380_s5 + $0x1f0] sm:$0xff] }
0x1664   :  { %v4263_v25 = vpack.c.bf16 %v4262_v23, %v4261_v22 }
0x1666   :  { %7936 = vmatmul.mubr.msk.bf16.vlgmr.msra.gmra.mrb[60].mxu0 %vm158_vm2, %v4263_v25 }
0x1667   :  { %4641 = vmatprep.mubr.bf16.mxu0 %v8547_v14  ;;  %4610 = vmatpush1.bf16.msra.mxu0 %v6931_v59  ;;  %v6926_v59 = vld [vmem:[%s10380_s5 + $0x1e8] sm:$0xff] }
0x1668   :  { %4611 = vmatprep.subr.bf16.mxu0 %v6948_v10 }
0x166b   :  { %4612 = vmatpush1.bf16.msra.mxu0 %v6947_v9  ;;  %v6912_v9 = vld [vmem:[%s10380_s5 + $0x178] sm:$0xff] }
0x166c   :  { %4695 = vmatprep.subr.bf16.mxu0 %v6936_v48 }
0x1739   :  { %v4322_v31 = vpop.f32.mrb[60].mxu0 }
0x173a   :  { %v4323_v27 = vadd.f32 %v4322_v31, %v4272_v30  ;;  %v7937_v43 = vpop.f32.mrb[61].mxu0  ;;  %v4360_v31 = vrot.slane %v9524_v52, %v8834_v33 }
0x173b   :  { %v4325_v39 = vpop.f32.mrb[62].mxu0 }
0x173c   :  { %v4326_v4 = vadd.f32 %v4325_v39, %v4272_v30  ;;  %v7938_v32 = vpop.f32.mrb[63].mxu0  ;;  %v4329_v57 = vadd.f32 %v4323_v27, %v9514_v41  ;;  %v4366_v39 = vrot.slane %v9524_v52, %v8839_v35 }
0x173e   :  { %v4331_v40 = vsel %vm158_vm2, %v4329_v57, 0.0  ;;  %v4330_v56 = vadd.f32 %v4326_v4, %v9516_v55  ;;  %v6897_v55 = vld [vmem:[%s10380_s5 + $0x100] sm:$0xff] }
0x173f   :  { %4332 = vadd.xlane.f32.xlu0 %v4331_v40  ;;  %v6930_v5 = vcombine.high %v6897_v55, %v6905_v2  ;;  %v6929_v58 = vcombine.low %v6897_v55, %v6905_v2  ;;  %v6915_v40 = vld [vmem:[%s10380_s5 + $0x190] sm:$0xff] }
0x1740   :  { %v4334_v26 = vsel %vm158_vm2, %v4330_v56, 0.0 }
0x1741   :  { %4335 = vadd.xlane.f32.xlu1 %v4334_v26  ;;  %4566 = vmatprep.subr.bf16.mxu1 %v6930_v5  ;;  %v6916_v26 = vld [vmem:[%s10380_s5 + $0x198] sm:$0xff]  ;;  %v6917_v5 = vld [vmem:[%s10380_s5 + $0x1a0] sm:$0xff] }
0x1742   :  { %4567 = vmatpush1.bf16.msra.mxu1 %v6929_v58  ;;  %v6918_v58 = vld [vmem:[%s10380_s5 + $0x1a8] sm:$0xff]  ;;  %v6954_v37 = vcombine.high %v6917_v5, %v6925_v7  ;;  %v6953_v10 = vcombine.low %v6917_v5, %v6925_v7  ;;  %v8320_v5 = vld [vmem:[%s10382_s7 + $0x470] sm:$0xff]  }
0x1743   :  { %4568 = vmatprep.subr.bf16.mxu1 %v6946_v42  ;;  %v6956_v38 = vcombine.high %v6918_v58, %v6926_v59  ;;  %v6903_v42 = vld [vmem:[%s10380_s5 + $0x130] sm:$0xff]  ;;  %v6955_v29 = vcombine.low %v6918_v58, %v6926_v59 }
0x1744   :  { %v6942_v49 = vcombine.high %v6903_v42, %v6911_v28  ;;  %v6941_v48 = vcombine.low %v6903_v42, %v6911_v28  ;;  %v8321_v7 = vld [vmem:[%s10382_s7 + $0x4f0] sm:$0xff]   ;;  %v8328_v42 = vld [vmem:[%s10382_s7 + $0x540] sm:$0xff]  }
0x1745   :  { %v8322_v58 = vld [vmem:[%s10382_s7 + $0x430] sm:$0xff]   ;;  %v8329_v28 = vld [vmem:[%s10382_s7 + $0x5c0] sm:$0xff]  }
0x1746   :  { %4569 = vmatpush1.bf16.msra.mxu1 %v6945_v21  ;;  %v6904_v21 = vld [vmem:[%s10380_s5 + $0x138] sm:$0xff]  ;;  %v8323_v59 = vld [vmem:[%s10382_s7 + $0x4b0] sm:$0xff]  }
0x1747   :  { %4652 = vmatprep.subr.bf16.mxu1 %v6934_v12  ;;  %v6944_v51 = vcombine.high %v6904_v21, %v6912_v9  ;;  %v6919_v12 = vld [vmem:[%s10380_s5 + $0x1b0] sm:$0xff] }
0x17cc   :  { %v4333_v11 = vpop.xlane.xlu0 %4332 }
0x17cd   :  { %v4337_v34 = vmul.f32 0.03125, %v4333_v11  ;;  %v6924_v11 = vld [vmem:[%s10380_s5 + $0x1d8] sm:$0xff] }
0x17ce   :  { %v4336_v54 = vpop.xlane.xlu1 %4335  ;;  %v6951_v55 = vcombine.low %v6916_v26, %v6924_v11 }
0x17cf   :  { %v4339_v47 = vsub.f32 %v4329_v57, %v4337_v34  ;;  %v4338_v63 = vmul.f32 0.03125, %v4336_v54 }
0x17d1   :  { %v4340_v50 = vsub.f32 %v4330_v56, %v4338_v63  ;;  %v4341_v0 = vmul.f32 %v4339_v47, %v4339_v47  ;;  %v6923_v56 = vld [vmem:[%s10380_s5 + $0x1d0] sm:$0xff]  ;;  %v6952_v63 = vcombine.high %v6916_v26, %v6924_v11  ;;  %v8308_v11 = vld [vmem:[%s10382_s7 + $0x458] sm:$0xff]  }
0x17d2   :  { %v8307_v26 = vld [vmem:[%s10382_s7 + $0x490] sm:$0xff]  }
0x17d3   :  { %v4343_v24 = vsel %vm158_vm2, %v4341_v0, 0.0  ;;  %v4342_v53 = vmul.f32 %v4340_v50, %v4340_v50  ;;  %v6909_v0 = vld [vmem:[%s10380_s5 + $0x160] sm:$0xff] }
0x17d4   :  { %4344 = vadd.xlane.f32.xlu0 %v4343_v24  ;;  %v6902_v24 = vld [vmem:[%s10380_s5 + $0x128] sm:$0xff] }
0x17d5   :  { %v4346_v41 = vsel %vm158_vm2, %v4342_v53, 0.0  ;;  %v6910_v53 = vld [vmem:[%s10380_s5 + $0x168] sm:$0xff] }
0x17d6   :  { %v6940_v3 = vcombine.high %v6902_v24, %v6910_v53  ;;  %v6939_v6 = vcombine.low %v6902_v24, %v6910_v53  ;;  %v8314_v24 = vld [vmem:[%s10382_s7 + $0x420] sm:$0xff]  }
0x17d7   :  { %v8315_v53 = vld [vmem:[%s10382_s7 + $0x4a0] sm:$0xff]  }
0x17d8   :  { %4347 = vadd.xlane.f32.xlu0 %v4346_v41  ;;  %v6949_v41 = vcombine.low %v6915_v40, %v6923_v56 }
0x1861   :  { %v4345_v62 = vpop.xlane.xlu0 %4344 }
0x1862   :  { %v4349_v8 = vmul.f32 0.03125, %v4345_v62  ;;  %v6943_v62 = vcombine.low %v6904_v21, %v6912_v9  ;;  %v9902_v21 = vld [vmem:[%s10381_s6 + $0x10] sm:$0xff] }
0x1863   :  { %v4934_v9 = vrot.slane %v9902_v21, %v8636_v17 }
0x1864   :  { %v4351_v20 = vadd.f32 1e-05, %v4349_v8  ;;  %v6958_v8 = vcombine.high %v6919_v12, %v6927_v60 }
0x1865   :  { %v4348_v22 = vpop.xlane.xlu0 %4347 }
0x1866   :  { %8496 = vrsqrt.f32 %v4351_v20  ;;  %v4350_v23 = vmul.f32 0.03125, %v4348_v22  ;;  %v6957_v22 = vcombine.low %v6919_v12, %v6927_v60 }
0x1868   :  { %v4352_v25 = vadd.f32 1e-05, %v4350_v23 }
0x186a   :  { %8498 = vrsqrt.f32 %v4352_v25  ;;  %v8296_v25 = vld [vmem:[%s10382_s7 + $0x440] sm:$0xff]  }
0x1870   :  { %v8497_v30 = vpop.eup %8496 }
0x1871   :  { %v4355_v27 = vmul.f32 %v8497_v30, %v4339_v47  ;;  %v6950_v47 = vcombine.high %v6915_v40, %v6923_v56  ;;  %v8297_v30 = vld [vmem:[%s10382_s7 + $0x4c0] sm:$0xff]   ;;  %v8305_v40 = vld [vmem:[%s10382_s7 + $0x4d0] sm:$0xff]  }
0x1872   :  { %v8306_v56 = vld [vmem:[%s10382_s7 + $0x410] sm:$0xff]  }
0x1873   :  { %v4361_v4 = vmul.f32 %v4360_v31, %v4355_v27  ;;  %v8299_v27 = vld [vmem:[%s10382_s7 + $0x480] sm:$0xff]  }
0x1874   :  { %v8499_v43 = vpop.eup %8498 }
0x1875   :  { %v4356_v32 = vmul.f32 %v8499_v43, %v4340_v50  ;;  %v9719_v52 = vadd.f32 %v4366_v39, %v4361_v4  ;;  %v6901_v50 = vld [vmem:[%s10380_s5 + $0x120] sm:$0xff]  ;;  %v8300_v43 = vld [vmem:[%s10382_s7 + $0x448] sm:$0xff]  }
0x1876   :  { %v6938_v2 = vcombine.high %v6901_v50, %v6909_v0  ;;  %v6937_v45 = vcombine.low %v6901_v50, %v6909_v0  ;;  %v8302_v4 = vld [vmem:[%s10382_s7 + $0x408] sm:$0xff]   ;;  %v8312_v50 = vld [vmem:[%s10382_s7 + $0x460] sm:$0xff]  }
0x1877   :  { %v4362_v57 = vmul.f32 %v4360_v31, %v4356_v32  ;;  %v8298_v31 = vld [vmem:[%s10382_s7 + $0x400] sm:$0xff]   ;;  %v8303_v32 = vld [vmem:[%s10382_s7 + $0x488] sm:$0xff]  }
0x1878   :  { %v8313_v0 = vld [vmem:[%s10382_s7 + $0x4e0] sm:$0xff]  }
0x1879   :  { %v9721_v34 = vadd.f32 %v4366_v39, %v4362_v57  ;;  %v8301_v39 = vld [vmem:[%s10382_s7 + $0x4c8] sm:$0xff]   ;;  %v8304_v57 = vld [vmem:[%s10382_s7 + $0x450] sm:$0xff]  }
0x187b   :  { %v9725_v54 = vpack.c.bf16 %v9721_v34, %v9719_v52 }
0x187d   :  { %6961 = vmatmul.mubr.msk.bf16.vlgmr.msra.gmra.mrb[56].mxu1 %vm158_vm2, %v9725_v54  ;;  %6962 = vmatmul.mubr.msk.bf16.vlgmr.msra.gmra.mrb[64].mxu0 %vm158_vm2, %v9725_v54 }
0x187e   :  { %4653 = vmatpush1.bf16.msra.mxu1 %v6933_v61  ;;  %4696 = vmatpush1.bf16.msra.mxu0 %v6935_v18  ;;  %v6920_v61 = vld [vmem:[%s10380_s5 + $0x1b8] sm:$0xff] }
0x187f   :  { %4654 = vmatprep.subr.bf16.mxu1 %v6950_v47  ;;  %4697 = vmatprep.subr.bf16.mxu0 %v6952_v63  ;;  %v6928_v18 = vld [vmem:[%s10380_s5 + $0x1f8] sm:$0xff] }
0x1880   :  { %4684 = vmatprep.mubr.bf16.mxu1 %v8547_v14  ;;  %4727 = vmatprep.mubr.bf16.mxu0 %v8547_v14  ;;  %v6960_v20 = vcombine.high %v6920_v61, %v6928_v18  ;;  %v6959_v23 = vcombine.low %v6920_v61, %v6928_v18  ;;  %v8310_v47 = vld [vmem:[%s10382_s7 + $0x418] sm:$0xff]  }
0x1881   :  { %v8311_v63 = vld [vmem:[%s10382_s7 + $0x498] sm:$0xff]  }
0x1882   :  { %4655 = vmatpush1.bf16.msra.mxu1 %v6949_v41  ;;  %4698 = vmatpush1.bf16.msra.mxu0 %v6951_v55  ;;  %v8316_v41 = vld [vmem:[%s10382_s7 + $0x468] sm:$0xff]  }
0x1883   :  { %4738 = vmatprep.subr.bf16.mxu1 %v6938_v2  ;;  %4781 = vmatprep.subr.bf16.mxu0 %v6940_v3  ;;  %v8317_v55 = vld [vmem:[%s10382_s7 + $0x4e8] sm:$0xff]  }
0x1884   :  { %v8318_v2 = vld [vmem:[%s10382_s7 + $0x428] sm:$0xff]  }
0x1885   :  { %6963 = vmatmul.mubr.msk.bf16.vlgmr.msra.gmra.mrb[60].mxu1 %vm158_vm2, %v9725_v54  ;;  %6964 = vmatmul.mubr.msk.bf16.vlgmr.msra.gmra.mrb[68].mxu0 %vm158_vm2, %v9725_v54  ;;  %v8319_v3 = vld [vmem:[%s10382_s7 + $0x4a8] sm:$0xff]  }
0x1886   :  { %4739 = vmatpush1.bf16.msra.mxu1 %v6937_v45  ;;  %4782 = vmatpush1.bf16.msra.mxu0 %v6939_v6  ;;  %v8324_v45 = vld [vmem:[%s10382_s7 + $0x478] sm:$0xff]  }
0x1887   :  { %4740 = vmatprep.subr.bf16.mxu1 %v6954_v37  ;;  %4783 = vmatprep.subr.bf16.mxu0 %v6956_v38  ;;  %v8325_v6 = vld [vmem:[%s10382_s7 + $0x4f8] sm:$0xff]  }
0x1888   :  { %4770 = vmatprep.mubr.bf16.mxu1 %v8547_v14  ;;  %4813 = vmatprep.mubr.bf16.mxu0 %v8547_v14  ;;  %v8326_v37 = vld [vmem:[%s10382_s7 + $0x438] sm:$0xff]  }
0x1889   :  { %v8327_v38 = vld [vmem:[%s10382_s7 + $0x4b8] sm:$0xff]  }
0x188a   :  { %4741 = vmatpush1.bf16.msra.mxu1 %v6953_v10  ;;  %4784 = vmatpush1.bf16.msra.mxu0 %v6955_v29  ;;  %v4942_v10 = vrot.slane %v9902_v21, %v8834_v33  ;;  %v4938_v29 = vrot.slane %v9902_v21, %v8785_v36 }
0x188b   :  { %4824 = vmatprep.subr.bf16.mxu1 %v6942_v49  ;;  %4867 = vmatprep.subr.bf16.mxu0 %v6944_v51  ;;  %v4946_v49 = vrot.slane %v9902_v21, %v8839_v35  ;;  %v5011_v51 = vpack.c.bf16 %v4934_v9, %v4934_v9  ;;  %v8333_v9 = vld [vmem:[%s10382_s7 + $0x5c8] sm:$0xff]  }
0x188c   :  { %v5013_v12 = vpack.c.bf16 %v4942_v10, %v4942_v10  ;;  %v5012_v60 = vpack.c.bf16 %v4938_v29, %v4938_v29 }
0x188d   :  { %6965 = vmatmul.mubr.msk.bf16.vlgmr.msra.gmra.mrb[64].mxu1 %vm158_vm2, %v9725_v54  ;;  %6966 = vmatmul.mubr.msk.bf16.vlgmr.msra.gmra.mrb[72].mxu0 %vm158_vm2, %v9725_v54  ;;  %v5014_v61 = vpack.c.bf16 %v4946_v49, %v4946_v49  ;;  %v5028_v18 = vpack.i.b16 %v5011_v51, %v5011_v51 }
0x188e   :  { %4825 = vmatpush1.bf16.msra.mxu1 %v6941_v48  ;;  %4868 = vmatpush1.bf16.msra.mxu0 %v6943_v62  ;;  %v5042_v48 = vpack.i.b16 %v5013_v12, %v5013_v12  ;;  %v5035_v62 = vpack.i.b16 %v5012_v60, %v5012_v60 }
0x188f   :  { %4826 = vmatprep.subr.bf16.mxu1 %v6958_v8  ;;  %4869 = vmatprep.subr.bf16.mxu0 %v6960_v20  ;;  %v5049_v8 = vpack.i.b16 %v5014_v61, %v5014_v61  ;;  %v4954_v20 = vrot.slane %v9902_v21, %v9049_v13 }
0x1890   :  { %4856 = vmatprep.mubr.bf16.mxu1 %v8547_v14  ;;  %4899 = vmatprep.mubr.bf16.mxu0 %v8547_v14 }
0x1892   :  { %4827 = vmatpush1.bf16.msra.mxu1 %v6957_v22  ;;  %4870 = vmatpush1.bf16.msra.mxu0 %v6959_v23  ;;  %v4962_v22 = vrot.slane %v9902_v21, %v9052_v15 }
0x1893   :  { %7610 = vmatprep.subr.bf16.mxu1 %v8296_v25  ;;  %7632 = vmatprep.subr.bf16.mxu0 %v8297_v30 }
0x1895   :  { %6967 = vmatmul.mubr.msk.bf16.vlgmr.msra.gmra.mrb[68].mxu1 %vm158_vm2, %v9725_v54  ;;  %6968 = vmatmul.mubr.msk.bf16.vlgmr.msra.gmra.mrb[76].mxu0 %vm158_vm2, %v9725_v54  ;;  %v8309_v54 = vld [vmem:[%s10382_s7 + $0x4d8] sm:$0xff]  }
0x1896   :  { %7611 = vmatpush3.bf16.msra.mxu1 %v8298_v31  ;;  %7633 = vmatpush3.bf16.msra.mxu0 %v8299_v27  ;;  %v5033_v27 = vrot.slane %v5028_v18, %v8636_v17 }
0x1897   :  { %7612 = vmatprep.subr.bf16.mxu1 %v8300_v43  ;;  %7634 = vmatprep.subr.bf16.mxu0 %v8301_v39  ;;  %v5047_v43 = vrot.slane %v5042_v48, %v8636_v17 }
0x189a   :  { %7613 = vmatpush3.bf16.msra.mxu1 %v8302_v4  ;;  %7635 = vmatpush3.bf16.msra.mxu0 %v8303_v32  ;;  %v5040_v32 = vrot.slane %v5035_v62, %v8636_v17 }
0x189b   :  { %7614 = vmatprep.subr.bf16.mxu1 %v8304_v57  ;;  %7636 = vmatprep.subr.bf16.mxu0 %v8305_v40  ;;  %v5054_v57 = vrot.slane %v5049_v8, %v8636_v17  ;;  %v5016_v40 = vpack.c.bf16 %v4954_v20, %v4954_v20  ;;  %v8334_v8 = vld [vmem:[%s10382_s7 + $0x508] sm:$0xff]  }
0x189c   :  { %v8335_v20 = vld [vmem:[%s10382_s7 + $0x588] sm:$0xff]  }
0x189e   :  { %7615 = vmatpush3.bf16.msra.mxu1 %v8306_v56  ;;  %7637 = vmatpush3.bf16.msra.mxu0 %v8307_v26  ;;  %v5018_v56 = vpack.c.bf16 %v4962_v22, %v4962_v22  ;;  %v9959_v22 = vld [vmem:[%s10381_s6 + $0x18] sm:$0xff] }
0x189f   :  { %7616 = vmatprep.subr.bf16.mxu1 %v8308_v11  ;;  %7638 = vmatprep.subr.bf16.mxu0 %v8309_v54 }
0x18a2   :  { %7617 = vmatpush3.bf16.msra.mxu1 %v8310_v47  ;;  %7639 = vmatpush3.bf16.msra.mxu0 %v8311_v63 }
0x18a3   :  { %7618 = vmatprep.subr.bf16.mxu1 %v8312_v50  ;;  %7640 = vmatprep.subr.bf16.mxu0 %v8313_v0 }
0x18a6   :  { %7619 = vmatpush3.bf16.msra.mxu1 %v8314_v24  ;;  %7641 = vmatpush3.bf16.msra.mxu0 %v8315_v53 }
0x18a7   :  { %7620 = vmatprep.subr.bf16.mxu1 %v8316_v41  ;;  %7642 = vmatprep.subr.bf16.mxu0 %v8317_v55  ;;  %v5063_v55 = vpack.i.b16 %v5016_v40, %v5016_v40  ;;  %v8339_v40 = vld [vmem:[%s10382_s7 + $0x590] sm:$0xff]  }
0x18a9   :  { %v5068_v49 = vrot.slane %v5063_v55, %v8636_v17 }
0x18aa   :  { %7621 = vmatpush3.bf16.msra.mxu1 %v8318_v2  ;;  %7643 = vmatpush3.bf16.msra.mxu0 %v8319_v3  ;;  %v5077_v2 = vpack.i.b16 %v5018_v56, %v5018_v56 }
0x18ab   :  { %7622 = vmatprep.subr.bf16.mxu1 %v8320_v5  ;;  %7644 = vmatprep.subr.bf16.mxu0 %v8321_v7 }
0x18ac   :  { %v5082_v51 = vrot.slane %v5077_v2, %v8636_v17 }
0x18ae   :  { %7623 = vmatpush3.bf16.msra.mxu1 %v8322_v58  ;;  %7645 = vmatpush3.bf16.msra.mxu0 %v8323_v59  ;;  %v8330_v59 = vld [vmem:[%s10382_s7 + $0x500] sm:$0xff]  }
0x18af   :  { %7624 = vmatprep.subr.bf16.mxu1 %v8324_v45  ;;  %7646 = vmatprep.subr.bf16.mxu0 %v8325_v6  ;;  %v8331_v45 = vld [vmem:[%s10382_s7 + $0x580] sm:$0xff]  }
0x18b2   :  { %7625 = vmatpush3.bf16.msra.mxu1 %v8326_v37  ;;  %7647 = vmatpush3.bf16.msra.mxu0 %v8327_v38 }
0x18b3   :  { %7654 = vmatprep.subr.bf16.mxu1 %v8328_v42  ;;  %7676 = vmatprep.subr.bf16.mxu0 %v8329_v28  ;;  %v8332_v28 = vld [vmem:[%s10382_s7 + $0x548] sm:$0xff]  }
0x1950   :  { %v4600_v23 = vpop.f32.mrb[56].mxu1  ;;  %v4643_v25 = vpop.f32.mrb[64].mxu0 }
0x1951   :  { %v4602_v30 = vpop.f32.mrb[57].mxu1  ;;  %v4645_v31 = vpop.f32.mrb[65].mxu0 }
0x1952   :  { %v4604_v39 = vpop.f32.mrb[58].mxu1  ;;  %v4647_v4 = vpop.f32.mrb[66].mxu0 }
0x1953   :  { %v4910_v26 = vpack.c.bf16 %v4604_v39, %v4600_v23  ;;  %v4912_v11 = vpack.c.bf16 %v4647_v4, %v4643_v25  ;;  %v4606_v54 = vpop.f32.mrb[59].mxu1  ;;  %v4649_v47 = vpop.f32.mrb[67].mxu0  ;;  %v8336_v23 = vld [vmem:[%s10382_s7 + $0x550] sm:$0xff]  }
0x1954   :  { %v4911_v63 = vpack.c.bf16 %v4606_v54, %v4602_v30  ;;  %v4913_v50 = vpack.c.bf16 %v4649_v47, %v4645_v31  ;;  %v8337_v25 = vld [vmem:[%s10382_s7 + $0x5d0] sm:$0xff]   ;;  %v4990_v30 = vrot.slane %v9959_v22, %v9093_v19  ;;  %v8341_v54 = vld [vmem:[%s10382_s7 + $0x5d8] sm:$0xff]  }
0x1955   :  { %v5139_v0 = vadd.bf16 %v5033_v27, %v4910_v26  ;;  %v5141_v24 = vadd.bf16 %v5047_v43, %v4912_v11  ;;  %v8340_v11 = vld [vmem:[%s10382_s7 + $0x558] sm:$0xff]  }
0x1956   :  { %v5140_v53 = vadd.bf16 %v5040_v32, %v4911_v63  ;;  %v5142_v41 = vadd.bf16 %v5054_v57, %v4913_v50  ;;  %v8338_v57 = vld [vmem:[%s10382_s7 + $0x510] sm:$0xff]   ;;  %v5025_v47 = vpack.c.bf16 %v4990_v30, %v4990_v30 }
0x1957   :  { %v5155_v6 = vmax.bf16 %v8547_v14, %v5139_v0  ;;  %v5157_v37 = vmax.bf16 %v8547_v14, %v5141_v24 }
0x1958   :  { %v9920_v3 = vpop.f32.mrb[60].mxu1  ;;  %v9922_v5 = vpop.f32.mrb[68].mxu0  ;;  %v5156_v7 = vmax.bf16 %v8547_v14, %v5140_v53  ;;  %v5158_v58 = vmax.bf16 %v8547_v14, %v5142_v41 }
0x1959   :  { %v4688_v38 = vpop.f32.mrb[61].mxu1  ;;  %v4731_v42 = vpop.f32.mrb[69].mxu0 }
0x195a   :  { %v9940_v10 = vpop.f32.mrb[62].mxu1  ;;  %v9942_v29 = vpop.f32.mrb[70].mxu0  ;;  %6232 = vmatprep.mubr.bf16.mxu1 %v5156_v7  ;;  %6273 = vmatprep.mubr.bf16.mxu0 %v5158_v58  ;;  %v8342_v7 = vld [vmem:[%s10382_s7 + $0x518] sm:$0xff]  }
0x195b   :  { %v4914_v12 = vpack.c.bf16 %v9940_v10, %v9920_v3  ;;  %v4916_v60 = vpack.c.bf16 %v9942_v29, %v9922_v5  ;;  %v4692_v61 = vpop.f32.mrb[63].mxu1  ;;  %v4735_v18 = vpop.f32.mrb[71].mxu0  ;;  %6233 = vmatmul.mubr.bf16.vlgmr.msra.gmra.mrb[72].mxu1 %v5155_v6  ;;  %6274 = vmatmul.mubr.bf16.vlgmr.msra.gmra.mrb[80].mxu0 %v5157_v37  ;;  %v8343_v58 = vld [vmem:[%s10382_s7 + $0x598] sm:$0xff]   ;;  %v5126_v6 = vpack.i.b16 %v5025_v47, %v5025_v47  ;;  %v8344_v37 = vld [vmem:[%s10382_s7 + $0x560] sm:$0xff]  }
0x195c   :  { %v4915_v48 = vpack.c.bf16 %v4692_v61, %v4688_v38  ;;  %v4917_v62 = vpack.c.bf16 %v4735_v18, %v4731_v42  ;;  %7655 = vmatpush3.bf16.msra.mxu1 %v8330_v59  ;;  %7677 = vmatpush3.bf16.msra.mxu0 %v8331_v45  ;;  %v4950_v59 = vrot.slane %v9902_v21, %v9127_v46  ;;  %v8345_v38 = vld [vmem:[%s10382_s7 + $0x5e0] sm:$0xff]  }
0x195d   :  { %7656 = vmatprep.subr.bf16.mxu1 %v8332_v28  ;;  %7678 = vmatprep.subr.bf16.mxu0 %v8333_v9  ;;  %v4958_v45 = vrot.slane %v9902_v21, %v9093_v19  ;;  %v4970_v42 = vrot.slane %v9959_v22, %v8785_v36  ;;  %v4978_v28 = vrot.slane %v9959_v22, %v8839_v35  ;;  %v8362_v5 = vld [vmem:[%s10382_s7 + $0x600] sm:$0xff]  }
0x195e   :  { %v5144_v31 = vadd.bf16 %v5068_v49, %v4915_v48  ;;  %v5146_v27 = vadd.bf16 %v5082_v51, %v4917_v62  ;;  %v8346_v49 = vld [vmem:[%s10382_s7 + $0x520] sm:$0xff]   ;;  %v5015_v61 = vpack.c.bf16 %v4950_v59, %v4950_v59  ;;  %v5131_v35 = vrot.slane %v5126_v6, %v8636_v17  ;;  %v8348_v62 = vld [vmem:[%s10382_s7 + $0x568] sm:$0xff]   ;;  %v8352_v59 = vld [vmem:[%s10382_s7 + $0x570] sm:$0xff]  }
0x195f   :  { %v8347_v51 = vld [vmem:[%s10382_s7 + $0x5a0] sm:$0xff]   ;;  %v5017_v18 = vpack.c.bf16 %v4958_v45, %v4958_v45  ;;  %v5022_v30 = vpack.c.bf16 %v4978_v28, %v4978_v28  ;;  %v8353_v45 = vld [vmem:[%s10382_s7 + $0x5f0] sm:$0xff]  }
0x1960   :  { %7657 = vmatpush3.bf16.msra.mxu1 %v8334_v8  ;;  %7679 = vmatpush3.bf16.msra.mxu0 %v8335_v20  ;;  %v9969_v43 = vpop.f32.mrb[64].mxu1  ;;  %v9971_v39 = vpop.f32.mrb[72].mxu0  ;;  %v5160_v4 = vmax.bf16 %v8547_v14, %v5144_v31  ;;  %v5162_v32 = vmax.bf16 %v8547_v14, %v5146_v27  ;;  %v8349_v8 = vld [vmem:[%s10382_s7 + $0x5e8] sm:$0xff]   ;;  %v5020_v20 = vpack.c.bf16 %v4970_v42, %v4970_v42  ;;  %v8355_v42 = vld [vmem:[%s10382_s7 + $0x5b0] sm:$0xff]  }
0x1961   :  { %v9981_v56 = vpop.f32.mrb[65].mxu1  ;;  %v9983_v26 = vpop.f32.mrb[73].mxu0  ;;  %7658 = vmatprep.subr.bf16.mxu1 %v8336_v23  ;;  %7680 = vmatprep.subr.bf16.mxu0 %v8337_v25  ;;  %v5056_v47 = vpack.i.b16 %v5015_v61, %v5015_v61 }
0x1962   :  { %v9991_v63 = vpop.f32.mrb[66].mxu1  ;;  %v9993_v50 = vpop.f32.mrb[74].mxu0  ;;  %6314 = vmatprep.mubr.bf16.mxu1 %v5160_v4  ;;  %6355 = vmatprep.mubr.bf16.mxu0 %v5162_v32  ;;  %v5091_v6 = vpack.i.b16 %v5020_v20, %v5020_v20 }
0x1963   :  { %v4918_v0 = vpack.c.bf16 %v9991_v63, %v9969_v43  ;;  %v4920_v24 = vpack.c.bf16 %v9993_v50, %v9971_v39  ;;  %v9999_v53 = vpop.f32.mrb[67].mxu1  ;;  %v10001_v41 = vpop.f32.mrb[75].mxu0  ;;  %v5061_v28 = vrot.slane %v5056_v47, %v8636_v17  ;;  %v8371_v47 = vld [vmem:[%s10382_s7 + $0x690] sm:$0xff]   ;;  %v8393_v43 = vld [vmem:[%s10382_s7 + $0x7c0] sm:$0xff]  }
0x1964   :  { %v4919_v55 = vpack.c.bf16 %v9999_v53, %v9981_v56  ;;  %v4921_v2 = vpack.c.bf16 %v10001_v41, %v9983_v26  ;;  %7659 = vmatpush3.bf16.msra.mxu1 %v8338_v57  ;;  %7681 = vmatpush3.bf16.msra.mxu0 %v8339_v40  ;;  %v5096_v61 = vrot.slane %v5091_v6, %v8636_v17  ;;  %v8364_v56 = vld [vmem:[%s10382_s7 + $0x648] sm:$0xff]   ;;  %v8395_v50 = vld [vmem:[%s10382_s7 + $0x780] sm:$0xff]  }
0x1965   :  { %7660 = vmatprep.subr.bf16.mxu1 %v8340_v11  ;;  %7682 = vmatprep.subr.bf16.mxu0 %v8341_v54  ;;  %v8350_v11 = vld [vmem:[%s10382_s7 + $0x528] sm:$0xff]   ;;  %v4966_v6 = vrot.slane %v9959_v22, %v8636_v17 }
0x1966   :  { %v8351_v54 = vld [vmem:[%s10382_s7 + $0x5a8] sm:$0xff]  }
0x1967   :  { %v8365_v26 = vld [vmem:[%s10382_s7 + $0x6c8] sm:$0xff]  }
0x1968   :  { %7661 = vmatpush3.bf16.msra.mxu1 %v8342_v7  ;;  %7683 = vmatpush3.bf16.msra.mxu0 %v8343_v58  ;;  %v10027_v21 = vpop.f32.mrb[68].mxu1  ;;  %v4901_v9 = vpop.f32.mrb[76].mxu0  ;;  %v5070_v7 = vpack.i.b16 %v5017_v18, %v5017_v18  ;;  %v8366_v41 = vld [vmem:[%s10382_s7 + $0x608] sm:$0xff]  }
0x1969   :  { %v10035_v48 = vpop.f32.mrb[69].mxu1  ;;  %v10037_v36 = vpop.f32.mrb[77].mxu0  ;;  %7662 = vmatprep.subr.bf16.mxu1 %v8344_v37  ;;  %7684 = vmatprep.subr.bf16.mxu0 %v8345_v38  ;;  %v5105_v37 = vpack.i.b16 %v5022_v30, %v5022_v30  ;;  %v8354_v38 = vld [vmem:[%s10382_s7 + $0x530] sm:$0xff]   ;;  %v8361_v30 = vld [vmem:[%s10382_s7 + $0x6c0] sm:$0xff]  }
0x196a   :  { %v10046_v23 = vpop.f32.mrb[70].mxu1  ;;  %v4905_v25 = vpop.f32.mrb[78].mxu0 }
0x196b   :  { %v4922_v31 = vpack.c.bf16 %v10046_v23, %v10027_v21  ;;  %v4924_v27 = vpack.c.bf16 %v4905_v25, %v4901_v9  ;;  %v10050_v4 = vpop.f32.mrb[71].mxu1  ;;  %v10052_v32 = vpop.f32.mrb[79].mxu0  ;;  %v5075_v9 = vrot.slane %v5070_v7, %v8636_v17  ;;  %v5110_v18 = vrot.slane %v5105_v37, %v8636_v17  ;;  %v8360_v25 = vld [vmem:[%s10382_s7 + $0x640] sm:$0xff]   ;;  %v8372_v7 = vld [vmem:[%s10382_s7 + $0x658] sm:$0xff]  }
0x196c   :  { %v4923_v57 = vpack.c.bf16 %v10050_v4, %v10035_v48  ;;  %v4925_v40 = vpack.c.bf16 %v10052_v32, %v10037_v36  ;;  %7663 = vmatpush3.bf16.msra.mxu1 %v8346_v49  ;;  %7685 = vmatpush3.bf16.msra.mxu0 %v8347_v51  ;;  %v8356_v49 = vld [vmem:[%s10382_s7 + $0x578] sm:$0xff]   ;;  %v8396_v48 = vld [vmem:[%s10382_s7 + $0x748] sm:$0xff]  }
0x196d   :  { %v10064_v58 = vadd.bf16 %v5131_v35, %v4924_v27  ;;  %7664 = vmatprep.subr.bf16.mxu1 %v8348_v62  ;;  %7686 = vmatprep.subr.bf16.mxu0 %v8349_v8  ;;  %v8357_v51 = vld [vmem:[%s10382_s7 + $0x5f8] sm:$0xff]   ;;  %v5143_v8 = vadd.bf16 %v5061_v28, %v4914_v12  ;;  %v5145_v20 = vadd.bf16 %v5075_v9, %v4916_v60  ;;  %v8363_v12 = vld [vmem:[%s10382_s7 + $0x680] sm:$0xff]   ;;  %v8397_v4 = vld [vmem:[%s10382_s7 + $0x7c8] sm:$0xff]  }
0x196e   :  { %v8358_v35 = vld [vmem:[%s10382_s7 + $0x538] sm:$0xff]   ;;  %v5148_v27 = vadd.bf16 %v5096_v61, %v4919_v55  ;;  %v5150_v3 = vadd.bf16 %v5110_v18, %v4921_v2  ;;  %v8367_v55 = vld [vmem:[%s10382_s7 + $0x688] sm:$0xff]   ;;  %v8368_v2 = vld [vmem:[%s10382_s7 + $0x650] sm:$0xff]   ;;  %v4986_v9 = vrot.slane %v9959_v22, %v9049_v13  ;;  %v5019_v61 = vpack.c.bf16 %v4966_v6, %v4966_v6 }
0x196f   :  { %v8359_v62 = vld [vmem:[%s10382_s7 + $0x5b8] sm:$0xff]   ;;  %v5159_v10 = vmax.bf16 %v8547_v14, %v5143_v8  ;;  %v5161_v29 = vmax.bf16 %v8547_v14, %v5145_v20  ;;  %v8377_v28 = vld [vmem:[%s10382_s7 + $0x6e0] sm:$0xff]   ;;  %v8380_v18 = vld [vmem:[%s10382_s7 + $0x668] sm:$0xff]  }
0x1970   :  { %7665 = vmatpush3.bf16.msra.mxu1 %v8350_v11  ;;  %7687 = vmatpush3.bf16.msra.mxu0 %v8351_v54  ;;  %v5164_v60 = vmax.bf16 %v8547_v14, %v5148_v27  ;;  %v5166_v53 = vmax.bf16 %v8547_v14, %v5150_v3  ;;  %v8369_v11 = vld [vmem:[%s10382_s7 + $0x6d0] sm:$0xff]   ;;  %v8375_v37 = vld [vmem:[%s10382_s7 + $0x698] sm:$0xff]   ;;  %v8382_v20 = vld [vmem:[%s10382_s7 + $0x628] sm:$0xff]  }
0x1971   :  { %7666 = vmatprep.subr.bf16.mxu1 %v8352_v59  ;;  %7688 = vmatprep.subr.bf16.mxu0 %v8353_v45  ;;  %v8370_v54 = vld [vmem:[%s10382_s7 + $0x610] sm:$0xff]   ;;  %v8373_v59 = vld [vmem:[%s10382_s7 + $0x6d8] sm:$0xff]  }
0x1972   :  { %v8374_v45 = vld [vmem:[%s10382_s7 + $0x618] sm:$0xff]   ;;  %v8384_v27 = vld [vmem:[%s10382_s7 + $0x670] sm:$0xff]  }
0x1973   :  { %v8400_v6 = vld [vmem:[%s10382_s7 + $0x750] sm:$0xff]  }
0x1974   :  { %7667 = vmatpush3.bf16.msra.mxu1 %v8354_v38  ;;  %7689 = vmatpush3.bf16.msra.mxu0 %v8355_v42  ;;  %v8376_v38 = vld [vmem:[%s10382_s7 + $0x660] sm:$0xff]   ;;  %v4974_v42 = vrot.slane %v9959_v22, %v8834_v33 }
0x1975   :  { %7668 = vmatprep.subr.bf16.mxu1 %v8356_v49  ;;  %7690 = vmatprep.subr.bf16.mxu0 %v8357_v51  ;;  %v4994_v49 = vrot.slane %v9959_v22, %v9052_v15  ;;  %v8378_v51 = vld [vmem:[%s10382_s7 + $0x620] sm:$0xff]   ;;  %v8381_v15 = vld [vmem:[%s10382_s7 + $0x6e8] sm:$0xff]  }
0x1976   :  { %v8379_v33 = vld [vmem:[%s10382_s7 + $0x6a0] sm:$0xff]  }
0x1977   :  { %v5026_v8 = vpack.c.bf16 %v4994_v49, %v4994_v49  ;;  %v8406_v49 = vld [vmem:[%s10382_s7 + $0x718] sm:$0xff]  }
0x1978   :  { %7669 = vmatpush3.bf16.msra.mxu1 %v8358_v35  ;;  %7691 = vmatpush3.bf16.msra.mxu0 %v8359_v62  ;;  %v5021_v35 = vpack.c.bf16 %v4974_v42, %v4974_v42  ;;  %v5024_v62 = vpack.c.bf16 %v4986_v9, %v4986_v9  ;;  %v8403_v42 = vld [vmem:[%s10382_s7 + $0x790] sm:$0xff]   ;;  %v8405_v9 = vld [vmem:[%s10382_s7 + $0x7d8] sm:$0xff]  }
0x1979   :  { %7698 = vmatprep.subr.bf16.mxu1 %v8360_v25  ;;  %7720 = vmatprep.subr.bf16.mxu0 %v8361_v30  ;;  %v5084_v25 = vpack.i.b16 %v5019_v61, %v5019_v61  ;;  %v8383_v30 = vld [vmem:[%s10382_s7 + $0x6a8] sm:$0xff]   ;;  %v8407_v61 = vld [vmem:[%s10382_s7 + $0x798] sm:$0xff]  }
0x197a   :  { %v5098_v3 = vpack.i.b16 %v5021_v35, %v5021_v35 }
0x197b   :  { %6315 = vmatmul.mubr.bf16.vlgmr.msra.gmra.mrb[76].mxu1 %v5159_v10  ;;  %6356 = vmatmul.mubr.bf16.vlgmr.msra.gmra.mrb[84].mxu0 %v5161_v29  ;;  %v5119_v10 = vpack.i.b16 %v5024_v62, %v5024_v62  ;;  %v5133_v29 = vpack.i.b16 %v5026_v8, %v5026_v8  ;;  %v8412_v62 = vld [vmem:[%s10382_s7 + $0x768] sm:$0xff]  }
0x197c   :  { %7699 = vmatpush3.bf16.msra.mxu1 %v8362_v5  ;;  %6396 = vmatprep.mubr.bf16.mxu1 %v5164_v60  ;;  %v8385_v5 = vld [vmem:[%s10382_s7 + $0x6f0] sm:$0xff]   ;;  %v5089_v60 = vrot.slane %v5084_v25, %v8636_v17  ;;  %v8413_v8 = vld [vmem:[%s10382_s7 + $0x7e8] sm:$0xff]  }
0x197d   :  { %7721 = vmatpush3.bf16.msra.mxu0 %v8363_v12  ;;  %6437 = vmatprep.mubr.bf16.mxu0 %v5166_v53  ;;  %v8386_v12 = vld [vmem:[%s10382_s7 + $0x630] sm:$0xff]   ;;  %v5103_v53 = vrot.slane %v5098_v3, %v8636_v17 }
0x197e   :  { %7700 = vmatprep.subr.bf16.mxu1 %v8364_v56  ;;  %7722 = vmatprep.subr.bf16.mxu0 %v8365_v26  ;;  %v8387_v56 = vld [vmem:[%s10382_s7 + $0x6b0] sm:$0xff]   ;;  %v8388_v26 = vld [vmem:[%s10382_s7 + $0x678] sm:$0xff]  }
0x197f   :  { %v8417_v3 = vld [vmem:[%s10382_s7 + $0x7f0] sm:$0xff]  }
0x1980   :  { %7701 = vmatpush3.bf16.msra.mxu1 %v8366_v41  ;;  %v8389_v41 = vld [vmem:[%s10382_s7 + $0x6f8] sm:$0xff]  }
0x1981   :  { %7723 = vmatpush3.bf16.msra.mxu0 %v8367_v55  ;;  %7702 = vmatprep.subr.bf16.mxu1 %v8368_v2  ;;  %v5124_v55 = vrot.slane %v5119_v10, %v8636_v17  ;;  %v5138_v2 = vrot.slane %v5133_v29, %v8636_v17  ;;  %v8419_v29 = vld [vmem:[%s10382_s7 + $0x7b0] sm:$0xff]  }
0x1982   :  { %7724 = vmatprep.subr.bf16.mxu0 %v8369_v11  ;;  %v8390_v11 = vld [vmem:[%s10382_s7 + $0x638] sm:$0xff]  }
0x1983   :  { %v5152_v63 = vadd.bf16 %v5124_v55, %v4923_v57  ;;  %v8398_v57 = vld [vmem:[%s10382_s7 + $0x708] sm:$0xff]  }
0x1984   :  { %7703 = vmatpush3.bf16.msra.mxu1 %v8370_v54  ;;  %v5147_v54 = vadd.bf16 %v5089_v60, %v4918_v0  ;;  %v5154_v0 = vadd.bf16 %v5138_v2, %v4925_v40  ;;  %v8399_v40 = vld [vmem:[%s10382_s7 + $0x788] sm:$0xff]   ;;  %v8421_v60 = vld [vmem:[%s10382_s7 + $0x7f8] sm:$0xff]  }
0x1985   :  { %7725 = vmatpush3.bf16.msra.mxu0 %v8371_v47  ;;  %7704 = vmatprep.subr.bf16.mxu1 %v8372_v7  ;;  %v8391_v47 = vld [vmem:[%s10382_s7 + $0x6b8] sm:$0xff]   ;;  %v8392_v7 = vld [vmem:[%s10382_s7 + $0x740] sm:$0xff]   ;;  %v5168_v36 = vmax.bf16 %v8547_v14, %v5152_v63 }
0x1986   :  { %7726 = vmatprep.subr.bf16.mxu0 %v8373_v59  ;;  %v5149_v59 = vadd.bf16 %v5103_v53, %v4920_v24  ;;  %v5163_v39 = vmax.bf16 %v8547_v14, %v5147_v54  ;;  %v5170_v32 = vmax.bf16 %v8547_v14, %v5154_v0 }
0x1988   :  { %7705 = vmatpush3.bf16.msra.mxu1 %v8374_v45  ;;  %v8394_v45 = vld [vmem:[%s10382_s7 + $0x700] sm:$0xff]   ;;  %v5165_v24 = vmax.bf16 %v8547_v14, %v5149_v59 }
0x1989   :  { %7727 = vmatpush3.bf16.msra.mxu0 %v8375_v37  ;;  %7706 = vmatprep.subr.bf16.mxu1 %v8376_v38  ;;  %v8401_v37 = vld [vmem:[%s10382_s7 + $0x7d0] sm:$0xff]  }
0x198a   :  { %7728 = vmatprep.subr.bf16.mxu0 %v8377_v28  ;;  %v8402_v38 = vld [vmem:[%s10382_s7 + $0x710] sm:$0xff]   ;;  %v8404_v28 = vld [vmem:[%s10382_s7 + $0x758] sm:$0xff]  }
0x198c   :  { %7707 = vmatpush3.bf16.msra.mxu1 %v8378_v51  ;;  %v4982_v51 = vrot.slane %v9959_v22, %v9127_v46  ;;  %v8410_v22 = vld [vmem:[%s10382_s7 + $0x720] sm:$0xff]  }
0x198d   :  { %7729 = vmatpush3.bf16.msra.mxu0 %v8379_v33  ;;  %7708 = vmatprep.subr.bf16.mxu1 %v8380_v18  ;;  %v8408_v33 = vld [vmem:[%s10382_s7 + $0x760] sm:$0xff]  }
0x198e   :  { %7730 = vmatprep.subr.bf16.mxu0 %v8381_v15  ;;  %v8409_v18 = vld [vmem:[%s10382_s7 + $0x7e0] sm:$0xff]   ;;  %v5023_v35 = vpack.c.bf16 %v4982_v51, %v4982_v51 }
0x198f   :  { %v8411_v15 = vld [vmem:[%s10382_s7 + $0x7a0] sm:$0xff]  }
0x1990   :  { %7709 = vmatpush3.bf16.msra.mxu1 %v8382_v20  ;;  %v8414_v20 = vld [vmem:[%s10382_s7 + $0x728] sm:$0xff]   ;;  %v5112_v25 = vpack.i.b16 %v5023_v35, %v5023_v35 }
0x1991   :  { %7731 = vmatpush3.bf16.msra.mxu0 %v8383_v30  ;;  %7710 = vmatprep.subr.bf16.mxu1 %v8384_v27  ;;  %v8415_v30 = vld [vmem:[%s10382_s7 + $0x7a8] sm:$0xff]   ;;  %v8416_v27 = vld [vmem:[%s10382_s7 + $0x770] sm:$0xff]  }
0x1992   :  { %7732 = vmatprep.subr.bf16.mxu0 %v8385_v5  ;;  %v8418_v5 = vld [vmem:[%s10382_s7 + $0x730] sm:$0xff]   ;;  %v5117_v10 = vrot.slane %v5112_v25, %v8636_v17  ;;  %v8422_v17 = vld [vmem:[%s10382_s7 + $0x738] sm:$0xff]  }
0x1994   :  { %7711 = vmatpush3.bf16.msra.mxu1 %v8386_v12  ;;  %v8420_v12 = vld [vmem:[%s10382_s7 + $0x778] sm:$0xff]  }
0x1995   :  { %7733 = vmatpush3.bf16.msra.mxu0 %v8387_v56  ;;  %7712 = vmatprep.subr.bf16.mxu1 %v8388_v26  ;;  %v5151_v56 = vadd.bf16 %v5117_v10, %v4922_v31  ;;  %v8423_v26 = vld [vmem:[%s10382_s7 + $0x7b8] sm:$0xff]   ;;  %v10344_v31 = vld [vmem:[%s10383_s8 + $0x8] sm:$0x7f]  ;;  %s8549_s7 = smov [#allocation2]  }
0x1996   :  { %7734 = vmatprep.subr.bf16.mxu0 %v8389_v41  ;;  %v5169_v41 = vmax.bf16 %v8547_v14, %v10064_v58  ;;  %v5431_v55 = vrot.slane %v10344_v31, %v9127_v46  ;;  %s6649_s8 = sshll.u32 %s8549_s7, 4  ;;  %s6650_s8 = int_to_ptr.vmem [resolvable:$true] %s6649_s8 }
0x1997   :  { %v5167_v53 = vmax.bf16 %v8547_v14, %v5151_v56  ;;  %s8506_s21 = scalar_lea.vmem %s6650_s8, 32  ;;  %p8511_p1 = scmp.lt.s32.totalorder %s6650_s8, %s6650_s8 }
0x1998   :  { %7713 = vmatpush3.bf16.msra.mxu1 %v8390_v11  ;;  %p8507_p0 = scmp.ne.s32.totalorder %s6650_s8, %s8506_s21  ;;  %p8512_p2 = scmp.lt.s32.totalorder %s8506_s21, %s8506_s21 }
0x1999   :  { %7735 = vmatpush3.bf16.msra.mxu0 %v8391_v47  ;;  %7742 = vmatprep.subr.bf16.mxu1 %v8392_v7 }
0x199a   :  { %7764 = vmatprep.subr.bf16.mxu0 %v8393_v43  ;;  %p8513_p3 = por %p8512_p2, %p8511_p1 }
0x199b   :  { %6397 = vmatmul.mubr.bf16.vlgmr.msra.gmra.mrb[80].mxu1 %v5163_v39 }
0x199c   :  { %6438 = vmatmul.mubr.bf16.vlgmr.msra.gmra.mrb[88].mxu0 %v5165_v24  ;;  %7743 = vmatpush3.bf16.msra.mxu1 %v8394_v45  ;;  %p8514_p4 = pnand %p8513_p3, %p8507_p0 }
0x199d   :  { %6478 = vmatprep.mubr.bf16.mxu1 %v5168_v36  ;;  %7765 = vmatpush3.bf16.msra.mxu0 %v8395_v50 }
0x199e   :  { %6519 = vmatprep.mubr.bf16.mxu0 %v5170_v32  ;;  %7744 = vmatprep.subr.bf16.mxu1 %v8396_v48 }
0x199f   :  { %7766 = vmatprep.subr.bf16.mxu0 %v8397_v4 }
0x19a0   :  { %7745 = vmatpush3.bf16.msra.mxu1 %v8398_v57 }
0x19a1   :  { %7767 = vmatpush3.bf16.msra.mxu0 %v8399_v40  ;;  %7746 = vmatprep.subr.bf16.mxu1 %v8400_v6 }
0x19a2   :  { %7768 = vmatprep.subr.bf16.mxu0 %v8401_v37 }
0x19a4   :  { %7747 = vmatpush3.bf16.msra.mxu1 %v8402_v38 }
0x19a5   :  { %7769 = vmatpush3.bf16.msra.mxu0 %v8403_v42  ;;  %7748 = vmatprep.subr.bf16.mxu1 %v8404_v28 }
0x19a6   :  { %7770 = vmatprep.subr.bf16.mxu0 %v8405_v9 }
0x19a8   :  { %7749 = vmatpush3.bf16.msra.mxu1 %v8406_v49 }
0x19a9   :  { %7771 = vmatpush3.bf16.msra.mxu0 %v8407_v61  ;;  %7750 = vmatprep.subr.bf16.mxu1 %v8408_v33 }
0x19aa   :  { %7772 = vmatprep.subr.bf16.mxu0 %v8409_v18 }
0x19ac   :  { %7751 = vmatpush3.bf16.msra.mxu1 %v8410_v22 }
0x19ad   :  { %7773 = vmatpush3.bf16.msra.mxu0 %v8411_v15  ;;  %7752 = vmatprep.subr.bf16.mxu1 %v8412_v62 }
0x19ae   :  { %7774 = vmatprep.subr.bf16.mxu0 %v8413_v8 }
0x19b0   :  { %7753 = vmatpush3.bf16.msra.mxu1 %v8414_v20 }
0x19b1   :  { %7775 = vmatpush3.bf16.msra.mxu0 %v8415_v30  ;;  %7754 = vmatprep.subr.bf16.mxu1 %v8416_v27 }
0x19b2   :  { %7776 = vmatprep.subr.bf16.mxu0 %v8417_v3 }
0x19b4   :  { %7755 = vmatpush3.bf16.msra.mxu1 %v8418_v5 }
0x19b5   :  { %7777 = vmatpush3.bf16.msra.mxu0 %v8419_v29  ;;  %7756 = vmatprep.subr.bf16.mxu1 %v8420_v12 }
0x19b6   :  { %7778 = vmatprep.subr.bf16.mxu0 %v8421_v60 }
0x19b8   :  { %7757 = vmatpush3.bf16.msra.mxu1 %v8422_v17 }
0x19b9   :  { %7779 = vmatpush3.bf16.msra.mxu0 %v8423_v26 }
0x19bb   :  { %6479 = vmatmul.mubr.bf16.vlgmr.msra.gmra.mrb[84].mxu1 %v5167_v53 }
0x19bc   :  { %6520 = vmatmul.mubr.bf16.vlgmr.msra.gmra.mrb[92].mxu0 %v5169_v41  ;;  %7943 = vmatprep.mubr.msk.f32.mxu1 %vm8531_vm1, %v8530_v1 }
0x1a2e   :  { %v7626_v21 = vpop.f32.mrb[72].mxu1  ;;  %v7648_v23 = vpop.f32.mrb[80].mxu0 }
0x1a2f   :  { %v7627_v2 = vpop.f32.mrb[73].mxu1  ;;  %v7649_v11 = vpop.f32.mrb[81].mxu0 }
0x1a30   :  { %v7628_v54 = vadd.f32 %v7627_v2, %v7626_v21  ;;  %v7650_v47 = vadd.f32 %v7649_v11, %v7648_v23  ;;  %v7629_v14 = vpop.f32.mrb[74].mxu1  ;;  %v7651_v58 = vpop.f32.mrb[82].mxu0 }
0x1a31   :  { %v7630_v7 = vpop.f32.mrb[75].mxu1  ;;  %v7652_v59 = vpop.f32.mrb[83].mxu0 }
0x1a32   :  { %v6235_v43 = vadd.f32 %v7628_v54, %v5431_v55  ;;  %v7631_v63 = vadd.f32 %v7630_v7, %v7629_v14  ;;  %v7653_v0 = vadd.f32 %v7652_v59, %v7651_v58 }
0x1a34   :  { %v6276_v45 = vadd.f32 %v7650_v47, %v6235_v43  ;;  %v6238_v39 = vadd.f32 %v7631_v63, %v5431_v55 }
0x1a36   :  { %v6279_v50 = vadd.f32 %v7653_v0, %v6238_v39 }
0x1a4e   :  { %v7670_v24 = vpop.f32.mrb[76].mxu1  ;;  %v7692_v48 = vpop.f32.mrb[84].mxu0 }
0x1a4f   :  { %v7671_v36 = vpop.f32.mrb[77].mxu1  ;;  %v7693_v4 = vpop.f32.mrb[85].mxu0 }
0x1a50   :  { %v7672_v32 = vadd.f32 %v7671_v36, %v7670_v24  ;;  %v7694_v46 = vadd.f32 %v7693_v4, %v7692_v48  ;;  %v7673_v57 = vpop.f32.mrb[78].mxu1  ;;  %v7695_v40 = vpop.f32.mrb[86].mxu0 }
0x1a51   :  { %v7674_v6 = vpop.f32.mrb[79].mxu1  ;;  %v7696_v37 = vpop.f32.mrb[87].mxu0 }
0x1a52   :  { %v6317_v38 = vadd.f32 %v7672_v32, %v6276_v45  ;;  %v7675_v42 = vadd.f32 %v7674_v6, %v7673_v57  ;;  %v7697_v28 = vadd.f32 %v7696_v37, %v7695_v40 }
0x1a54   :  { %v6358_v9 = vadd.f32 %v7694_v46, %v6317_v38  ;;  %v6320_v49 = vadd.f32 %v7675_v42, %v6279_v50  ;;  %v8548_v46 = vmov 0.0|0.0   ;;  %v67_v42 = vmul.u32 8, %v8633_v16 }
0x1a55   :  { %8026 = vmatprep.subr.bf16.mxu1 %v8548_v46 }
0x1a56   :  { %v6361_v51 = vadd.f32 %v7697_v28, %v6320_v49  ;;  %v6559_v28 = vrot.slane %v10344_v31, %v9049_v13  ;;  %vm68_vm10 = vcmp.ge.s32.totalorder %v8693_v44, %v67_v42 }
0x1a6e   :  { %v7714_v61 = vpop.f32.mrb[80].mxu1 }
0x1a6f   :  { %v7736_v33 = vpop.f32.mrb[88].mxu0  ;;  %v7715_v18 = vpop.f32.mrb[81].mxu1 }
0x1a70   :  { %v7716_v22 = vadd.f32 %v7715_v18, %v7714_v61  ;;  %v7737_v35 = vpop.f32.mrb[89].mxu0  ;;  %v7717_v15 = vpop.f32.mrb[82].mxu1 }
0x1a71   :  { %v7738_v62 = vadd.f32 %v7737_v35, %v7736_v33  ;;  %v7739_v8 = vpop.f32.mrb[90].mxu0  ;;  %v7718_v20 = vpop.f32.mrb[83].mxu1 }
0x1a72   :  { %v6399_v25 = vadd.f32 %v7716_v22, %v6358_v9  ;;  %v7719_v30 = vadd.f32 %v7718_v20, %v7717_v15  ;;  %v7740_v27 = vpop.f32.mrb[91].mxu0  ;;  %v6565_v22 = vrot.slane %v10344_v31, %v9093_v19 }
0x1a73   :  { %v7741_v3 = vadd.f32 %v7740_v27, %v7739_v8 }
0x1a74   :  { %v6440_v5 = vadd.f32 %v7738_v62, %v6399_v25  ;;  %v6402_v10 = vadd.f32 %v7719_v30, %v6361_v51  ;;  %v69_v51 = vadd.s32 8, %v67_v42 }
0x1a76   :  { %v6443_v29 = vadd.f32 %v7741_v3, %v6402_v10  ;;  %vm70_vm11 = vcmp.lt.s32.totalorder %v8693_v44, %v69_v51 }
0x1a77   :  { %vm71_vm12 = vmand %vm68_vm10, %vm70_vm11 }
0x1a78   :  { %v72_v13 = vsel %vm71_vm12, 0.125, %v8530_v1 }
0x1a8e   :  { %v7758_v12 = vpop.f32.mrb[84].mxu1 }
0x1a8f   :  { %v7780_v60 = vpop.f32.mrb[92].mxu0  ;;  %v7759_v17 = vpop.f32.mrb[85].mxu1 }
0x1a90   :  { %v7760_v56 = vadd.f32 %v7759_v17, %v7758_v12  ;;  %v7781_v26 = vpop.f32.mrb[93].mxu0  ;;  %v7761_v53 = vpop.f32.mrb[86].mxu1 }
0x1a91   :  { %v7782_v41 = vadd.f32 %v7781_v26, %v7780_v60  ;;  %v7783_v21 = vpop.f32.mrb[94].mxu0  ;;  %v7762_v23 = vpop.f32.mrb[87].mxu1 }
0x1a92   :  { %v6481_v55 = vadd.f32 %v7760_v56, %v6440_v5  ;;  %v7763_v2 = vadd.f32 %v7762_v23, %v7761_v53  ;;  %v7784_v11 = vpop.f32.mrb[95].mxu0 }
0x1a93   :  { %v7785_v54 = vadd.f32 %v7784_v11, %v7783_v21 }
0x1a94   :  { %v6522_v47 = vadd.f32 %v7782_v41, %v6481_v55  ;;  %v6484_v14 = vadd.f32 %v7763_v2, %v6443_v29 }
0x1a96   :  { %v6525_v58 = vadd.f32 %v7785_v54, %v6484_v14  ;;  %v6528_v7 = vadd.f32 %v6522_v47, %v9719_v52 }
0x1a98   :  { %v6530_v59 = vsel %vm158_vm2, %v6528_v7, 0.0  ;;  %v6529_v43 = vadd.f32 %v6525_v58, %v9721_v34 }
0x1a99   :  { %6531 = vadd.xlane.f32.xlu1 %v6530_v59 }
0x1a9a   :  { %v6533_v63 = vsel %vm158_vm2, %v6529_v43, 0.0 }
0x1a9b   :  { %6534 = vadd.xlane.f32.xlu0 %v6533_v63 }
0x1b26   :  { %v6532_v0 = vpop.xlane.xlu1 %6531 }
0x1b27   :  { %v6536_v45 = vmul.f32 0.03125, %v6532_v0 }
0x1b28   :  { %v6535_v39 = vpop.xlane.xlu0 %6534 }
0x1b29   :  { %v6538_v50 = vsub.f32 %v6528_v7, %v6536_v45  ;;  %v6537_v24 = vmul.f32 0.03125, %v6535_v39 }
0x1b2b   :  { %v6539_v48 = vsub.f32 %v6529_v43, %v6537_v24  ;;  %v6540_v36 = vmul.f32 %v6538_v50, %v6538_v50 }
0x1b2d   :  { %v6542_v4 = vsel %vm158_vm2, %v6540_v36, 0.0  ;;  %v6541_v32 = vmul.f32 %v6539_v48, %v6539_v48 }
0x1b2e   :  { %6543 = vadd.xlane.f32.xlu1 %v6542_v4 }
0x1b2f   :  { %v6545_v52 = vsel %vm158_vm2, %v6541_v32, 0.0 }
0x1b30   :  { %6546 = vadd.xlane.f32.xlu0 %v6545_v52 }
0x1bbb   :  { %v6544_v34 = vpop.xlane.xlu1 %6543 }
0x1bbc   :  { %v6548_v57 = vmul.f32 0.03125, %v6544_v34 }
0x1bbd   :  { %v6547_v40 = vpop.xlane.xlu0 %6546 }
0x1bbe   :  { %v6550_v6 = vadd.f32 1e-05, %v6548_v57  ;;  %v6549_v37 = vmul.f32 0.03125, %v6547_v40 }
0x1bc0   :  { %8500 = vrsqrt.f32 %v6550_v6  ;;  %v6551_v38 = vadd.f32 1e-05, %v6549_v37 }
0x1bc2   :  { %8502 = vrsqrt.f32 %v6551_v38 }
0x1bca   :  { %v8501_v9 = vpop.eup %8500 }
0x1bcb   :  { %v6554_v49 = vmul.f32 %v8501_v9, %v6538_v50 }
0x1bcc   :  { %v8503_v61 = vpop.eup %8502 }
0x1bcd   :  { %v6555_v33 = vmul.f32 %v8503_v61, %v6539_v48  ;;  %v6560_v18 = vmul.f32 %v6559_v28, %v6554_v49 }
0x1bcf   :  { %v6561_v35 = vmul.f32 %v6559_v28, %v6555_v33  ;;  %v6566_v15 = vadd.f32 %v6565_v22, %v6560_v18 }
0x1bd1   :  { %v6567_v62 = vadd.f32 %v6565_v22, %v6561_v35 }
0x1bd3   :  { %v8027_v16 = vpack.c.bf16 %v6567_v62, %v6566_v15 }
0x1bd5   :  { %8028 = vmatpush3.bf16.msra.mxu1 %v8027_v16 }
0x1bd8   :  { %7944 = vmatmul.mubr.msk.f32.vlgmr.msra.gmra.mrb[54].mxu1 %vm91_vm0, %v72_v13 }
0x1cab   :  { %v6637_v8 = vpop.f32.mrb[54].mxu1 }
0x1cac   :  { %6642 = vst.msk [vmem:[#allocation2] sm:$0x3] %vm6641_vm13, %v6637_v8  ;;  %v7945_v19 = vpop.f32.mrb[55].mxu1 }
0x1cad   :  { %8517 = shalt.err (!%p8514_p4)
}
0x1cae   :  { %s8518_s4 = scalar_lea.hbm %s10384_s9, 32 }
0x1caf   :  { %p8519_p5 = scmp.ne.s32.totalorder %s10384_s9, %s8518_s4  ;;  %p8522_p6 = scmp.lt.u32.totalorder %s8518_s4, %s10384_s9 }
0x1cb1   :  { %p8524_p7 = pnand %p8522_p6, %p8519_p5 }
0x1cb3   :  { %8527 = shalt.err (!%p8524_p7)
}
0x1cb4   :  { %6652 = dma.vmem_to_hbm [thread:$0]  %s6650_s8, 32, %s10384_s9, [#allocation3]  }
0x1cb5   :  { %8528 = dma.done.wait [#allocation3], 32  }
0x1cb6   :  { %8529 = vsyncadd [#allocation3], 4294967264 }
0x1cb7   :  { %6656 = vsyncpa [#allocation3], 1 }

</bundles_post_ra>
